<compile_context>
chip_gen: v7x
topology: tpu7x:2x2x1
jax: 0.10.0
libtpu: 0.0.40
codegen_flags: <defaults>
</compile_context>

<pallas_src>
import functools

import jax
import jax.numpy as jnp
from jax import lax
from jax.experimental import pallas as pl
from jax.experimental.pallas import tpu as pltpu


# --------------------------------------------------------------------------
# Fused kernel: projection + bidirectional LSTM + GRU + attention + Linear
# --------------------------------------------------------------------------

def _fused_kernel(x_ref, w_all_ref, b_all_ref,
                  whh_lf_ref, whh_lb_ref, whh_gf_ref, whh_gb_ref,
                  bhh_gf_ref, bhh_gb_ref, lin_w_ref, lin_b_ref,
                  out_ref,
                  gi_scr, lstm_f_scr, lstm_b_scr, gru_f_scr, gru_b_scr,
                  *, scale):
    S, B, H = lstm_f_scr.shape
    H4, H3 = 4 * H, 3 * H

    # ---- Stage 1: hoisted input projection, ONE MXU matmul for all 4 streams.
    # Layout of the 16H columns: [LSTM_f 4H | LSTM_b 4H | GRU_f 3H, pad H |
    # GRU_b 3H, pad H] so every stream block starts on a 128-lane boundary.
    gi_scr[...] = (jnp.dot(x_ref[...], w_all_ref[...],
                           preferred_element_type=jnp.float32) + b_all_ref[...])

    # ---- Stage 2: the four recurrences. Weights loaded once (out of the loop).
    whh_lf = whh_lf_ref[...]
    whh_lb = whh_lb_ref[...]
    whh_gf = whh_gf_ref[...]
    whh_gb = whh_gb_ref[...]
    bhh_gf = bhh_gf_ref[...]
    bhh_gb = bhh_gb_ref[...]

    def lstm_step(gi, h, c, whh):
        # gi already holds x @ W_ih + b_ih + b_hh (hoisted out of the loop).
        gates = gi + jnp.dot(h, whh, preferred_element_type=jnp.float32)
        i = jax.nn.sigmoid(gates[:, 0:H])
        f = jax.nn.sigmoid(gates[:, H:2 * H])
        g = jnp.tanh(gates[:, 2 * H:3 * H])
        o = jax.nn.sigmoid(gates[:, 3 * H:4 * H])
        c_new = f * c + i * g
        return o * jnp.tanh(c_new), c_new

    def gru_step(gi, h, whh, bhh):
        # gi = x @ W_ih + b_ih; gh stays separate because of the r * gh_n term.
        gh = jnp.dot(h, whh, preferred_element_type=jnp.float32) + bhh
        r = jax.nn.sigmoid(gi[:, 0:H] + gh[:, 0:H])
        z = jax.nn.sigmoid(gi[:, H:2 * H] + gh[:, H:2 * H])
        n = jnp.tanh(gi[:, 2 * H:3 * H] + r * gh[:, 2 * H:3 * H])
        return (1.0 - z) * n + z * h

    def body(t, carry):
        h_lf, c_lf, h_lb, c_lb, h_gf, h_gb = carry
        rt = S - 1 - t                 # backward streams walk the seq reversed
        gi_f = gi_scr[pl.ds(t * B, B), :]    # (B, 16H) row block, time t
        gi_b = gi_scr[pl.ds(rt * B, B), :]   # (B, 16H) row block, time rt
        h_lf, c_lf = lstm_step(gi_f[:, 0:H4], h_lf, c_lf, whh_lf)
        h_lb, c_lb = lstm_step(gi_b[:, H4:2 * H4], h_lb, c_lb, whh_lb)
        h_gf = gru_step(gi_f[:, 2 * H4:2 * H4 + H3], h_gf, whh_gf, bhh_gf)
        h_gb = gru_step(gi_b[:, 3 * H4:3 * H4 + H3], h_gb, whh_gb, bhh_gb)
        # Write straight into time-ordered per-direction VMEM buffers
        # (no x[::-1] materialization, no HBM round trip, no later flip).
        lstm_f_scr[t] = h_lf
        lstm_b_scr[rt] = h_lb
        gru_f_scr[t] = h_gf
        gru_b_scr[rt] = h_gb
        return h_lf, c_lf, h_lb, c_lb, h_gf, h_gb

    z0 = jnp.zeros((B, H), jnp.float32)
    lax.fori_loop(0, S, body, (z0, z0, z0, z0, z0, z0), unroll=True)

    # ---- Stage 3: attention + Linear + batch-mean (all in the same call).
    lstm_out = jnp.concatenate([lstm_f_scr[...], lstm_b_scr[...]], axis=-1)  # (S,B,2H)
    gru_out = jnp.concatenate([gru_f_scr[...], gru_b_scr[...]], axis=-1)     # (S,B,2H)

    # Attention over the batch axis (as the PyTorch module does), batched over
    # the sequence axis in a single einsum instead of S separate steps.
    att = jnp.einsum('sbd,scd->sbc', lstm_out, gru_out,
                     preferred_element_type=jnp.float32) * scale             # (S,B,B)
    att = jnp.exp(att - jnp.max(att, axis=-1, keepdims=True))
    denom = jnp.sum(att, axis=-1, keepdims=True)
    inv = pl.reciprocal(denom, approx=True)       # EUP slot
    inv = inv * (2.0 - denom * inv)               # one Newton step -> f32 accuracy
    att = att * inv
    ctx = jnp.einsum('sbc,scd->sbd', att, lstm_out,
                     preferred_element_type=jnp.float32)                     # (S,B,2H)

    # mean over batch commutes with the final Linear:
    #   mean(ctx @ W + b, axis=1) == mean(ctx, axis=1) @ W + b
    ctx_mean = jnp.mean(ctx, axis=1)                                         # (S, 2H)
    out_ref[...] = (jnp.dot(ctx_mean, lin_w_ref[...],
                            preferred_element_type=jnp.float32) + lin_b_ref[...])


def _fused_forward(x2d, w_all, b_all,
                   whh_lf, whh_lb, whh_gf, whh_gb,
                   bhh_gf, bhh_gb, lin_w, lin_b, *, S, B, H, scale=1.0):
    return pl.pallas_call(
        functools.partial(_fused_kernel, scale=scale),
        out_shape=jax.ShapeDtypeStruct((S, 3), jnp.float32),
        scratch_shapes=[pltpu.VMEM((S * B, 16 * H), jnp.float32)]
                     + [pltpu.VMEM((S, B, H), jnp.float32) for _ in range(4)],
    )(x2d, w_all, b_all, whh_lf, whh_lb, whh_gf, whh_gb,
      bhh_gf, bhh_gb, lin_w, lin_b)


# --------------------------------------------------------------------------
# Forward wrapper (equivalent of myLSTM.forward at inference)
# --------------------------------------------------------------------------

@jax.jit
def my_lstm_forward(x, params):
    S, B, nin = x.shape
    lp, gp = params['lstm'], params['gru']
    H = lp['fwd']['w_hh'].shape[1]

    # Combined, lane-aligned projection weight: every stream starts at k*4H.
    zw = jnp.zeros((nin, H), jnp.float32)
    zb = jnp.zeros((H,), jnp.float32)
    w_all = jnp.concatenate(
        [lp['fwd']['w_ih'].T, lp['bwd']['w_ih'].T,
         gp['fwd']['w_ih'].T, zw,
         gp['bwd']['w_ih'].T, zw], axis=1)                                   # (nin,16H)
    b_all = jnp.concatenate(
        [lp['fwd']['b_ih'] + lp['fwd']['b_hh'],
         lp['bwd']['b_ih'] + lp['bwd']['b_hh'],
         gp['fwd']['b_ih'], zb,
         gp['bwd']['b_ih'], zb])                                             # (16H,)

    return _fused_forward(
        x.reshape(S * B, nin), w_all, b_all[None, :],
        lp['fwd']['w_hh'].T, lp['bwd']['w_hh'].T,
        gp['fwd']['w_hh'].T, gp['bwd']['w_hh'].T,
        gp['fwd']['b_hh'][None, :], gp['bwd']['b_hh'][None, :],
        params['lin_w'].T, params['lin_b'][None, :],
        S=S, B=B, H=H, scale=1.0)                                            # (S, 3)


# --------------------------------------------------------------------------
# Pure-JAX reference (for verification)
# --------------------------------------------------------------------------

def _lstm_ref_dir(x, p):
    H = p['w_hh'].shape[1]
    B = x.shape[1]

    def step(carry, xt):
        h, c = carry
        gates = xt @ p['w_ih'].T + p['b_ih'] + h @ p['w_hh'].T + p['b_hh']
        i, f, g, o = jnp.split(gates, 4, axis=-1)
        i, f, o = jax.nn.sigmoid(i), jax.nn.sigmoid(f), jax.nn.sigmoid(o)
        g = jnp.tanh(g)
        c = f * c + i * g
        h = o * jnp.tanh(c)
        return (h, c), h

    init = (jnp.zeros((B, H), jnp.float32), jnp.zeros((B, H), jnp.float32))
    _, ys = jax.lax.scan(step, init, x)
    return ys


def _gru_ref_dir(x, p):
    H = p['w_hh'].shape[1]
    B = x.shape[1]

    def step(h, xt):
        gi = xt @ p['w_ih'].T + p['b_ih']
        gh = h @ p['w_hh'].T + p['b_hh']
        ir, iz, inn = jnp.split(gi, 3, axis=-1)
        hr, hz, hn = jnp.split(gh, 3, axis=-1)
        r = jax.nn.sigmoid(ir + hr)
        z = jax.nn.sigmoid(iz + hz)
        n = jnp.tanh(inn + r * hn)
        h = (1.0 - z) * n + z * h
        return h, h

    _, ys = jax.lax.scan(step, jnp.zeros((B, H), jnp.float32), x)
    return ys


def reference_forward(x, params):
    lstm_out = jnp.concatenate(
        [_lstm_ref_dir(x, params['lstm']['fwd']),
         _lstm_ref_dir(x[::-1], params['lstm']['bwd'])[::-1]], axis=-1)
    gru_out = jnp.concatenate(
        [_gru_ref_dir(x, params['gru']['fwd']),
         _gru_ref_dir(x[::-1], params['gru']['bwd'])[::-1]], axis=-1)
    att = jnp.einsum('sbd,scd->sbc', lstm_out, gru_out) * 1.0
    att = jax.nn.softmax(att, axis=-1)
    ctx = jnp.einsum('sbc,scd->sbd', att, lstm_out)
    lin = ctx @ params['lin_w'].T + params['lin_b']
    return jnp.mean(lin, axis=1)


# --------------------------------------------------------------------------
# Deterministic parameter init (PyTorch-style uniform bounds, synthetic values)
# --------------------------------------------------------------------------

def init_params(key, nin, nhid):
    ks = iter(jax.random.split(key, 32))

    def u(shape, bound):
        return jax.random.uniform(next(ks), shape, jnp.float32, -bound, bound)

    kr = 1.0 / (nhid ** 0.5)
    kl = 1.0 / ((2 * nhid) ** 0.5)

    def rnn_dir(gates):
        return dict(w_ih=u((gates * nhid, nin), kr),
                    w_hh=u((gates * nhid, nhid), kr),
                    b_ih=u((gates * nhid,), kr),
                    b_hh=u((gates * nhid,), kr))

    return dict(
        lstm=dict(fwd=rnn_dir(4), bwd=rnn_dir(4)),
        gru=dict(fwd=rnn_dir(3), bwd=rnn_dir(3)),
        lin_w=u((3, 2 * nhid), kl),
        lin_b=u((3,), kl),
    )


# --------------------------------------------------------------------------
# Main
# --------------------------------------------------------------------------

if __name__ == "__main__":
    SEQ, BATCH, NINPUT, NHID = 8, 2, 4, 32

    root = jax.random.PRNGKey(0)
    k_x, k_p = jax.random.split(root)
    x = jax.random.normal(k_x, (SEQ, BATCH, NINPUT), jnp.float32)
    params = init_params(k_p, NINPUT, NHID)

    out = jax.block_until_ready(my_lstm_forward(x, params))
    assert out.shape == (SEQ, 3), out.shape
    assert bool(jnp.all(jnp.isfinite(out)))

    ref = reference_forward(x, params)
    assert bool(jnp.allclose(out, ref, atol=1e-3, rtol=1e-3)), (out, ref)

    print("KERNEL_OK")
</pallas_src>

<mosaic_0001>
module attributes {stable_mosaic.version = 11 : i64} {
  func.func @_fused_kernel(%arg0: memref<16x4xf32, #tpu.memory_space<vmem>>, %arg1: memref<4x512xf32, #tpu.memory_space<vmem>>, %arg2: memref<1x512xf32, #tpu.memory_space<vmem>>, %arg3: memref<32x128xf32, #tpu.memory_space<vmem>>, %arg4: memref<32x128xf32, #tpu.memory_space<vmem>>, %arg5: memref<32x96xf32, #tpu.memory_space<vmem>>, %arg6: memref<32x96xf32, #tpu.memory_space<vmem>>, %arg7: memref<1x96xf32, #tpu.memory_space<vmem>>, %arg8: memref<1x96xf32, #tpu.memory_space<vmem>>, %arg9: memref<64x3xf32, #tpu.memory_space<vmem>>, %arg10: memref<1x3xf32, #tpu.memory_space<vmem>>, %arg11: memref<8x3xf32, #tpu.memory_space<vmem>>, %arg12: memref<16x512xf32, #tpu.memory_space<vmem>>, %arg13: memref<8x2x32xf32, #tpu.memory_space<vmem>>, %arg14: memref<8x2x32xf32, #tpu.memory_space<vmem>>, %arg15: memref<8x2x32xf32, #tpu.memory_space<vmem>>, %arg16: memref<8x2x32xf32, #tpu.memory_space<vmem>>) attributes {dimension_semantics = [], scalar_prefetch = 0 : i64, scratch_operands = 5 : i64, tpu.core_type = #tpu.core_type<tc>} {
    %c0 = arith.constant 0 : index
    %c0_0 = arith.constant 0 : index
    %0 = vector.load %arg0[%c0, %c0_0] : memref<16x4xf32, #tpu.memory_space<vmem>>, vector<16x4xf32>
    %c0_1 = arith.constant 0 : index
    %c0_2 = arith.constant 0 : index
    %1 = vector.load %arg1[%c0_1, %c0_2] : memref<4x512xf32, #tpu.memory_space<vmem>>, vector<4x512xf32>
    %cst = arith.constant dense<0.000000e+00> : vector<16x512xf32>
    %2 = tpu.matmul %0, %1, %cst {dimension_numbers = #tpu.dot_dimension_numbers<[1], [0], [0], [1], [0, 0, 1, 1], [], []>} : vector<16x4xf32>, vector<4x512xf32>, vector<16x512xf32> -> vector<16x512xf32>
    %c0_3 = arith.constant 0 : index
    %c0_4 = arith.constant 0 : index
    %3 = vector.load %arg2[%c0_3, %c0_4] : memref<1x512xf32, #tpu.memory_space<vmem>>, vector<1x512xf32>
    %4 = vector.broadcast %3 : vector<1x512xf32> to vector<16x512xf32>
    %5 = arith.addf %2, %4 : vector<16x512xf32>
    %c0_5 = arith.constant 0 : index
    %c0_6 = arith.constant 0 : index
    %6 = vector.load %arg12[%c0_5, %c0_6] : memref<16x512xf32, #tpu.memory_space<vmem>>, vector<16x512xf32>
    tpu.vector_store %arg12[%c0_5, %c0_6], %5 {strides = array<i32>} : memref<16x512xf32, #tpu.memory_space<vmem>>, vector<16x512xf32>,
    %c0_7 = arith.constant 0 : index
    %c0_8 = arith.constant 0 : index
    %7 = vector.load %arg3[%c0_7, %c0_8] : memref<32x128xf32, #tpu.memory_space<vmem>>, vector<32x128xf32>
    %c0_9 = arith.constant 0 : index
    %c0_10 = arith.constant 0 : index
    %8 = vector.load %arg4[%c0_9, %c0_10] : memref<32x128xf32, #tpu.memory_space<vmem>>, vector<32x128xf32>
    %c0_11 = arith.constant 0 : index
    %c0_12 = arith.constant 0 : index
    %9 = vector.load %arg5[%c0_11, %c0_12] : memref<32x96xf32, #tpu.memory_space<vmem>>, vector<32x96xf32>
    %c0_13 = arith.constant 0 : index
    %c0_14 = arith.constant 0 : index
    %10 = vector.load %arg6[%c0_13, %c0_14] : memref<32x96xf32, #tpu.memory_space<vmem>>, vector<32x96xf32>
    %c0_15 = arith.constant 0 : index
    %c0_16 = arith.constant 0 : index
    %11 = vector.load %arg7[%c0_15, %c0_16] : memref<1x96xf32, #tpu.memory_space<vmem>>, vector<1x96xf32>
    %c0_17 = arith.constant 0 : index
    %c0_18 = arith.constant 0 : index
    %12 = vector.load %arg8[%c0_17, %c0_18] : memref<1x96xf32, #tpu.memory_space<vmem>>, vector<1x96xf32>
    %cst_19 = arith.constant 0.000000e+00 : f32
    %13 = vector.broadcast %cst_19 : f32 to vector<2x32xf32>
    %c0_i32 = arith.constant 0 : i32
    %c7_i32 = arith.constant 7 : i32
    %14 = arith.subi %c7_i32, %c0_i32 : i32
    %c2_i32 = arith.constant 2 : i32
    %15 = arith.muli %c0_i32, %c2_i32 : i32
    %16 = arith.index_cast %15 : i32 to index
    %c0_20 = arith.constant 0 : index
    %17 = vector.load %arg12[%16, %c0_20] : memref<16x512xf32, #tpu.memory_space<vmem>>, vector<2x512xf32>
    %c2_i32_21 = arith.constant 2 : i32
    %18 = arith.muli %14, %c2_i32_21 : i32
    %19 = arith.index_cast %18 : i32 to index
    %c0_22 = arith.constant 0 : index
    %20 = vector.load %arg12[%19, %c0_22] : memref<16x512xf32, #tpu.memory_space<vmem>>, vector<2x512xf32>
    %21 = vector.extract_strided_slice %17 {offsets = [0, 0], sizes = [2, 128], strides = [1, 1]} : vector<2x512xf32> to vector<2x128xf32>
    %cst_23 = arith.constant dense<0.000000e+00> : vector<2x128xf32>
    %22 = tpu.matmul %13, %7, %cst_23 {dimension_numbers = #tpu.dot_dimension_numbers<[1], [0], [0], [1], [0, 0, 1, 1], [], []>} : vector<2x32xf32>, vector<32x128xf32>, vector<2x128xf32> -> vector<2x128xf32>
    %23 = arith.addf %21, %22 : vector<2x128xf32>
    %24 = vector.extract_strided_slice %23 {offsets = [0, 0], sizes = [2, 32], strides = [1, 1]} : vector<2x128xf32> to vector<2x32xf32>
    %25 = arith.negf %24 : vector<2x32xf32>
    %26 = math.exp %25 : vector<2x32xf32>
    %cst_24 = arith.constant 1.000000e+00 : f32
    %27 = vector.broadcast %cst_24 : f32 to vector<2x32xf32>
    %28 = arith.addf %27, %26 : vector<2x32xf32>
    %29 = arith.divf %27, %28 : vector<2x32xf32>
    %30 = vector.extract_strided_slice %23 {offsets = [0, 32], sizes = [2, 32], strides = [1, 1]} : vector<2x128xf32> to vector<2x32xf32>
    %31 = arith.negf %30 : vector<2x32xf32>
    %32 = math.exp %31 : vector<2x32xf32>
    %cst_25 = arith.constant 1.000000e+00 : f32
    %33 = vector.broadcast %cst_25 : f32 to vector<2x32xf32>
    %34 = arith.addf %33, %32 : vector<2x32xf32>
    %35 = arith.divf %33, %34 : vector<2x32xf32>
    %36 = vector.extract_strided_slice %23 {offsets = [0, 64], sizes = [2, 32], strides = [1, 1]} : vector<2x128xf32> to vector<2x32xf32>
    %37 = math.tanh %36 : vector<2x32xf32>
    %38 = vector.extract_strided_slice %23 {offsets = [0, 96], sizes = [2, 32], strides = [1, 1]} : vector<2x128xf32> to vector<2x32xf32>
    %39 = arith.negf %38 : vector<2x32xf32>
    %40 = math.exp %39 : vector<2x32xf32>
    %cst_26 = arith.constant 1.000000e+00 : f32
    %41 = vector.broadcast %cst_26 : f32 to vector<2x32xf32>
    %42 = arith.addf %41, %40 : vector<2x32xf32>
    %43 = arith.divf %41, %42 : vector<2x32xf32>
    %44 = arith.mulf %35, %13 : vector<2x32xf32>
    %45 = arith.mulf %29, %37 : vector<2x32xf32>
    %46 = arith.addf %44, %45 : vector<2x32xf32>
    %47 = math.tanh %46 : vector<2x32xf32>
    %48 = arith.mulf %43, %47 : vector<2x32xf32>
    %49 = vector.extract_strided_slice %20 {offsets = [0, 128], sizes = [2, 128], strides = [1, 1]} : vector<2x512xf32> to vector<2x128xf32>
    %cst_27 = arith.constant dense<0.000000e+00> : vector<2x128xf32>
    %50 = tpu.matmul %13, %8, %cst_27 {dimension_numbers = #tpu.dot_dimension_numbers<[1], [0], [0], [1], [0, 0, 1, 1], [], []>} : vector<2x32xf32>, vector<32x128xf32>, vector<2x128xf32> -> vector<2x128xf32>
    %51 = arith.addf %49, %50 : vector<2x128xf32>
    %52 = vector.extract_strided_slice %51 {offsets = [0, 0], sizes = [2, 32], strides = [1, 1]} : vector<2x128xf32> to vector<2x32xf32>
    %53 = arith.negf %52 : vector<2x32xf32>
    %54 = math.exp %53 : vector<2x32xf32>
    %cst_28 = arith.constant 1.000000e+00 : f32
    %55 = vector.broadcast %cst_28 : f32 to vector<2x32xf32>
    %56 = arith.addf %55, %54 : vector<2x32xf32>
    %57 = arith.divf %55, %56 : vector<2x32xf32>
    %58 = vector.extract_strided_slice %51 {offsets = [0, 32], sizes = [2, 32], strides = [1, 1]} : vector<2x128xf32> to vector<2x32xf32>
    %59 = arith.negf %58 : vector<2x32xf32>
    %60 = math.exp %59 : vector<2x32xf32>
    %cst_29 = arith.constant 1.000000e+00 : f32
    %61 = vector.broadcast %cst_29 : f32 to vector<2x32xf32>
    %62 = arith.addf %61, %60 : vector<2x32xf32>
    %63 = arith.divf %61, %62 : vector<2x32xf32>
    %64 = vector.extract_strided_slice %51 {offsets = [0, 64], sizes = [2, 32], strides = [1, 1]} : vector<2x128xf32> to vector<2x32xf32>
    %65 = math.tanh %64 : vector<2x32xf32>
    %66 = vector.extract_strided_slice %51 {offsets = [0, 96], sizes = [2, 32], strides = [1, 1]} : vector<2x128xf32> to vector<2x32xf32>
    %67 = arith.negf %66 : vector<2x32xf32>
    %68 = math.exp %67 : vector<2x32xf32>
    %cst_30 = arith.constant 1.000000e+00 : f32
    %69 = vector.broadcast %cst_30 : f32 to vector<2x32xf32>
    %70 = arith.addf %69, %68 : vector<2x32xf32>
    %71 = arith.divf %69, %70 : vector<2x32xf32>
    %72 = arith.mulf %63, %13 : vector<2x32xf32>
    %73 = arith.mulf %57, %65 : vector<2x32xf32>
    %74 = arith.addf %72, %73 : vector<2x32xf32>
    %75 = math.tanh %74 : vector<2x32xf32>
    %76 = arith.mulf %71, %75 : vector<2x32xf32>
    %77 = vector.extract_strided_slice %17 {offsets = [0, 256], sizes = [2, 96], strides = [1, 1]} : vector<2x512xf32> to vector<2x96xf32>
    %cst_31 = arith.constant dense<0.000000e+00> : vector<2x96xf32>
    %78 = tpu.matmul %13, %9, %cst_31 {dimension_numbers = #tpu.dot_dimension_numbers<[1], [0], [0], [1], [0, 0, 1, 1], [], []>} : vector<2x32xf32>, vector<32x96xf32>, vector<2x96xf32> -> vector<2x96xf32>
    %79 = vector.broadcast %11 : vector<1x96xf32> to vector<2x96xf32>
    %80 = arith.addf %78, %79 : vector<2x96xf32>
    %81 = vector.extract_strided_slice %77 {offsets = [0, 0], sizes = [2, 32], strides = [1, 1]} : vector<2x96xf32> to vector<2x32xf32>
    %82 = vector.extract_strided_slice %80 {offsets = [0, 0], sizes = [2, 32], strides = [1, 1]} : vector<2x96xf32> to vector<2x32xf32>
    %83 = arith.addf %81, %82 : vector<2x32xf32>
    %84 = arith.negf %83 : vector<2x32xf32>
    %85 = math.exp %84 : vector<2x32xf32>
    %cst_32 = arith.constant 1.000000e+00 : f32
    %86 = vector.broadcast %cst_32 : f32 to vector<2x32xf32>
    %87 = arith.addf %86, %85 : vector<2x32xf32>
    %88 = arith.divf %86, %87 : vector<2x32xf32>
    %89 = vector.extract_strided_slice %77 {offsets = [0, 32], sizes = [2, 32], strides = [1, 1]} : vector<2x96xf32> to vector<2x32xf32>
    %90 = vector.extract_strided_slice %80 {offsets = [0, 32], sizes = [2, 32], strides = [1, 1]} : vector<2x96xf32> to vector<2x32xf32>
    %91 = arith.addf %89, %90 : vector<2x32xf32>
    %92 = arith.negf %91 : vector<2x32xf32>
    %93 = math.exp %92 : vector<2x32xf32>
    %cst_33 = arith.constant 1.000000e+00 : f32
    %94 = vector.broadcast %cst_33 : f32 to vector<2x32xf32>
    %95 = arith.addf %94, %93 : vector<2x32xf32>
    %96 = arith.divf %94, %95 : vector<2x32xf32>
    %97 = vector.extract_strided_slice %77 {offsets = [0, 64], sizes = [2, 32], strides = [1, 1]} : vector<2x96xf32> to vector<2x32xf32>
    %98 = vector.extract_strided_slice %80 {offsets = [0, 64], sizes = [2, 32], strides = [1, 1]} : vector<2x96xf32> to vector<2x32xf32>
    %99 = arith.mulf %88, %98 : vector<2x32xf32>
    %100 = arith.addf %97, %99 : vector<2x32xf32>
    %101 = math.tanh %100 : vector<2x32xf32>
    %cst_34 = arith.constant 1.000000e+00 : f32
    %102 = vector.broadcast %cst_34 : f32 to vector<2x32xf32>
    %103 = arith.subf %102, %96 : vector<2x32xf32>
    %104 = arith.mulf %103, %101 : vector<2x32xf32>
    %105 = arith.mulf %96, %13 : vector<2x32xf32>
    %106 = arith.addf %104, %105 : vector<2x32xf32>
    %107 = vector.extract_strided_slice %20 {offsets = [0, 384], sizes = [2, 96], strides = [1, 1]} : vector<2x512xf32> to vector<2x96xf32>
    %cst_35 = arith.constant dense<0.000000e+00> : vector<2x96xf32>
    %108 = tpu.matmul %13, %10, %cst_35 {dimension_numbers = #tpu.dot_dimension_numbers<[1], [0], [0], [1], [0, 0, 1, 1], [], []>} : vector<2x32xf32>, vector<32x96xf32>, vector<2x96xf32> -> vector<2x96xf32>
    %109 = vector.broadcast %12 : vector<1x96xf32> to vector<2x96xf32>
    %110 = arith.addf %108, %109 : vector<2x96xf32>
    %111 = vector.extract_strided_slice %107 {offsets = [0, 0], sizes = [2, 32], strides = [1, 1]} : vector<2x96xf32> to vector<2x32xf32>
    %112 = vector.extract_strided_slice %110 {offsets = [0, 0], sizes = [2, 32], strides = [1, 1]} : vector<2x96xf32> to vector<2x32xf32>
    %113 = arith.addf %111, %112 : vector<2x32xf32>
    %114 = arith.negf %113 : vector<2x32xf32>
    %115 = math.exp %114 : vector<2x32xf32>
    %cst_36 = arith.constant 1.000000e+00 : f32
    %116 = vector.broadcast %cst_36 : f32 to vector<2x32xf32>
    %117 = arith.addf %116, %115 : vector<2x32xf32>
    %118 = arith.divf %116, %117 : vector<2x32xf32>
    %119 = vector.extract_strided_slice %107 {offsets = [0, 32], sizes = [2, 32], strides = [1, 1]} : vector<2x96xf32> to vector<2x32xf32>
    %120 = vector.extract_strided_slice %110 {offsets = [0, 32], sizes = [2, 32], strides = [1, 1]} : vector<2x96xf32> to vector<2x32xf32>
    %121 = arith.addf %119, %120 : vector<2x32xf32>
    %122 = arith.negf %121 : vector<2x32xf32>
    %123 = math.exp %122 : vector<2x32xf32>
    %cst_37 = arith.constant 1.000000e+00 : f32
    %124 = vector.broadcast %cst_37 : f32 to vector<2x32xf32>
    %125 = arith.addf %124, %123 : vector<2x32xf32>
    %126 = arith.divf %124, %125 : vector<2x32xf32>
    %127 = vector.extract_strided_slice %107 {offsets = [0, 64], sizes = [2, 32], strides = [1, 1]} : vector<2x96xf32> to vector<2x32xf32>
    %128 = vector.extract_strided_slice %110 {offsets = [0, 64], sizes = [2, 32], strides = [1, 1]} : vector<2x96xf32> to vector<2x32xf32>
    %129 = arith.mulf %118, %128 : vector<2x32xf32>
    %130 = arith.addf %127, %129 : vector<2x32xf32>
    %131 = math.tanh %130 : vector<2x32xf32>
    %cst_38 = arith.constant 1.000000e+00 : f32
    %132 = vector.broadcast %cst_38 : f32 to vector<2x32xf32>
    %133 = arith.subf %132, %126 : vector<2x32xf32>
    %134 = arith.mulf %133, %131 : vector<2x32xf32>
    %135 = arith.mulf %126, %13 : vector<2x32xf32>
    %136 = arith.addf %134, %135 : vector<2x32xf32>
    %137 = arith.index_cast %c0_i32 : i32 to index
    %c0_39 = arith.constant 0 : index
    %c0_40 = arith.constant 0 : index
    %138 = vector.load %arg13[%137, %c0_39, %c0_40] : memref<8x2x32xf32, #tpu.memory_space<vmem>>, vector<1x2x32xf32>
    %139 = vector.shape_cast %138 : vector<1x2x32xf32> to vector<2x32xf32>
    %140 = vector.shape_cast %48 : vector<2x32xf32> to vector<1x2x32xf32>
    tpu.vector_store %arg13[%137, %c0_39, %c0_40], %140 {strides = array<i32>} : memref<8x2x32xf32, #tpu.memory_space<vmem>>, vector<1x2x32xf32>,
    %141 = arith.index_cast %14 : i32 to index
    %c0_41 = arith.constant 0 : index
    %c0_42 = arith.constant 0 : index
    %142 = vector.load %arg14[%141, %c0_41, %c0_42] : memref<8x2x32xf32, #tpu.memory_space<vmem>>, vector<1x2x32xf32>
    %143 = vector.shape_cast %142 : vector<1x2x32xf32> to vector<2x32xf32>
    %144 = vector.shape_cast %76 : vector<2x32xf32> to vector<1x2x32xf32>
    tpu.vector_store %arg14[%141, %c0_41, %c0_42], %144 {strides = array<i32>} : memref<8x2x32xf32, #tpu.memory_space<vmem>>, vector<1x2x32xf32>,
    %145 = arith.index_cast %c0_i32 : i32 to index
    %c0_43 = arith.constant 0 : index
    %c0_44 = arith.constant 0 : index
    %146 = vector.load %arg15[%145, %c0_43, %c0_44] : memref<8x2x32xf32, #tpu.memory_space<vmem>>, vector<1x2x32xf32>
    %147 = vector.shape_cast %146 : vector<1x2x32xf32> to vector<2x32xf32>
    %148 = vector.shape_cast %106 : vector<2x32xf32> to vector<1x2x32xf32>
    tpu.vector_store %arg15[%145, %c0_43, %c0_44], %148 {strides = array<i32>} : memref<8x2x32xf32, #tpu.memory_space<vmem>>, vector<1x2x32xf32>,
    %149 = arith.index_cast %14 : i32 to index
    %c0_45 = arith.constant 0 : index
    %c0_46 = arith.constant 0 : index
    %150 = vector.load %arg16[%149, %c0_45, %c0_46] : memref<8x2x32xf32, #tpu.memory_space<vmem>>, vector<1x2x32xf32>
    %151 = vector.shape_cast %150 : vector<1x2x32xf32> to vector<2x32xf32>
    %152 = vector.shape_cast %136 : vector<2x32xf32> to vector<1x2x32xf32>
    tpu.vector_store %arg16[%149, %c0_45, %c0_46], %152 {strides = array<i32>} : memref<8x2x32xf32, #tpu.memory_space<vmem>>, vector<1x2x32xf32>,
    %c1_i32 = arith.constant 1 : i32
    %c7_i32_47 = arith.constant 7 : i32
    %153 = arith.subi %c7_i32_47, %c1_i32 : i32
    %c2_i32_48 = arith.constant 2 : i32
    %154 = arith.muli %c1_i32, %c2_i32_48 : i32
    %155 = arith.index_cast %154 : i32 to index
    %c0_49 = arith.constant 0 : index
    %156 = vector.load %arg12[%155, %c0_49] : memref<16x512xf32, #tpu.memory_space<vmem>>, vector<2x512xf32>
    %c2_i32_50 = arith.constant 2 : i32
    %157 = arith.muli %153, %c2_i32_50 : i32
    %158 = arith.index_cast %157 : i32 to index
    %c0_51 = arith.constant 0 : index
    %159 = vector.load %arg12[%158, %c0_51] : memref<16x512xf32, #tpu.memory_space<vmem>>, vector<2x512xf32>
    %160 = vector.extract_strided_slice %156 {offsets = [0, 0], sizes = [2, 128], strides = [1, 1]} : vector<2x512xf32> to vector<2x128xf32>
    %cst_52 = arith.constant dense<0.000000e+00> : vector<2x128xf32>
    %161 = tpu.matmul %48, %7, %cst_52 {dimension_numbers = #tpu.dot_dimension_numbers<[1], [0], [0], [1], [0, 0, 1, 1], [], []>} : vector<2x32xf32>, vector<32x128xf32>, vector<2x128xf32> -> vector<2x128xf32>
    %162 = arith.addf %160, %161 : vector<2x128xf32>
    %163 = vector.extract_strided_slice %162 {offsets = [0, 0], sizes = [2, 32], strides = [1, 1]} : vector<2x128xf32> to vector<2x32xf32>
    %164 = arith.negf %163 : vector<2x32xf32>
    %165 = math.exp %164 : vector<2x32xf32>
    %cst_53 = arith.constant 1.000000e+00 : f32
    %166 = vector.broadcast %cst_53 : f32 to vector<2x32xf32>
    %167 = arith.addf %166, %165 : vector<2x32xf32>
    %168 = arith.divf %166, %167 : vector<2x32xf32>
    %169 = vector.extract_strided_slice %162 {offsets = [0, 32], sizes = [2, 32], strides = [1, 1]} : vector<2x128xf32> to vector<2x32xf32>
    %170 = arith.negf %169 : vector<2x32xf32>
    %171 = math.exp %170 : vector<2x32xf32>
    %cst_54 = arith.constant 1.000000e+00 : f32
    %172 = vector.broadcast %cst_54 : f32 to vector<2x32xf32>
    %173 = arith.addf %172, %171 : vector<2x32xf32>
    %174 = arith.divf %172, %173 : vector<2x32xf32>
    %175 = vector.extract_strided_slice %162 {offsets = [0, 64], sizes = [2, 32], strides = [1, 1]} : vector<2x128xf32> to vector<2x32xf32>
    %176 = math.tanh %175 : vector<2x32xf32>
    %177 = vector.extract_strided_slice %162 {offsets = [0, 96], sizes = [2, 32], strides = [1, 1]} : vector<2x128xf32> to vector<2x32xf32>
    %178 = arith.negf %177 : vector<2x32xf32>
    %179 = math.exp %178 : vector<2x32xf32>
    %cst_55 = arith.constant 1.000000e+00 : f32
    %180 = vector.broadcast %cst_55 : f32 to vector<2x32xf32>
    %181 = arith.addf %180, %179 : vector<2x32xf32>
    %182 = arith.divf %180, %181 : vector<2x32xf32>
    %183 = arith.mulf %174, %46 : vector<2x32xf32>
    %184 = arith.mulf %168, %176 : vector<2x32xf32>
    %185 = arith.addf %183, %184 : vector<2x32xf32>
    %186 = math.tanh %185 : vector<2x32xf32>
    %187 = arith.mulf %182, %186 : vector<2x32xf32>
    %188 = vector.extract_strided_slice %159 {offsets = [0, 128], sizes = [2, 128], strides = [1, 1]} : vector<2x512xf32> to vector<2x128xf32>
    %cst_56 = arith.constant dense<0.000000e+00> : vector<2x128xf32>
    %189 = tpu.matmul %76, %8, %cst_56 {dimension_numbers = #tpu.dot_dimension_numbers<[1], [0], [0], [1], [0, 0, 1, 1], [], []>} : vector<2x32xf32>, vector<32x128xf32>, vector<2x128xf32> -> vector<2x128xf32>
    %190 = arith.addf %188, %189 : vector<2x128xf32>
    %191 = vector.extract_strided_slice %190 {offsets = [0, 0], sizes = [2, 32], strides = [1, 1]} : vector<2x128xf32> to vector<2x32xf32>
    %192 = arith.negf %191 : vector<2x32xf32>
    %193 = math.exp %192 : vector<2x32xf32>
    %cst_57 = arith.constant 1.000000e+00 : f32
    %194 = vector.broadcast %cst_57 : f32 to vector<2x32xf32>
    %195 = arith.addf %194, %193 : vector<2x32xf32>
    %196 = arith.divf %194, %195 : vector<2x32xf32>
    %197 = vector.extract_strided_slice %190 {offsets = [0, 32], sizes = [2, 32], strides = [1, 1]} : vector<2x128xf32> to vector<2x32xf32>
    %198 = arith.negf %197 : vector<2x32xf32>
    %199 = math.exp %198 : vector<2x32xf32>
    %cst_58 = arith.constant 1.000000e+00 : f32
    %200 = vector.broadcast %cst_58 : f32 to vector<2x32xf32>
    %201 = arith.addf %200, %199 : vector<2x32xf32>
    %202 = arith.divf %200, %201 : vector<2x32xf32>
    %203 = vector.extract_strided_slice %190 {offsets = [0, 64], sizes = [2, 32], strides = [1, 1]} : vector<2x128xf32> to vector<2x32xf32>
    %204 = math.tanh %203 : vector<2x32xf32>
    %205 = vector.extract_strided_slice %190 {offsets = [0, 96], sizes = [2, 32], strides = [1, 1]} : vector<2x128xf32> to vector<2x32xf32>
    %206 = arith.negf %205 : vector<2x32xf32>
    %207 = math.exp %206 : vector<2x32xf32>
    %cst_59 = arith.constant 1.000000e+00 : f32
    %208 = vector.broadcast %cst_59 : f32 to vector<2x32xf32>
    %209 = arith.addf %208, %207 : vector<2x32xf32>
    %210 = arith.divf %208, %209 : vector<2x32xf32>
    %211 = arith.mulf %202, %74 : vector<2x32xf32>
    %212 = arith.mulf %196, %204 : vector<2x32xf32>
    %213 = arith.addf %211, %212 : vector<2x32xf32>
    %214 = math.tanh %213 : vector<2x32xf32>
    %215 = arith.mulf %210, %214 : vector<2x32xf32>
    %216 = vector.extract_strided_slice %156 {offsets = [0, 256], sizes = [2, 96], strides = [1, 1]} : vector<2x512xf32> to vector<2x96xf32>
    %cst_60 = arith.constant dense<0.000000e+00> : vector<2x96xf32>
    %217 = tpu.matmul %106, %9, %cst_60 {dimension_numbers = #tpu.dot_dimension_numbers<[1], [0], [0], [1], [0, 0, 1, 1], [], []>} : vector<2x32xf32>, vector<32x96xf32>, vector<2x96xf32> -> vector<2x96xf32>
    %218 = vector.broadcast %11 : vector<1x96xf32> to vector<2x96xf32>
    %219 = arith.addf %217, %218 : vector<2x96xf32>
    %220 = vector.extract_strided_slice %216 {offsets = [0, 0], sizes = [2, 32], strides = [1, 1]} : vector<2x96xf32> to vector<2x32xf32>
    %221 = vector.extract_strided_slice %219 {offsets = [0, 0], sizes = [2, 32], strides = [1, 1]} : vector<2x96xf32> to vector<2x32xf32>
    %222 = arith.addf %220, %221 : vector<2x32xf32>
    %223 = arith.negf %222 : vector<2x32xf32>
    %224 = math.exp %223 : vector<2x32xf32>
    %cst_61 = arith.constant 1.000000e+00 : f32
    %225 = vector.broadcast %cst_61 : f32 to vector<2x32xf32>
    %226 = arith.addf %225, %224 : vector<2x32xf32>
    %227 = arith.divf %225, %226 : vector<2x32xf32>
    %228 = vector.extract_strided_slice %216 {offsets = [0, 32], sizes = [2, 32], strides = [1, 1]} : vector<2x96xf32> to vector<2x32xf32>
    %229 = vector.extract_strided_slice %219 {offsets = [0, 32], sizes = [2, 32], strides = [1, 1]} : vector<2x96xf32> to vector<2x32xf32>
    %230 = arith.addf %228, %229 : vector<2x32xf32>
    %231 = arith.negf %230 : vector<2x32xf32>
    %232 = math.exp %231 : vector<2x32xf32>
    %cst_62 = arith.constant 1.000000e+00 : f32
    %233 = vector.broadcast %cst_62 : f32 to vector<2x32xf32>
    %234 = arith.addf %233, %232 : vector<2x32xf32>
    %235 = arith.divf %233, %234 : vector<2x32xf32>
    %236 = vector.extract_strided_slice %216 {offsets = [0, 64], sizes = [2, 32], strides = [1, 1]} : vector<2x96xf32> to vector<2x32xf32>
    %237 = vector.extract_strided_slice %219 {offsets = [0, 64], sizes = [2, 32], strides = [1, 1]} : vector<2x96xf32> to vector<2x32xf32>
    %238 = arith.mulf %227, %237 : vector<2x32xf32>
    %239 = arith.addf %236, %238 : vector<2x32xf32>
    %240 = math.tanh %239 : vector<2x32xf32>
    %cst_63 = arith.constant 1.000000e+00 : f32
    %241 = vector.broadcast %cst_63 : f32 to vector<2x32xf32>
    %242 = arith.subf %241, %235 : vector<2x32xf32>
    %243 = arith.mulf %242, %240 : vector<2x32xf32>
    %244 = arith.mulf %235, %106 : vector<2x32xf32>
    %245 = arith.addf %243, %244 : vector<2x32xf32>
    %246 = vector.extract_strided_slice %159 {offsets = [0, 384], sizes = [2, 96], strides = [1, 1]} : vector<2x512xf32> to vector<2x96xf32>
    %cst_64 = arith.constant dense<0.000000e+00> : vector<2x96xf32>
    %247 = tpu.matmul %136, %10, %cst_64 {dimension_numbers = #tpu.dot_dimension_numbers<[1], [0], [0], [1], [0, 0, 1, 1], [], []>} : vector<2x32xf32>, vector<32x96xf32>, vector<2x96xf32> -> vector<2x96xf32>
    %248 = vector.broadcast %12 : vector<1x96xf32> to vector<2x96xf32>
    %249 = arith.addf %247, %248 : vector<2x96xf32>
    %250 = vector.extract_strided_slice %246 {offsets = [0, 0], sizes = [2, 32], strides = [1, 1]} : vector<2x96xf32> to vector<2x32xf32>
    %251 = vector.extract_strided_slice %249 {offsets = [0, 0], sizes = [2, 32], strides = [1, 1]} : vector<2x96xf32> to vector<2x32xf32>
    %252 = arith.addf %250, %251 : vector<2x32xf32>
    %253 = arith.negf %252 : vector<2x32xf32>
    %254 = math.exp %253 : vector<2x32xf32>
    %cst_65 = arith.constant 1.000000e+00 : f32
    %255 = vector.broadcast %cst_65 : f32 to vector<2x32xf32>
    %256 = arith.addf %255, %254 : vector<2x32xf32>
    %257 = arith.divf %255, %256 : vector<2x32xf32>
    %258 = vector.extract_strided_slice %246 {offsets = [0, 32], sizes = [2, 32], strides = [1, 1]} : vector<2x96xf32> to vector<2x32xf32>
    %259 = vector.extract_strided_slice %249 {offsets = [0, 32], sizes = [2, 32], strides = [1, 1]} : vector<2x96xf32> to vector<2x32xf32>
    %260 = arith.addf %258, %259 : vector<2x32xf32>
    %261 = arith.negf %260 : vector<2x32xf32>
    %262 = math.exp %261 : vector<2x32xf32>
    %cst_66 = arith.constant 1.000000e+00 : f32
    %263 = vector.broadcast %cst_66 : f32 to vector<2x32xf32>
    %264 = arith.addf %263, %262 : vector<2x32xf32>
    %265 = arith.divf %263, %264 : vector<2x32xf32>
    %266 = vector.extract_strided_slice %246 {offsets = [0, 64], sizes = [2, 32], strides = [1, 1]} : vector<2x96xf32> to vector<2x32xf32>
    %267 = vector.extract_strided_slice %249 {offsets = [0, 64], sizes = [2, 32], strides = [1, 1]} : vector<2x96xf32> to vector<2x32xf32>
    %268 = arith.mulf %257, %267 : vector<2x32xf32>
    %269 = arith.addf %266, %268 : vector<2x32xf32>
    %270 = math.tanh %269 : vector<2x32xf32>
    %cst_67 = arith.constant 1.000000e+00 : f32
    %271 = vector.broadcast %cst_67 : f32 to vector<2x32xf32>
    %272 = arith.subf %271, %265 : vector<2x32xf32>
    %273 = arith.mulf %272, %270 : vector<2x32xf32>
    %274 = arith.mulf %265, %136 : vector<2x32xf32>
    %275 = arith.addf %273, %274 : vector<2x32xf32>
    %276 = arith.index_cast %c1_i32 : i32 to index
    %c0_68 = arith.constant 0 : index
    %c0_69 = arith.constant 0 : index
    %277 = vector.load %arg13[%276, %c0_68, %c0_69] : memref<8x2x32xf32, #tpu.memory_space<vmem>>, vector<1x2x32xf32>
    %278 = vector.shape_cast %277 : vector<1x2x32xf32> to vector<2x32xf32>
    %279 = vector.shape_cast %187 : vector<2x32xf32> to vector<1x2x32xf32>
    tpu.vector_store %arg13[%276, %c0_68, %c0_69], %279 {strides = array<i32>} : memref<8x2x32xf32, #tpu.memory_space<vmem>>, vector<1x2x32xf32>,
    %280 = arith.index_cast %153 : i32 to index
    %c0_70 = arith.constant 0 : index
    %c0_71 = arith.constant 0 : index
    %281 = vector.load %arg14[%280, %c0_70, %c0_71] : memref<8x2x32xf32, #tpu.memory_space<vmem>>, vector<1x2x32xf32>
    %282 = vector.shape_cast %281 : vector<1x2x32xf32> to vector<2x32xf32>
    %283 = vector.shape_cast %215 : vector<2x32xf32> to vector<1x2x32xf32>
    tpu.vector_store %arg14[%280, %c0_70, %c0_71], %283 {strides = array<i32>} : memref<8x2x32xf32, #tpu.memory_space<vmem>>, vector<1x2x32xf32>,
    %284 = arith.index_cast %c1_i32 : i32 to index
    %c0_72 = arith.constant 0 : index
    %c0_73 = arith.constant 0 : index
    %285 = vector.load %arg15[%284, %c0_72, %c0_73] : memref<8x2x32xf32, #tpu.memory_space<vmem>>, vector<1x2x32xf32>
    %286 = vector.shape_cast %285 : vector<1x2x32xf32> to vector<2x32xf32>
    %287 = vector.shape_cast %245 : vector<2x32xf32> to vector<1x2x32xf32>
    tpu.vector_store %arg15[%284, %c0_72, %c0_73], %287 {strides = array<i32>} : memref<8x2x32xf32, #tpu.memory_space<vmem>>, vector<1x2x32xf32>,
    %288 = arith.index_cast %153 : i32 to index
    %c0_74 = arith.constant 0 : index
    %c0_75 = arith.constant 0 : index
    %289 = vector.load %arg16[%288, %c0_74, %c0_75] : memref<8x2x32xf32, #tpu.memory_space<vmem>>, vector<1x2x32xf32>
    %290 = vector.shape_cast %289 : vector<1x2x32xf32> to vector<2x32xf32>
    %291 = vector.shape_cast %275 : vector<2x32xf32> to vector<1x2x32xf32>
    tpu.vector_store %arg16[%288, %c0_74, %c0_75], %291 {strides = array<i32>} : memref<8x2x32xf32, #tpu.memory_space<vmem>>, vector<1x2x32xf32>,
    %c2_i32_76 = arith.constant 2 : i32
    %c7_i32_77 = arith.constant 7 : i32
    %292 = arith.subi %c7_i32_77, %c2_i32_76 : i32
    %c2_i32_78 = arith.constant 2 : i32
    %293 = arith.muli %c2_i32_76, %c2_i32_78 : i32
    %294 = arith.index_cast %293 : i32 to index
    %c0_79 = arith.constant 0 : index
    %295 = vector.load %arg12[%294, %c0_79] : memref<16x512xf32, #tpu.memory_space<vmem>>, vector<2x512xf32>
    %c2_i32_80 = arith.constant 2 : i32
    %296 = arith.muli %292, %c2_i32_80 : i32
    %297 = arith.index_cast %296 : i32 to index
    %c0_81 = arith.constant 0 : index
    %298 = vector.load %arg12[%297, %c0_81] : memref<16x512xf32, #tpu.memory_space<vmem>>, vector<2x512xf32>
    %299 = vector.extract_strided_slice %295 {offsets = [0, 0], sizes = [2, 128], strides = [1, 1]} : vector<2x512xf32> to vector<2x128xf32>
    %cst_82 = arith.constant dense<0.000000e+00> : vector<2x128xf32>
    %300 = tpu.matmul %187, %7, %cst_82 {dimension_numbers = #tpu.dot_dimension_numbers<[1], [0], [0], [1], [0, 0, 1, 1], [], []>} : vector<2x32xf32>, vector<32x128xf32>, vector<2x128xf32> -> vector<2x128xf32>
    %301 = arith.addf %299, %300 : vector<2x128xf32>
    %302 = vector.extract_strided_slice %301 {offsets = [0, 0], sizes = [2, 32], strides = [1, 1]} : vector<2x128xf32> to vector<2x32xf32>
    %303 = arith.negf %302 : vector<2x32xf32>
    %304 = math.exp %303 : vector<2x32xf32>
    %cst_83 = arith.constant 1.000000e+00 : f32
    %305 = vector.broadcast %cst_83 : f32 to vector<2x32xf32>
    %306 = arith.addf %305, %304 : vector<2x32xf32>
    %307 = arith.divf %305, %306 : vector<2x32xf32>
    %308 = vector.extract_strided_slice %301 {offsets = [0, 32], sizes = [2, 32], strides = [1, 1]} : vector<2x128xf32> to vector<2x32xf32>
    %309 = arith.negf %308 : vector<2x32xf32>
    %310 = math.exp %309 : vector<2x32xf32>
    %cst_84 = arith.constant 1.000000e+00 : f32
    %311 = vector.broadcast %cst_84 : f32 to vector<2x32xf32>
    %312 = arith.addf %311, %310 : vector<2x32xf32>
    %313 = arith.divf %311, %312 : vector<2x32xf32>
    %314 = vector.extract_strided_slice %301 {offsets = [0, 64], sizes = [2, 32], strides = [1, 1]} : vector<2x128xf32> to vector<2x32xf32>
    %315 = math.tanh %314 : vector<2x32xf32>
    %316 = vector.extract_strided_slice %301 {offsets = [0, 96], sizes = [2, 32], strides = [1, 1]} : vector<2x128xf32> to vector<2x32xf32>
    %317 = arith.negf %316 : vector<2x32xf32>
    %318 = math.exp %317 : vector<2x32xf32>
    %cst_85 = arith.constant 1.000000e+00 : f32
    %319 = vector.broadcast %cst_85 : f32 to vector<2x32xf32>
    %320 = arith.addf %319, %318 : vector<2x32xf32>
    %321 = arith.divf %319, %320 : vector<2x32xf32>
    %322 = arith.mulf %313, %185 : vector<2x32xf32>
    %323 = arith.mulf %307, %315 : vector<2x32xf32>
    %324 = arith.addf %322, %323 : vector<2x32xf32>
    %325 = math.tanh %324 : vector<2x32xf32>
    %326 = arith.mulf %321, %325 : vector<2x32xf32>
    %327 = vector.extract_strided_slice %298 {offsets = [0, 128], sizes = [2, 128], strides = [1, 1]} : vector<2x512xf32> to vector<2x128xf32>
    %cst_86 = arith.constant dense<0.000000e+00> : vector<2x128xf32>
    %328 = tpu.matmul %215, %8, %cst_86 {dimension_numbers = #tpu.dot_dimension_numbers<[1], [0], [0], [1], [0, 0, 1, 1], [], []>} : vector<2x32xf32>, vector<32x128xf32>, vector<2x128xf32> -> vector<2x128xf32>
    %329 = arith.addf %327, %328 : vector<2x128xf32>
    %330 = vector.extract_strided_slice %329 {offsets = [0, 0], sizes = [2, 32], strides = [1, 1]} : vector<2x128xf32> to vector<2x32xf32>
    %331 = arith.negf %330 : vector<2x32xf32>
    %332 = math.exp %331 : vector<2x32xf32>
    %cst_87 = arith.constant 1.000000e+00 : f32
    %333 = vector.broadcast %cst_87 : f32 to vector<2x32xf32>
    %334 = arith.addf %333, %332 : vector<2x32xf32>
    %335 = arith.divf %333, %334 : vector<2x32xf32>
    %336 = vector.extract_strided_slice %329 {offsets = [0, 32], sizes = [2, 32], strides = [1, 1]} : vector<2x128xf32> to vector<2x32xf32>
    %337 = arith.negf %336 : vector<2x32xf32>
    %338 = math.exp %337 : vector<2x32xf32>
    %cst_88 = arith.constant 1.000000e+00 : f32
    %339 = vector.broadcast %cst_88 : f32 to vector<2x32xf32>
    %340 = arith.addf %339, %338 : vector<2x32xf32>
    %341 = arith.divf %339, %340 : vector<2x32xf32>
    %342 = vector.extract_strided_slice %329 {offsets = [0, 64], sizes = [2, 32], strides = [1, 1]} : vector<2x128xf32> to vector<2x32xf32>
    %343 = math.tanh %342 : vector<2x32xf32>
    %344 = vector.extract_strided_slice %329 {offsets = [0, 96], sizes = [2, 32], strides = [1, 1]} : vector<2x128xf32> to vector<2x32xf32>
    %345 = arith.negf %344 : vector<2x32xf32>
    %346 = math.exp %345 : vector<2x32xf32>
    %cst_89 = arith.constant 1.000000e+00 : f32
    %347 = vector.broadcast %cst_89 : f32 to vector<2x32xf32>
    %348 = arith.addf %347, %346 : vector<2x32xf32>
    %349 = arith.divf %347, %348 : vector<2x32xf32>
    %350 = arith.mulf %341, %213 : vector<2x32xf32>
    %351 = arith.mulf %335, %343 : vector<2x32xf32>
    %352 = arith.addf %350, %351 : vector<2x32xf32>
    %353 = math.tanh %352 : vector<2x32xf32>
    %354 = arith.mulf %349, %353 : vector<2x32xf32>
    %355 = vector.extract_strided_slice %295 {offsets = [0, 256], sizes = [2, 96], strides = [1, 1]} : vector<2x512xf32> to vector<2x96xf32>
    %cst_90 = arith.constant dense<0.000000e+00> : vector<2x96xf32>
    %356 = tpu.matmul %245, %9, %cst_90 {dimension_numbers = #tpu.dot_dimension_numbers<[1], [0], [0], [1], [0, 0, 1, 1], [], []>} : vector<2x32xf32>, vector<32x96xf32>, vector<2x96xf32> -> vector<2x96xf32>
    %357 = vector.broadcast %11 : vector<1x96xf32> to vector<2x96xf32>
    %358 = arith.addf %356, %357 : vector<2x96xf32>
    %359 = vector.extract_strided_slice %355 {offsets = [0, 0], sizes = [2, 32], strides = [1, 1]} : vector<2x96xf32> to vector<2x32xf32>
    %360 = vector.extract_strided_slice %358 {offsets = [0, 0], sizes = [2, 32], strides = [1, 1]} : vector<2x96xf32> to vector<2x32xf32>
    %361 = arith.addf %359, %360 : vector<2x32xf32>
    %362 = arith.negf %361 : vector<2x32xf32>
    %363 = math.exp %362 : vector<2x32xf32>
    %cst_91 = arith.constant 1.000000e+00 : f32
    %364 = vector.broadcast %cst_91 : f32 to vector<2x32xf32>
    %365 = arith.addf %364, %363 : vector<2x32xf32>
    %366 = arith.divf %364, %365 : vector<2x32xf32>
    %367 = vector.extract_strided_slice %355 {offsets = [0, 32], sizes = [2, 32], strides = [1, 1]} : vector<2x96xf32> to vector<2x32xf32>
    %368 = vector.extract_strided_slice %358 {offsets = [0, 32], sizes = [2, 32], strides = [1, 1]} : vector<2x96xf32> to vector<2x32xf32>
    %369 = arith.addf %367, %368 : vector<2x32xf32>
    %370 = arith.negf %369 : vector<2x32xf32>
    %371 = math.exp %370 : vector<2x32xf32>
    %cst_92 = arith.constant 1.000000e+00 : f32
    %372 = vector.broadcast %cst_92 : f32 to vector<2x32xf32>
    %373 = arith.addf %372, %371 : vector<2x32xf32>
    %374 = arith.divf %372, %373 : vector<2x32xf32>
    %375 = vector.extract_strided_slice %355 {offsets = [0, 64], sizes = [2, 32], strides = [1, 1]} : vector<2x96xf32> to vector<2x32xf32>
    %376 = vector.extract_strided_slice %358 {offsets = [0, 64], sizes = [2, 32], strides = [1, 1]} : vector<2x96xf32> to vector<2x32xf32>
    %377 = arith.mulf %366, %376 : vector<2x32xf32>
    %378 = arith.addf %375, %377 : vector<2x32xf32>
    %379 = math.tanh %378 : vector<2x32xf32>
    %cst_93 = arith.constant 1.000000e+00 : f32
    %380 = vector.broadcast %cst_93 : f32 to vector<2x32xf32>
    %381 = arith.subf %380, %374 : vector<2x32xf32>
    %382 = arith.mulf %381, %379 : vector<2x32xf32>
    %383 = arith.mulf %374, %245 : vector<2x32xf32>
    %384 = arith.addf %382, %383 : vector<2x32xf32>
    %385 = vector.extract_strided_slice %298 {offsets = [0, 384], sizes = [2, 96], strides = [1, 1]} : vector<2x512xf32> to vector<2x96xf32>
    %cst_94 = arith.constant dense<0.000000e+00> : vector<2x96xf32>
    %386 = tpu.matmul %275, %10, %cst_94 {dimension_numbers = #tpu.dot_dimension_numbers<[1], [0], [0], [1], [0, 0, 1, 1], [], []>} : vector<2x32xf32>, vector<32x96xf32>, vector<2x96xf32> -> vector<2x96xf32>
    %387 = vector.broadcast %12 : vector<1x96xf32> to vector<2x96xf32>
    %388 = arith.addf %386, %387 : vector<2x96xf32>
    %389 = vector.extract_strided_slice %385 {offsets = [0, 0], sizes = [2, 32], strides = [1, 1]} : vector<2x96xf32> to vector<2x32xf32>
    %390 = vector.extract_strided_slice %388 {offsets = [0, 0], sizes = [2, 32], strides = [1, 1]} : vector<2x96xf32> to vector<2x32xf32>
    %391 = arith.addf %389, %390 : vector<2x32xf32>
    %392 = arith.negf %391 : vector<2x32xf32>
    %393 = math.exp %392 : vector<2x32xf32>
    %cst_95 = arith.constant 1.000000e+00 : f32
    %394 = vector.broadcast %cst_95 : f32 to vector<2x32xf32>
    %395 = arith.addf %394, %393 : vector<2x32xf32>
    %396 = arith.divf %394, %395 : vector<2x32xf32>
    %397 = vector.extract_strided_slice %385 {offsets = [0, 32], sizes = [2, 32], strides = [1, 1]} : vector<2x96xf32> to vector<2x32xf32>
    %398 = vector.extract_strided_slice %388 {offsets = [0, 32], sizes = [2, 32], strides = [1, 1]} : vector<2x96xf32> to vector<2x32xf32>
    %399 = arith.addf %397, %398 : vector<2x32xf32>
    %400 = arith.negf %399 : vector<2x32xf32>
    %401 = math.exp %400 : vector<2x32xf32>
    %cst_96 = arith.constant 1.000000e+00 : f32
    %402 = vector.broadcast %cst_96 : f32 to vector<2x32xf32>
    %403 = arith.addf %402, %401 : vector<2x32xf32>
    %404 = arith.divf %402, %403 : vector<2x32xf32>
    %405 = vector.extract_strided_slice %385 {offsets = [0, 64], sizes = [2, 32], strides = [1, 1]} : vector<2x96xf32> to vector<2x32xf32>
    %406 = vector.extract_strided_slice %388 {offsets = [0, 64], sizes = [2, 32], strides = [1, 1]} : vector<2x96xf32> to vector<2x32xf32>
    %407 = arith.mulf %396, %406 : vector<2x32xf32>
    %408 = arith.addf %405, %407 : vector<2x32xf32>
    %409 = math.tanh %408 : vector<2x32xf32>
    %cst_97 = arith.constant 1.000000e+00 : f32
    %410 = vector.broadcast %cst_97 : f32 to vector<2x32xf32>
    %411 = arith.subf %410, %404 : vector<2x32xf32>
    %412 = arith.mulf %411, %409 : vector<2x32xf32>
    %413 = arith.mulf %404, %275 : vector<2x32xf32>
    %414 = arith.addf %412, %413 : vector<2x32xf32>
    %415 = arith.index_cast %c2_i32_76 : i32 to index
    %c0_98 = arith.constant 0 : index
    %c0_99 = arith.constant 0 : index
    %416 = vector.load %arg13[%415, %c0_98, %c0_99] : memref<8x2x32xf32, #tpu.memory_space<vmem>>, vector<1x2x32xf32>
    %417 = vector.shape_cast %416 : vector<1x2x32xf32> to vector<2x32xf32>
    %418 = vector.shape_cast %326 : vector<2x32xf32> to vector<1x2x32xf32>
    tpu.vector_store %arg13[%415, %c0_98, %c0_99], %418 {strides = array<i32>} : memref<8x2x32xf32, #tpu.memory_space<vmem>>, vector<1x2x32xf32>,
    %419 = arith.index_cast %292 : i32 to index
    %c0_100 = arith.constant 0 : index
    %c0_101 = arith.constant 0 : index
    %420 = vector.load %arg14[%419, %c0_100, %c0_101] : memref<8x2x32xf32, #tpu.memory_space<vmem>>, vector<1x2x32xf32>
    %421 = vector.shape_cast %420 : vector<1x2x32xf32> to vector<2x32xf32>
    %422 = vector.shape_cast %354 : vector<2x32xf32> to vector<1x2x32xf32>
    tpu.vector_store %arg14[%419, %c0_100, %c0_101], %422 {strides = array<i32>} : memref<8x2x32xf32, #tpu.memory_space<vmem>>, vector<1x2x32xf32>,
    %423 = arith.index_cast %c2_i32_76 : i32 to index
    %c0_102 = arith.constant 0 : index
    %c0_103 = arith.constant 0 : index
    %424 = vector.load %arg15[%423, %c0_102, %c0_103] : memref<8x2x32xf32, #tpu.memory_space<vmem>>, vector<1x2x32xf32>
    %425 = vector.shape_cast %424 : vector<1x2x32xf32> to vector<2x32xf32>
    %426 = vector.shape_cast %384 : vector<2x32xf32> to vector<1x2x32xf32>
    tpu.vector_store %arg15[%423, %c0_102, %c0_103], %426 {strides = array<i32>} : memref<8x2x32xf32, #tpu.memory_space<vmem>>, vector<1x2x32xf32>,
    %427 = arith.index_cast %292 : i32 to index
    %c0_104 = arith.constant 0 : index
    %c0_105 = arith.constant 0 : index
    %428 = vector.load %arg16[%427, %c0_104, %c0_105] : memref<8x2x32xf32, #tpu.memory_space<vmem>>, vector<1x2x32xf32>
    %429 = vector.shape_cast %428 : vector<1x2x32xf32> to vector<2x32xf32>
    %430 = vector.shape_cast %414 : vector<2x32xf32> to vector<1x2x32xf32>
    tpu.vector_store %arg16[%427, %c0_104, %c0_105], %430 {strides = array<i32>} : memref<8x2x32xf32, #tpu.memory_space<vmem>>, vector<1x2x32xf32>,
    %c3_i32 = arith.constant 3 : i32
    %c7_i32_106 = arith.constant 7 : i32
    %431 = arith.subi %c7_i32_106, %c3_i32 : i32
    %c2_i32_107 = arith.constant 2 : i32
    %432 = arith.muli %c3_i32, %c2_i32_107 : i32
    %433 = arith.index_cast %432 : i32 to index
    %c0_108 = arith.constant 0 : index
    %434 = vector.load %arg12[%433, %c0_108] : memref<16x512xf32, #tpu.memory_space<vmem>>, vector<2x512xf32>
    %c2_i32_109 = arith.constant 2 : i32
    %435 = arith.muli %431, %c2_i32_109 : i32
    %436 = arith.index_cast %435 : i32 to index
    %c0_110 = arith.constant 0 : index
    %437 = vector.load %arg12[%436, %c0_110] : memref<16x512xf32, #tpu.memory_space<vmem>>, vector<2x512xf32>
    %438 = vector.extract_strided_slice %434 {offsets = [0, 0], sizes = [2, 128], strides = [1, 1]} : vector<2x512xf32> to vector<2x128xf32>
    %cst_111 = arith.constant dense<0.000000e+00> : vector<2x128xf32>
    %439 = tpu.matmul %326, %7, %cst_111 {dimension_numbers = #tpu.dot_dimension_numbers<[1], [0], [0], [1], [0, 0, 1, 1], [], []>} : vector<2x32xf32>, vector<32x128xf32>, vector<2x128xf32> -> vector<2x128xf32>
    %440 = arith.addf %438, %439 : vector<2x128xf32>
    %441 = vector.extract_strided_slice %440 {offsets = [0, 0], sizes = [2, 32], strides = [1, 1]} : vector<2x128xf32> to vector<2x32xf32>
    %442 = arith.negf %441 : vector<2x32xf32>
    %443 = math.exp %442 : vector<2x32xf32>
    %cst_112 = arith.constant 1.000000e+00 : f32
    %444 = vector.broadcast %cst_112 : f32 to vector<2x32xf32>
    %445 = arith.addf %444, %443 : vector<2x32xf32>
    %446 = arith.divf %444, %445 : vector<2x32xf32>
    %447 = vector.extract_strided_slice %440 {offsets = [0, 32], sizes = [2, 32], strides = [1, 1]} : vector<2x128xf32> to vector<2x32xf32>
    %448 = arith.negf %447 : vector<2x32xf32>
    %449 = math.exp %448 : vector<2x32xf32>
    %cst_113 = arith.constant 1.000000e+00 : f32
    %450 = vector.broadcast %cst_113 : f32 to vector<2x32xf32>
    %451 = arith.addf %450, %449 : vector<2x32xf32>
    %452 = arith.divf %450, %451 : vector<2x32xf32>
    %453 = vector.extract_strided_slice %440 {offsets = [0, 64], sizes = [2, 32], strides = [1, 1]} : vector<2x128xf32> to vector<2x32xf32>
    %454 = math.tanh %453 : vector<2x32xf32>
    %455 = vector.extract_strided_slice %440 {offsets = [0, 96], sizes = [2, 32], strides = [1, 1]} : vector<2x128xf32> to vector<2x32xf32>
    %456 = arith.negf %455 : vector<2x32xf32>
    %457 = math.exp %456 : vector<2x32xf32>
    %cst_114 = arith.constant 1.000000e+00 : f32
    %458 = vector.broadcast %cst_114 : f32 to vector<2x32xf32>
    %459 = arith.addf %458, %457 : vector<2x32xf32>
    %460 = arith.divf %458, %459 : vector<2x32xf32>
    %461 = arith.mulf %452, %324 : vector<2x32xf32>
    %462 = arith.mulf %446, %454 : vector<2x32xf32>
    %463 = arith.addf %461, %462 : vector<2x32xf32>
    %464 = math.tanh %463 : vector<2x32xf32>
    %465 = arith.mulf %460, %464 : vector<2x32xf32>
    %466 = vector.extract_strided_slice %437 {offsets = [0, 128], sizes = [2, 128], strides = [1, 1]} : vector<2x512xf32> to vector<2x128xf32>
    %cst_115 = arith.constant dense<0.000000e+00> : vector<2x128xf32>
    %467 = tpu.matmul %354, %8, %cst_115 {dimension_numbers = #tpu.dot_dimension_numbers<[1], [0], [0], [1], [0, 0, 1, 1], [], []>} : vector<2x32xf32>, vector<32x128xf32>, vector<2x128xf32> -> vector<2x128xf32>
    %468 = arith.addf %466, %467 : vector<2x128xf32>
    %469 = vector.extract_strided_slice %468 {offsets = [0, 0], sizes = [2, 32], strides = [1, 1]} : vector<2x128xf32> to vector<2x32xf32>
    %470 = arith.negf %469 : vector<2x32xf32>
    %471 = math.exp %470 : vector<2x32xf32>
    %cst_116 = arith.constant 1.000000e+00 : f32
    %472 = vector.broadcast %cst_116 : f32 to vector<2x32xf32>
    %473 = arith.addf %472, %471 : vector<2x32xf32>
    %474 = arith.divf %472, %473 : vector<2x32xf32>
    %475 = vector.extract_strided_slice %468 {offsets = [0, 32], sizes = [2, 32], strides = [1, 1]} : vector<2x128xf32> to vector<2x32xf32>
    %476 = arith.negf %475 : vector<2x32xf32>
    %477 = math.exp %476 : vector<2x32xf32>
    %cst_117 = arith.constant 1.000000e+00 : f32
    %478 = vector.broadcast %cst_117 : f32 to vector<2x32xf32>
    %479 = arith.addf %478, %477 : vector<2x32xf32>
    %480 = arith.divf %478, %479 : vector<2x32xf32>
    %481 = vector.extract_strided_slice %468 {offsets = [0, 64], sizes = [2, 32], strides = [1, 1]} : vector<2x128xf32> to vector<2x32xf32>
    %482 = math.tanh %481 : vector<2x32xf32>
    %483 = vector.extract_strided_slice %468 {offsets = [0, 96], sizes = [2, 32], strides = [1, 1]} : vector<2x128xf32> to vector<2x32xf32>
    %484 = arith.negf %483 : vector<2x32xf32>
    %485 = math.exp %484 : vector<2x32xf32>
    %cst_118 = arith.constant 1.000000e+00 : f32
    %486 = vector.broadcast %cst_118 : f32 to vector<2x32xf32>
    %487 = arith.addf %486, %485 : vector<2x32xf32>
    %488 = arith.divf %486, %487 : vector<2x32xf32>
    %489 = arith.mulf %480, %352 : vector<2x32xf32>
    %490 = arith.mulf %474, %482 : vector<2x32xf32>
    %491 = arith.addf %489, %490 : vector<2x32xf32>
    %492 = math.tanh %491 : vector<2x32xf32>
    %493 = arith.mulf %488, %492 : vector<2x32xf32>
    %494 = vector.extract_strided_slice %434 {offsets = [0, 256], sizes = [2, 96], strides = [1, 1]} : vector<2x512xf32> to vector<2x96xf32>
    %cst_119 = arith.constant dense<0.000000e+00> : vector<2x96xf32>
    %495 = tpu.matmul %384, %9, %cst_119 {dimension_numbers = #tpu.dot_dimension_numbers<[1], [0], [0], [1], [0, 0, 1, 1], [], []>} : vector<2x32xf32>, vector<32x96xf32>, vector<2x96xf32> -> vector<2x96xf32>
    %496 = vector.broadcast %11 : vector<1x96xf32> to vector<2x96xf32>
    %497 = arith.addf %495, %496 : vector<2x96xf32>
    %498 = vector.extract_strided_slice %494 {offsets = [0, 0], sizes = [2, 32], strides = [1, 1]} : vector<2x96xf32> to vector<2x32xf32>
    %499 = vector.extract_strided_slice %497 {offsets = [0, 0], sizes = [2, 32], strides = [1, 1]} : vector<2x96xf32> to vector<2x32xf32>
    %500 = arith.addf %498, %499 : vector<2x32xf32>
    %501 = arith.negf %500 : vector<2x32xf32>
    %502 = math.exp %501 : vector<2x32xf32>
    %cst_120 = arith.constant 1.000000e+00 : f32
    %503 = vector.broadcast %cst_120 : f32 to vector<2x32xf32>
    %504 = arith.addf %503, %502 : vector<2x32xf32>
    %505 = arith.divf %503, %504 : vector<2x32xf32>
    %506 = vector.extract_strided_slice %494 {offsets = [0, 32], sizes = [2, 32], strides = [1, 1]} : vector<2x96xf32> to vector<2x32xf32>
    %507 = vector.extract_strided_slice %497 {offsets = [0, 32], sizes = [2, 32], strides = [1, 1]} : vector<2x96xf32> to vector<2x32xf32>
    %508 = arith.addf %506, %507 : vector<2x32xf32>
    %509 = arith.negf %508 : vector<2x32xf32>
    %510 = math.exp %509 : vector<2x32xf32>
    %cst_121 = arith.constant 1.000000e+00 : f32
    %511 = vector.broadcast %cst_121 : f32 to vector<2x32xf32>
    %512 = arith.addf %511, %510 : vector<2x32xf32>
    %513 = arith.divf %511, %512 : vector<2x32xf32>
    %514 = vector.extract_strided_slice %494 {offsets = [0, 64], sizes = [2, 32], strides = [1, 1]} : vector<2x96xf32> to vector<2x32xf32>
    %515 = vector.extract_strided_slice %497 {offsets = [0, 64], sizes = [2, 32], strides = [1, 1]} : vector<2x96xf32> to vector<2x32xf32>
    %516 = arith.mulf %505, %515 : vector<2x32xf32>
    %517 = arith.addf %514, %516 : vector<2x32xf32>
    %518 = math.tanh %517 : vector<2x32xf32>
    %cst_122 = arith.constant 1.000000e+00 : f32
    %519 = vector.broadcast %cst_122 : f32 to vector<2x32xf32>
    %520 = arith.subf %519, %513 : vector<2x32xf32>
    %521 = arith.mulf %520, %518 : vector<2x32xf32>
    %522 = arith.mulf %513, %384 : vector<2x32xf32>
    %523 = arith.addf %521, %522 : vector<2x32xf32>
    %524 = vector.extract_strided_slice %437 {offsets = [0, 384], sizes = [2, 96], strides = [1, 1]} : vector<2x512xf32> to vector<2x96xf32>
    %cst_123 = arith.constant dense<0.000000e+00> : vector<2x96xf32>
    %525 = tpu.matmul %414, %10, %cst_123 {dimension_numbers = #tpu.dot_dimension_numbers<[1], [0], [0], [1], [0, 0, 1, 1], [], []>} : vector<2x32xf32>, vector<32x96xf32>, vector<2x96xf32> -> vector<2x96xf32>
    %526 = vector.broadcast %12 : vector<1x96xf32> to vector<2x96xf32>
    %527 = arith.addf %525, %526 : vector<2x96xf32>
    %528 = vector.extract_strided_slice %524 {offsets = [0, 0], sizes = [2, 32], strides = [1, 1]} : vector<2x96xf32> to vector<2x32xf32>
    %529 = vector.extract_strided_slice %527 {offsets = [0, 0], sizes = [2, 32], strides = [1, 1]} : vector<2x96xf32> to vector<2x32xf32>
    %530 = arith.addf %528, %529 : vector<2x32xf32>
    %531 = arith.negf %530 : vector<2x32xf32>
    %532 = math.exp %531 : vector<2x32xf32>
    %cst_124 = arith.constant 1.000000e+00 : f32
    %533 = vector.broadcast %cst_124 : f32 to vector<2x32xf32>
    %534 = arith.addf %533, %532 : vector<2x32xf32>
    %535 = arith.divf %533, %534 : vector<2x32xf32>
    %536 = vector.extract_strided_slice %524 {offsets = [0, 32], sizes = [2, 32], strides = [1, 1]} : vector<2x96xf32> to vector<2x32xf32>
    %537 = vector.extract_strided_slice %527 {offsets = [0, 32], sizes = [2, 32], strides = [1, 1]} : vector<2x96xf32> to vector<2x32xf32>
    %538 = arith.addf %536, %537 : vector<2x32xf32>
    %539 = arith.negf %538 : vector<2x32xf32>
    %540 = math.exp %539 : vector<2x32xf32>
    %cst_125 = arith.constant 1.000000e+00 : f32
    %541 = vector.broadcast %cst_125 : f32 to vector<2x32xf32>
    %542 = arith.addf %541, %540 : vector<2x32xf32>
    %543 = arith.divf %541, %542 : vector<2x32xf32>
    %544 = vector.extract_strided_slice %524 {offsets = [0, 64], sizes = [2, 32], strides = [1, 1]} : vector<2x96xf32> to vector<2x32xf32>
    %545 = vector.extract_strided_slice %527 {offsets = [0, 64], sizes = [2, 32], strides = [1, 1]} : vector<2x96xf32> to vector<2x32xf32>
    %546 = arith.mulf %535, %545 : vector<2x32xf32>
    %547 = arith.addf %544, %546 : vector<2x32xf32>
    %548 = math.tanh %547 : vector<2x32xf32>
    %cst_126 = arith.constant 1.000000e+00 : f32
    %549 = vector.broadcast %cst_126 : f32 to vector<2x32xf32>
    %550 = arith.subf %549, %543 : vector<2x32xf32>
    %551 = arith.mulf %550, %548 : vector<2x32xf32>
    %552 = arith.mulf %543, %414 : vector<2x32xf32>
    %553 = arith.addf %551, %552 : vector<2x32xf32>
    %554 = arith.index_cast %c3_i32 : i32 to index
    %c0_127 = arith.constant 0 : index
    %c0_128 = arith.constant 0 : index
    %555 = vector.load %arg13[%554, %c0_127, %c0_128] : memref<8x2x32xf32, #tpu.memory_space<vmem>>, vector<1x2x32xf32>
    %556 = vector.shape_cast %555 : vector<1x2x32xf32> to vector<2x32xf32>
    %557 = vector.shape_cast %465 : vector<2x32xf32> to vector<1x2x32xf32>
    tpu.vector_store %arg13[%554, %c0_127, %c0_128], %557 {strides = array<i32>} : memref<8x2x32xf32, #tpu.memory_space<vmem>>, vector<1x2x32xf32>,
    %558 = arith.index_cast %431 : i32 to index
    %c0_129 = arith.constant 0 : index
    %c0_130 = arith.constant 0 : index
    %559 = vector.load %arg14[%558, %c0_129, %c0_130] : memref<8x2x32xf32, #tpu.memory_space<vmem>>, vector<1x2x32xf32>
    %560 = vector.shape_cast %559 : vector<1x2x32xf32> to vector<2x32xf32>
    %561 = vector.shape_cast %493 : vector<2x32xf32> to vector<1x2x32xf32>
    tpu.vector_store %arg14[%558, %c0_129, %c0_130], %561 {strides = array<i32>} : memref<8x2x32xf32, #tpu.memory_space<vmem>>, vector<1x2x32xf32>,
    %562 = arith.index_cast %c3_i32 : i32 to index
    %c0_131 = arith.constant 0 : index
    %c0_132 = arith.constant 0 : index
    %563 = vector.load %arg15[%562, %c0_131, %c0_132] : memref<8x2x32xf32, #tpu.memory_space<vmem>>, vector<1x2x32xf32>
    %564 = vector.shape_cast %563 : vector<1x2x32xf32> to vector<2x32xf32>
    %565 = vector.shape_cast %523 : vector<2x32xf32> to vector<1x2x32xf32>
    tpu.vector_store %arg15[%562, %c0_131, %c0_132], %565 {strides = array<i32>} : memref<8x2x32xf32, #tpu.memory_space<vmem>>, vector<1x2x32xf32>,
    %566 = arith.index_cast %431 : i32 to index
    %c0_133 = arith.constant 0 : index
    %c0_134 = arith.constant 0 : index
    %567 = vector.load %arg16[%566, %c0_133, %c0_134] : memref<8x2x32xf32, #tpu.memory_space<vmem>>, vector<1x2x32xf32>
    %568 = vector.shape_cast %567 : vector<1x2x32xf32> to vector<2x32xf32>
    %569 = vector.shape_cast %553 : vector<2x32xf32> to vector<1x2x32xf32>
    tpu.vector_store %arg16[%566, %c0_133, %c0_134], %569 {strides = array<i32>} : memref<8x2x32xf32, #tpu.memory_space<vmem>>, vector<1x2x32xf32>,
    %c4_i32 = arith.constant 4 : i32
    %c7_i32_135 = arith.constant 7 : i32
    %570 = arith.subi %c7_i32_135, %c4_i32 : i32
    %c2_i32_136 = arith.constant 2 : i32
    %571 = arith.muli %c4_i32, %c2_i32_136 : i32
    %572 = arith.index_cast %571 : i32 to index
    %c0_137 = arith.constant 0 : index
    %573 = vector.load %arg12[%572, %c0_137] : memref<16x512xf32, #tpu.memory_space<vmem>>, vector<2x512xf32>
    %c2_i32_138 = arith.constant 2 : i32
    %574 = arith.muli %570, %c2_i32_138 : i32
    %575 = arith.index_cast %574 : i32 to index
    %c0_139 = arith.constant 0 : index
    %576 = vector.load %arg12[%575, %c0_139] : memref<16x512xf32, #tpu.memory_space<vmem>>, vector<2x512xf32>
    %577 = vector.extract_strided_slice %573 {offsets = [0, 0], sizes = [2, 128], strides = [1, 1]} : vector<2x512xf32> to vector<2x128xf32>
    %cst_140 = arith.constant dense<0.000000e+00> : vector<2x128xf32>
    %578 = tpu.matmul %465, %7, %cst_140 {dimension_numbers = #tpu.dot_dimension_numbers<[1], [0], [0], [1], [0, 0, 1, 1], [], []>} : vector<2x32xf32>, vector<32x128xf32>, vector<2x128xf32> -> vector<2x128xf32>
    %579 = arith.addf %577, %578 : vector<2x128xf32>
    %580 = vector.extract_strided_slice %579 {offsets = [0, 0], sizes = [2, 32], strides = [1, 1]} : vector<2x128xf32> to vector<2x32xf32>
    %581 = arith.negf %580 : vector<2x32xf32>
    %582 = math.exp %581 : vector<2x32xf32>
    %cst_141 = arith.constant 1.000000e+00 : f32
    %583 = vector.broadcast %cst_141 : f32 to vector<2x32xf32>
    %584 = arith.addf %583, %582 : vector<2x32xf32>
    %585 = arith.divf %583, %584 : vector<2x32xf32>
    %586 = vector.extract_strided_slice %579 {offsets = [0, 32], sizes = [2, 32], strides = [1, 1]} : vector<2x128xf32> to vector<2x32xf32>
    %587 = arith.negf %586 : vector<2x32xf32>
    %588 = math.exp %587 : vector<2x32xf32>
    %cst_142 = arith.constant 1.000000e+00 : f32
    %589 = vector.broadcast %cst_142 : f32 to vector<2x32xf32>
    %590 = arith.addf %589, %588 : vector<2x32xf32>
    %591 = arith.divf %589, %590 : vector<2x32xf32>
    %592 = vector.extract_strided_slice %579 {offsets = [0, 64], sizes = [2, 32], strides = [1, 1]} : vector<2x128xf32> to vector<2x32xf32>
    %593 = math.tanh %592 : vector<2x32xf32>
    %594 = vector.extract_strided_slice %579 {offsets = [0, 96], sizes = [2, 32], strides = [1, 1]} : vector<2x128xf32> to vector<2x32xf32>
    %595 = arith.negf %594 : vector<2x32xf32>
    %596 = math.exp %595 : vector<2x32xf32>
    %cst_143 = arith.constant 1.000000e+00 : f32
    %597 = vector.broadcast %cst_143 : f32 to vector<2x32xf32>
    %598 = arith.addf %597, %596 : vector<2x32xf32>
    %599 = arith.divf %597, %598 : vector<2x32xf32>
    %600 = arith.mulf %591, %463 : vector<2x32xf32>
    %601 = arith.mulf %585, %593 : vector<2x32xf32>
    %602 = arith.addf %600, %601 : vector<2x32xf32>
    %603 = math.tanh %602 : vector<2x32xf32>
    %604 = arith.mulf %599, %603 : vector<2x32xf32>
    %605 = vector.extract_strided_slice %576 {offsets = [0, 128], sizes = [2, 128], strides = [1, 1]} : vector<2x512xf32> to vector<2x128xf32>
    %cst_144 = arith.constant dense<0.000000e+00> : vector<2x128xf32>
    %606 = tpu.matmul %493, %8, %cst_144 {dimension_numbers = #tpu.dot_dimension_numbers<[1], [0], [0], [1], [0, 0, 1, 1], [], []>} : vector<2x32xf32>, vector<32x128xf32>, vector<2x128xf32> -> vector<2x128xf32>
    %607 = arith.addf %605, %606 : vector<2x128xf32>
    %608 = vector.extract_strided_slice %607 {offsets = [0, 0], sizes = [2, 32], strides = [1, 1]} : vector<2x128xf32> to vector<2x32xf32>
    %609 = arith.negf %608 : vector<2x32xf32>
    %610 = math.exp %609 : vector<2x32xf32>
    %cst_145 = arith.constant 1.000000e+00 : f32
    %611 = vector.broadcast %cst_145 : f32 to vector<2x32xf32>
    %612 = arith.addf %611, %610 : vector<2x32xf32>
    %613 = arith.divf %611, %612 : vector<2x32xf32>
    %614 = vector.extract_strided_slice %607 {offsets = [0, 32], sizes = [2, 32], strides = [1, 1]} : vector<2x128xf32> to vector<2x32xf32>
    %615 = arith.negf %614 : vector<2x32xf32>
    %616 = math.exp %615 : vector<2x32xf32>
    %cst_146 = arith.constant 1.000000e+00 : f32
    %617 = vector.broadcast %cst_146 : f32 to vector<2x32xf32>
    %618 = arith.addf %617, %616 : vector<2x32xf32>
    %619 = arith.divf %617, %618 : vector<2x32xf32>
    %620 = vector.extract_strided_slice %607 {offsets = [0, 64], sizes = [2, 32], strides = [1, 1]} : vector<2x128xf32> to vector<2x32xf32>
    %621 = math.tanh %620 : vector<2x32xf32>
    %622 = vector.extract_strided_slice %607 {offsets = [0, 96], sizes = [2, 32], strides = [1, 1]} : vector<2x128xf32> to vector<2x32xf32>
    %623 = arith.negf %622 : vector<2x32xf32>
    %624 = math.exp %623 : vector<2x32xf32>
    %cst_147 = arith.constant 1.000000e+00 : f32
    %625 = vector.broadcast %cst_147 : f32 to vector<2x32xf32>
    %626 = arith.addf %625, %624 : vector<2x32xf32>
    %627 = arith.divf %625, %626 : vector<2x32xf32>
    %628 = arith.mulf %619, %491 : vector<2x32xf32>
    %629 = arith.mulf %613, %621 : vector<2x32xf32>
    %630 = arith.addf %628, %629 : vector<2x32xf32>
    %631 = math.tanh %630 : vector<2x32xf32>
    %632 = arith.mulf %627, %631 : vector<2x32xf32>
    %633 = vector.extract_strided_slice %573 {offsets = [0, 256], sizes = [2, 96], strides = [1, 1]} : vector<2x512xf32> to vector<2x96xf32>
    %cst_148 = arith.constant dense<0.000000e+00> : vector<2x96xf32>
    %634 = tpu.matmul %523, %9, %cst_148 {dimension_numbers = #tpu.dot_dimension_numbers<[1], [0], [0], [1], [0, 0, 1, 1], [], []>} : vector<2x32xf32>, vector<32x96xf32>, vector<2x96xf32> -> vector<2x96xf32>
    %635 = vector.broadcast %11 : vector<1x96xf32> to vector<2x96xf32>
    %636 = arith.addf %634, %635 : vector<2x96xf32>
    %637 = vector.extract_strided_slice %633 {offsets = [0, 0], sizes = [2, 32], strides = [1, 1]} : vector<2x96xf32> to vector<2x32xf32>
    %638 = vector.extract_strided_slice %636 {offsets = [0, 0], sizes = [2, 32], strides = [1, 1]} : vector<2x96xf32> to vector<2x32xf32>
    %639 = arith.addf %637, %638 : vector<2x32xf32>
    %640 = arith.negf %639 : vector<2x32xf32>
    %641 = math.exp %640 : vector<2x32xf32>
    %cst_149 = arith.constant 1.000000e+00 : f32
    %642 = vector.broadcast %cst_149 : f32 to vector<2x32xf32>
    %643 = arith.addf %642, %641 : vector<2x32xf32>
    %644 = arith.divf %642, %643 : vector<2x32xf32>
    %645 = vector.extract_strided_slice %633 {offsets = [0, 32], sizes = [2, 32], strides = [1, 1]} : vector<2x96xf32> to vector<2x32xf32>
    %646 = vector.extract_strided_slice %636 {offsets = [0, 32], sizes = [2, 32], strides = [1, 1]} : vector<2x96xf32> to vector<2x32xf32>
    %647 = arith.addf %645, %646 : vector<2x32xf32>
    %648 = arith.negf %647 : vector<2x32xf32>
    %649 = math.exp %648 : vector<2x32xf32>
    %cst_150 = arith.constant 1.000000e+00 : f32
    %650 = vector.broadcast %cst_150 : f32 to vector<2x32xf32>
    %651 = arith.addf %650, %649 : vector<2x32xf32>
    %652 = arith.divf %650, %651 : vector<2x32xf32>
    %653 = vector.extract_strided_slice %633 {offsets = [0, 64], sizes = [2, 32], strides = [1, 1]} : vector<2x96xf32> to vector<2x32xf32>
    %654 = vector.extract_strided_slice %636 {offsets = [0, 64], sizes = [2, 32], strides = [1, 1]} : vector<2x96xf32> to vector<2x32xf32>
    %655 = arith.mulf %644, %654 : vector<2x32xf32>
    %656 = arith.addf %653, %655 : vector<2x32xf32>
    %657 = math.tanh %656 : vector<2x32xf32>
    %cst_151 = arith.constant 1.000000e+00 : f32
    %658 = vector.broadcast %cst_151 : f32 to vector<2x32xf32>
    %659 = arith.subf %658, %652 : vector<2x32xf32>
    %660 = arith.mulf %659, %657 : vector<2x32xf32>
    %661 = arith.mulf %652, %523 : vector<2x32xf32>
    %662 = arith.addf %660, %661 : vector<2x32xf32>
    %663 = vector.extract_strided_slice %576 {offsets = [0, 384], sizes = [2, 96], strides = [1, 1]} : vector<2x512xf32> to vector<2x96xf32>
    %cst_152 = arith.constant dense<0.000000e+00> : vector<2x96xf32>
    %664 = tpu.matmul %553, %10, %cst_152 {dimension_numbers = #tpu.dot_dimension_numbers<[1], [0], [0], [1], [0, 0, 1, 1], [], []>} : vector<2x32xf32>, vector<32x96xf32>, vector<2x96xf32> -> vector<2x96xf32>
    %665 = vector.broadcast %12 : vector<1x96xf32> to vector<2x96xf32>
    %666 = arith.addf %664, %665 : vector<2x96xf32>
    %667 = vector.extract_strided_slice %663 {offsets = [0, 0], sizes = [2, 32], strides = [1, 1]} : vector<2x96xf32> to vector<2x32xf32>
    %668 = vector.extract_strided_slice %666 {offsets = [0, 0], sizes = [2, 32], strides = [1, 1]} : vector<2x96xf32> to vector<2x32xf32>
    %669 = arith.addf %667, %668 : vector<2x32xf32>
    %670 = arith.negf %669 : vector<2x32xf32>
    %671 = math.exp %670 : vector<2x32xf32>
    %cst_153 = arith.constant 1.000000e+00 : f32
    %672 = vector.broadcast %cst_153 : f32 to vector<2x32xf32>
    %673 = arith.addf %672, %671 : vector<2x32xf32>
    %674 = arith.divf %672, %673 : vector<2x32xf32>
    %675 = vector.extract_strided_slice %663 {offsets = [0, 32], sizes = [2, 32], strides = [1, 1]} : vector<2x96xf32> to vector<2x32xf32>
    %676 = vector.extract_strided_slice %666 {offsets = [0, 32], sizes = [2, 32], strides = [1, 1]} : vector<2x96xf32> to vector<2x32xf32>
    %677 = arith.addf %675, %676 : vector<2x32xf32>
    %678 = arith.negf %677 : vector<2x32xf32>
    %679 = math.exp %678 : vector<2x32xf32>
    %cst_154 = arith.constant 1.000000e+00 : f32
    %680 = vector.broadcast %cst_154 : f32 to vector<2x32xf32>
    %681 = arith.addf %680, %679 : vector<2x32xf32>
    %682 = arith.divf %680, %681 : vector<2x32xf32>
    %683 = vector.extract_strided_slice %663 {offsets = [0, 64], sizes = [2, 32], strides = [1, 1]} : vector<2x96xf32> to vector<2x32xf32>
    %684 = vector.extract_strided_slice %666 {offsets = [0, 64], sizes = [2, 32], strides = [1, 1]} : vector<2x96xf32> to vector<2x32xf32>
    %685 = arith.mulf %674, %684 : vector<2x32xf32>
    %686 = arith.addf %683, %685 : vector<2x32xf32>
    %687 = math.tanh %686 : vector<2x32xf32>
    %cst_155 = arith.constant 1.000000e+00 : f32
    %688 = vector.broadcast %cst_155 : f32 to vector<2x32xf32>
    %689 = arith.subf %688, %682 : vector<2x32xf32>
    %690 = arith.mulf %689, %687 : vector<2x32xf32>
    %691 = arith.mulf %682, %553 : vector<2x32xf32>
    %692 = arith.addf %690, %691 : vector<2x32xf32>
    %693 = arith.index_cast %c4_i32 : i32 to index
    %c0_156 = arith.constant 0 : index
    %c0_157 = arith.constant 0 : index
    %694 = vector.load %arg13[%693, %c0_156, %c0_157] : memref<8x2x32xf32, #tpu.memory_space<vmem>>, vector<1x2x32xf32>
    %695 = vector.shape_cast %694 : vector<1x2x32xf32> to vector<2x32xf32>
    %696 = vector.shape_cast %604 : vector<2x32xf32> to vector<1x2x32xf32>
    tpu.vector_store %arg13[%693, %c0_156, %c0_157], %696 {strides = array<i32>} : memref<8x2x32xf32, #tpu.memory_space<vmem>>, vector<1x2x32xf32>,
    %697 = arith.index_cast %570 : i32 to index
    %c0_158 = arith.constant 0 : index
    %c0_159 = arith.constant 0 : index
    %698 = vector.load %arg14[%697, %c0_158, %c0_159] : memref<8x2x32xf32, #tpu.memory_space<vmem>>, vector<1x2x32xf32>
    %699 = vector.shape_cast %698 : vector<1x2x32xf32> to vector<2x32xf32>
    %700 = vector.shape_cast %632 : vector<2x32xf32> to vector<1x2x32xf32>
    tpu.vector_store %arg14[%697, %c0_158, %c0_159], %700 {strides = array<i32>} : memref<8x2x32xf32, #tpu.memory_space<vmem>>, vector<1x2x32xf32>,
    %701 = arith.index_cast %c4_i32 : i32 to index
    %c0_160 = arith.constant 0 : index
    %c0_161 = arith.constant 0 : index
    %702 = vector.load %arg15[%701, %c0_160, %c0_161] : memref<8x2x32xf32, #tpu.memory_space<vmem>>, vector<1x2x32xf32>
    %703 = vector.shape_cast %702 : vector<1x2x32xf32> to vector<2x32xf32>
    %704 = vector.shape_cast %662 : vector<2x32xf32> to vector<1x2x32xf32>
    tpu.vector_store %arg15[%701, %c0_160, %c0_161], %704 {strides = array<i32>} : memref<8x2x32xf32, #tpu.memory_space<vmem>>, vector<1x2x32xf32>,
    %705 = arith.index_cast %570 : i32 to index
    %c0_162 = arith.constant 0 : index
    %c0_163 = arith.constant 0 : index
    %706 = vector.load %arg16[%705, %c0_162, %c0_163] : memref<8x2x32xf32, #tpu.memory_space<vmem>>, vector<1x2x32xf32>
    %707 = vector.shape_cast %706 : vector<1x2x32xf32> to vector<2x32xf32>
    %708 = vector.shape_cast %692 : vector<2x32xf32> to vector<1x2x32xf32>
    tpu.vector_store %arg16[%705, %c0_162, %c0_163], %708 {strides = array<i32>} : memref<8x2x32xf32, #tpu.memory_space<vmem>>, vector<1x2x32xf32>,
    %c5_i32 = arith.constant 5 : i32
    %c7_i32_164 = arith.constant 7 : i32
    %709 = arith.subi %c7_i32_164, %c5_i32 : i32
    %c2_i32_165 = arith.constant 2 : i32
    %710 = arith.muli %c5_i32, %c2_i32_165 : i32
    %711 = arith.index_cast %710 : i32 to index
    %c0_166 = arith.constant 0 : index
    %712 = vector.load %arg12[%711, %c0_166] : memref<16x512xf32, #tpu.memory_space<vmem>>, vector<2x512xf32>
    %c2_i32_167 = arith.constant 2 : i32
    %713 = arith.muli %709, %c2_i32_167 : i32
    %714 = arith.index_cast %713 : i32 to index
    %c0_168 = arith.constant 0 : index
    %715 = vector.load %arg12[%714, %c0_168] : memref<16x512xf32, #tpu.memory_space<vmem>>, vector<2x512xf32>
    %716 = vector.extract_strided_slice %712 {offsets = [0, 0], sizes = [2, 128], strides = [1, 1]} : vector<2x512xf32> to vector<2x128xf32>
    %cst_169 = arith.constant dense<0.000000e+00> : vector<2x128xf32>
    %717 = tpu.matmul %604, %7, %cst_169 {dimension_numbers = #tpu.dot_dimension_numbers<[1], [0], [0], [1], [0, 0, 1, 1], [], []>} : vector<2x32xf32>, vector<32x128xf32>, vector<2x128xf32> -> vector<2x128xf32>
    %718 = arith.addf %716, %717 : vector<2x128xf32>
    %719 = vector.extract_strided_slice %718 {offsets = [0, 0], sizes = [2, 32], strides = [1, 1]} : vector<2x128xf32> to vector<2x32xf32>
    %720 = arith.negf %719 : vector<2x32xf32>
    %721 = math.exp %720 : vector<2x32xf32>
    %cst_170 = arith.constant 1.000000e+00 : f32
    %722 = vector.broadcast %cst_170 : f32 to vector<2x32xf32>
    %723 = arith.addf %722, %721 : vector<2x32xf32>
    %724 = arith.divf %722, %723 : vector<2x32xf32>
    %725 = vector.extract_strided_slice %718 {offsets = [0, 32], sizes = [2, 32], strides = [1, 1]} : vector<2x128xf32> to vector<2x32xf32>
    %726 = arith.negf %725 : vector<2x32xf32>
    %727 = math.exp %726 : vector<2x32xf32>
    %cst_171 = arith.constant 1.000000e+00 : f32
    %728 = vector.broadcast %cst_171 : f32 to vector<2x32xf32>
    %729 = arith.addf %728, %727 : vector<2x32xf32>
    %730 = arith.divf %728, %729 : vector<2x32xf32>
    %731 = vector.extract_strided_slice %718 {offsets = [0, 64], sizes = [2, 32], strides = [1, 1]} : vector<2x128xf32> to vector<2x32xf32>
    %732 = math.tanh %731 : vector<2x32xf32>
    %733 = vector.extract_strided_slice %718 {offsets = [0, 96], sizes = [2, 32], strides = [1, 1]} : vector<2x128xf32> to vector<2x32xf32>
    %734 = arith.negf %733 : vector<2x32xf32>
    %735 = math.exp %734 : vector<2x32xf32>
    %cst_172 = arith.constant 1.000000e+00 : f32
    %736 = vector.broadcast %cst_172 : f32 to vector<2x32xf32>
    %737 = arith.addf %736, %735 : vector<2x32xf32>
    %738 = arith.divf %736, %737 : vector<2x32xf32>
    %739 = arith.mulf %730, %602 : vector<2x32xf32>
    %740 = arith.mulf %724, %732 : vector<2x32xf32>
    %741 = arith.addf %739, %740 : vector<2x32xf32>
    %742 = math.tanh %741 : vector<2x32xf32>
    %743 = arith.mulf %738, %742 : vector<2x32xf32>
    %744 = vector.extract_strided_slice %715 {offsets = [0, 128], sizes = [2, 128], strides = [1, 1]} : vector<2x512xf32> to vector<2x128xf32>
    %cst_173 = arith.constant dense<0.000000e+00> : vector<2x128xf32>
    %745 = tpu.matmul %632, %8, %cst_173 {dimension_numbers = #tpu.dot_dimension_numbers<[1], [0], [0], [1], [0, 0, 1, 1], [], []>} : vector<2x32xf32>, vector<32x128xf32>, vector<2x128xf32> -> vector<2x128xf32>
    %746 = arith.addf %744, %745 : vector<2x128xf32>
    %747 = vector.extract_strided_slice %746 {offsets = [0, 0], sizes = [2, 32], strides = [1, 1]} : vector<2x128xf32> to vector<2x32xf32>
    %748 = arith.negf %747 : vector<2x32xf32>
    %749 = math.exp %748 : vector<2x32xf32>
    %cst_174 = arith.constant 1.000000e+00 : f32
    %750 = vector.broadcast %cst_174 : f32 to vector<2x32xf32>
    %751 = arith.addf %750, %749 : vector<2x32xf32>
    %752 = arith.divf %750, %751 : vector<2x32xf32>
    %753 = vector.extract_strided_slice %746 {offsets = [0, 32], sizes = [2, 32], strides = [1, 1]} : vector<2x128xf32> to vector<2x32xf32>
    %754 = arith.negf %753 : vector<2x32xf32>
    %755 = math.exp %754 : vector<2x32xf32>
    %cst_175 = arith.constant 1.000000e+00 : f32
    %756 = vector.broadcast %cst_175 : f32 to vector<2x32xf32>
    %757 = arith.addf %756, %755 : vector<2x32xf32>
    %758 = arith.divf %756, %757 : vector<2x32xf32>
    %759 = vector.extract_strided_slice %746 {offsets = [0, 64], sizes = [2, 32], strides = [1, 1]} : vector<2x128xf32> to vector<2x32xf32>
    %760 = math.tanh %759 : vector<2x32xf32>
    %761 = vector.extract_strided_slice %746 {offsets = [0, 96], sizes = [2, 32], strides = [1, 1]} : vector<2x128xf32> to vector<2x32xf32>
    %762 = arith.negf %761 : vector<2x32xf32>
    %763 = math.exp %762 : vector<2x32xf32>
    %cst_176 = arith.constant 1.000000e+00 : f32
    %764 = vector.broadcast %cst_176 : f32 to vector<2x32xf32>
    %765 = arith.addf %764, %763 : vector<2x32xf32>
    %766 = arith.divf %764, %765 : vector<2x32xf32>
    %767 = arith.mulf %758, %630 : vector<2x32xf32>
    %768 = arith.mulf %752, %760 : vector<2x32xf32>
    %769 = arith.addf %767, %768 : vector<2x32xf32>
    %770 = math.tanh %769 : vector<2x32xf32>
    %771 = arith.mulf %766, %770 : vector<2x32xf32>
    %772 = vector.extract_strided_slice %712 {offsets = [0, 256], sizes = [2, 96], strides = [1, 1]} : vector<2x512xf32> to vector<2x96xf32>
    %cst_177 = arith.constant dense<0.000000e+00> : vector<2x96xf32>
    %773 = tpu.matmul %662, %9, %cst_177 {dimension_numbers = #tpu.dot_dimension_numbers<[1], [0], [0], [1], [0, 0, 1, 1], [], []>} : vector<2x32xf32>, vector<32x96xf32>, vector<2x96xf32> -> vector<2x96xf32>
    %774 = vector.broadcast %11 : vector<1x96xf32> to vector<2x96xf32>
    %775 = arith.addf %773, %774 : vector<2x96xf32>
    %776 = vector.extract_strided_slice %772 {offsets = [0, 0], sizes = [2, 32], strides = [1, 1]} : vector<2x96xf32> to vector<2x32xf32>
    %777 = vector.extract_strided_slice %775 {offsets = [0, 0], sizes = [2, 32], strides = [1, 1]} : vector<2x96xf32> to vector<2x32xf32>
    %778 = arith.addf %776, %777 : vector<2x32xf32>
    %779 = arith.negf %778 : vector<2x32xf32>
    %780 = math.exp %779 : vector<2x32xf32>
    %cst_178 = arith.constant 1.000000e+00 : f32
    %781 = vector.broadcast %cst_178 : f32 to vector<2x32xf32>
    %782 = arith.addf %781, %780 : vector<2x32xf32>
    %783 = arith.divf %781, %782 : vector<2x32xf32>
    %784 = vector.extract_strided_slice %772 {offsets = [0, 32], sizes = [2, 32], strides = [1, 1]} : vector<2x96xf32> to vector<2x32xf32>
    %785 = vector.extract_strided_slice %775 {offsets = [0, 32], sizes = [2, 32], strides = [1, 1]} : vector<2x96xf32> to vector<2x32xf32>
    %786 = arith.addf %784, %785 : vector<2x32xf32>
    %787 = arith.negf %786 : vector<2x32xf32>
    %788 = math.exp %787 : vector<2x32xf32>
    %cst_179 = arith.constant 1.000000e+00 : f32
    %789 = vector.broadcast %cst_179 : f32 to vector<2x32xf32>
    %790 = arith.addf %789, %788 : vector<2x32xf32>
    %791 = arith.divf %789, %790 : vector<2x32xf32>
    %792 = vector.extract_strided_slice %772 {offsets = [0, 64], sizes = [2, 32], strides = [1, 1]} : vector<2x96xf32> to vector<2x32xf32>
    %793 = vector.extract_strided_slice %775 {offsets = [0, 64], sizes = [2, 32], strides = [1, 1]} : vector<2x96xf32> to vector<2x32xf32>
    %794 = arith.mulf %783, %793 : vector<2x32xf32>
    %795 = arith.addf %792, %794 : vector<2x32xf32>
    %796 = math.tanh %795 : vector<2x32xf32>
    %cst_180 = arith.constant 1.000000e+00 : f32
    %797 = vector.broadcast %cst_180 : f32 to vector<2x32xf32>
    %798 = arith.subf %797, %791 : vector<2x32xf32>
    %799 = arith.mulf %798, %796 : vector<2x32xf32>
    %800 = arith.mulf %791, %662 : vector<2x32xf32>
    %801 = arith.addf %799, %800 : vector<2x32xf32>
    %802 = vector.extract_strided_slice %715 {offsets = [0, 384], sizes = [2, 96], strides = [1, 1]} : vector<2x512xf32> to vector<2x96xf32>
    %cst_181 = arith.constant dense<0.000000e+00> : vector<2x96xf32>
    %803 = tpu.matmul %692, %10, %cst_181 {dimension_numbers = #tpu.dot_dimension_numbers<[1], [0], [0], [1], [0, 0, 1, 1], [], []>} : vector<2x32xf32>, vector<32x96xf32>, vector<2x96xf32> -> vector<2x96xf32>
    %804 = vector.broadcast %12 : vector<1x96xf32> to vector<2x96xf32>
    %805 = arith.addf %803, %804 : vector<2x96xf32>
    %806 = vector.extract_strided_slice %802 {offsets = [0, 0], sizes = [2, 32], strides = [1, 1]} : vector<2x96xf32> to vector<2x32xf32>
    %807 = vector.extract_strided_slice %805 {offsets = [0, 0], sizes = [2, 32], strides = [1, 1]} : vector<2x96xf32> to vector<2x32xf32>
    %808 = arith.addf %806, %807 : vector<2x32xf32>
    %809 = arith.negf %808 : vector<2x32xf32>
    %810 = math.exp %809 : vector<2x32xf32>
    %cst_182 = arith.constant 1.000000e+00 : f32
    %811 = vector.broadcast %cst_182 : f32 to vector<2x32xf32>
    %812 = arith.addf %811, %810 : vector<2x32xf32>
    %813 = arith.divf %811, %812 : vector<2x32xf32>
    %814 = vector.extract_strided_slice %802 {offsets = [0, 32], sizes = [2, 32], strides = [1, 1]} : vector<2x96xf32> to vector<2x32xf32>
    %815 = vector.extract_strided_slice %805 {offsets = [0, 32], sizes = [2, 32], strides = [1, 1]} : vector<2x96xf32> to vector<2x32xf32>
    %816 = arith.addf %814, %815 : vector<2x32xf32>
    %817 = arith.negf %816 : vector<2x32xf32>
    %818 = math.exp %817 : vector<2x32xf32>
    %cst_183 = arith.constant 1.000000e+00 : f32
    %819 = vector.broadcast %cst_183 : f32 to vector<2x32xf32>
    %820 = arith.addf %819, %818 : vector<2x32xf32>
    %821 = arith.divf %819, %820 : vector<2x32xf32>
    %822 = vector.extract_strided_slice %802 {offsets = [0, 64], sizes = [2, 32], strides = [1, 1]} : vector<2x96xf32> to vector<2x32xf32>
    %823 = vector.extract_strided_slice %805 {offsets = [0, 64], sizes = [2, 32], strides = [1, 1]} : vector<2x96xf32> to vector<2x32xf32>
    %824 = arith.mulf %813, %823 : vector<2x32xf32>
    %825 = arith.addf %822, %824 : vector<2x32xf32>
    %826 = math.tanh %825 : vector<2x32xf32>
    %cst_184 = arith.constant 1.000000e+00 : f32
    %827 = vector.broadcast %cst_184 : f32 to vector<2x32xf32>
    %828 = arith.subf %827, %821 : vector<2x32xf32>
    %829 = arith.mulf %828, %826 : vector<2x32xf32>
    %830 = arith.mulf %821, %692 : vector<2x32xf32>
    %831 = arith.addf %829, %830 : vector<2x32xf32>
    %832 = arith.index_cast %c5_i32 : i32 to index
    %c0_185 = arith.constant 0 : index
    %c0_186 = arith.constant 0 : index
    %833 = vector.load %arg13[%832, %c0_185, %c0_186] : memref<8x2x32xf32, #tpu.memory_space<vmem>>, vector<1x2x32xf32>
    %834 = vector.shape_cast %833 : vector<1x2x32xf32> to vector<2x32xf32>
    %835 = vector.shape_cast %743 : vector<2x32xf32> to vector<1x2x32xf32>
    tpu.vector_store %arg13[%832, %c0_185, %c0_186], %835 {strides = array<i32>} : memref<8x2x32xf32, #tpu.memory_space<vmem>>, vector<1x2x32xf32>,
    %836 = arith.index_cast %709 : i32 to index
    %c0_187 = arith.constant 0 : index
    %c0_188 = arith.constant 0 : index
    %837 = vector.load %arg14[%836, %c0_187, %c0_188] : memref<8x2x32xf32, #tpu.memory_space<vmem>>, vector<1x2x32xf32>
    %838 = vector.shape_cast %837 : vector<1x2x32xf32> to vector<2x32xf32>
    %839 = vector.shape_cast %771 : vector<2x32xf32> to vector<1x2x32xf32>
    tpu.vector_store %arg14[%836, %c0_187, %c0_188], %839 {strides = array<i32>} : memref<8x2x32xf32, #tpu.memory_space<vmem>>, vector<1x2x32xf32>,
    %840 = arith.index_cast %c5_i32 : i32 to index
    %c0_189 = arith.constant 0 : index
    %c0_190 = arith.constant 0 : index
    %841 = vector.load %arg15[%840, %c0_189, %c0_190] : memref<8x2x32xf32, #tpu.memory_space<vmem>>, vector<1x2x32xf32>
    %842 = vector.shape_cast %841 : vector<1x2x32xf32> to vector<2x32xf32>
    %843 = vector.shape_cast %801 : vector<2x32xf32> to vector<1x2x32xf32>
    tpu.vector_store %arg15[%840, %c0_189, %c0_190], %843 {strides = array<i32>} : memref<8x2x32xf32, #tpu.memory_space<vmem>>, vector<1x2x32xf32>,
    %844 = arith.index_cast %709 : i32 to index
    %c0_191 = arith.constant 0 : index
    %c0_192 = arith.constant 0 : index
    %845 = vector.load %arg16[%844, %c0_191, %c0_192] : memref<8x2x32xf32, #tpu.memory_space<vmem>>, vector<1x2x32xf32>
    %846 = vector.shape_cast %845 : vector<1x2x32xf32> to vector<2x32xf32>
    %847 = vector.shape_cast %831 : vector<2x32xf32> to vector<1x2x32xf32>
    tpu.vector_store %arg16[%844, %c0_191, %c0_192], %847 {strides = array<i32>} : memref<8x2x32xf32, #tpu.memory_space<vmem>>, vector<1x2x32xf32>,
    %c6_i32 = arith.constant 6 : i32
    %c7_i32_193 = arith.constant 7 : i32
    %848 = arith.subi %c7_i32_193, %c6_i32 : i32
    %c2_i32_194 = arith.constant 2 : i32
    %849 = arith.muli %c6_i32, %c2_i32_194 : i32
    %850 = arith.index_cast %849 : i32 to index
    %c0_195 = arith.constant 0 : index
    %851 = vector.load %arg12[%850, %c0_195] : memref<16x512xf32, #tpu.memory_space<vmem>>, vector<2x512xf32>
    %c2_i32_196 = arith.constant 2 : i32
    %852 = arith.muli %848, %c2_i32_196 : i32
    %853 = arith.index_cast %852 : i32 to index
    %c0_197 = arith.constant 0 : index
    %854 = vector.load %arg12[%853, %c0_197] : memref<16x512xf32, #tpu.memory_space<vmem>>, vector<2x512xf32>
    %855 = vector.extract_strided_slice %851 {offsets = [0, 0], sizes = [2, 128], strides = [1, 1]} : vector<2x512xf32> to vector<2x128xf32>
    %cst_198 = arith.constant dense<0.000000e+00> : vector<2x128xf32>
    %856 = tpu.matmul %743, %7, %cst_198 {dimension_numbers = #tpu.dot_dimension_numbers<[1], [0], [0], [1], [0, 0, 1, 1], [], []>} : vector<2x32xf32>, vector<32x128xf32>, vector<2x128xf32> -> vector<2x128xf32>
    %857 = arith.addf %855, %856 : vector<2x128xf32>
    %858 = vector.extract_strided_slice %857 {offsets = [0, 0], sizes = [2, 32], strides = [1, 1]} : vector<2x128xf32> to vector<2x32xf32>
    %859 = arith.negf %858 : vector<2x32xf32>
    %860 = math.exp %859 : vector<2x32xf32>
    %cst_199 = arith.constant 1.000000e+00 : f32
    %861 = vector.broadcast %cst_199 : f32 to vector<2x32xf32>
    %862 = arith.addf %861, %860 : vector<2x32xf32>
    %863 = arith.divf %861, %862 : vector<2x32xf32>
    %864 = vector.extract_strided_slice %857 {offsets = [0, 32], sizes = [2, 32], strides = [1, 1]} : vector<2x128xf32> to vector<2x32xf32>
    %865 = arith.negf %864 : vector<2x32xf32>
    %866 = math.exp %865 : vector<2x32xf32>
    %cst_200 = arith.constant 1.000000e+00 : f32
    %867 = vector.broadcast %cst_200 : f32 to vector<2x32xf32>
    %868 = arith.addf %867, %866 : vector<2x32xf32>
    %869 = arith.divf %867, %868 : vector<2x32xf32>
    %870 = vector.extract_strided_slice %857 {offsets = [0, 64], sizes = [2, 32], strides = [1, 1]} : vector<2x128xf32> to vector<2x32xf32>
    %871 = math.tanh %870 : vector<2x32xf32>
    %872 = vector.extract_strided_slice %857 {offsets = [0, 96], sizes = [2, 32], strides = [1, 1]} : vector<2x128xf32> to vector<2x32xf32>
    %873 = arith.negf %872 : vector<2x32xf32>
    %874 = math.exp %873 : vector<2x32xf32>
    %cst_201 = arith.constant 1.000000e+00 : f32
    %875 = vector.broadcast %cst_201 : f32 to vector<2x32xf32>
    %876 = arith.addf %875, %874 : vector<2x32xf32>
    %877 = arith.divf %875, %876 : vector<2x32xf32>
    %878 = arith.mulf %869, %741 : vector<2x32xf32>
    %879 = arith.mulf %863, %871 : vector<2x32xf32>
    %880 = arith.addf %878, %879 : vector<2x32xf32>
    %881 = math.tanh %880 : vector<2x32xf32>
    %882 = arith.mulf %877, %881 : vector<2x32xf32>
    %883 = vector.extract_strided_slice %854 {offsets = [0, 128], sizes = [2, 128], strides = [1, 1]} : vector<2x512xf32> to vector<2x128xf32>
    %cst_202 = arith.constant dense<0.000000e+00> : vector<2x128xf32>
    %884 = tpu.matmul %771, %8, %cst_202 {dimension_numbers = #tpu.dot_dimension_numbers<[1], [0], [0], [1], [0, 0, 1, 1], [], []>} : vector<2x32xf32>, vector<32x128xf32>, vector<2x128xf32> -> vector<2x128xf32>
    %885 = arith.addf %883, %884 : vector<2x128xf32>
    %886 = vector.extract_strided_slice %885 {offsets = [0, 0], sizes = [2, 32], strides = [1, 1]} : vector<2x128xf32> to vector<2x32xf32>
    %887 = arith.negf %886 : vector<2x32xf32>
    %888 = math.exp %887 : vector<2x32xf32>
    %cst_203 = arith.constant 1.000000e+00 : f32
    %889 = vector.broadcast %cst_203 : f32 to vector<2x32xf32>
    %890 = arith.addf %889, %888 : vector<2x32xf32>
    %891 = arith.divf %889, %890 : vector<2x32xf32>
    %892 = vector.extract_strided_slice %885 {offsets = [0, 32], sizes = [2, 32], strides = [1, 1]} : vector<2x128xf32> to vector<2x32xf32>
    %893 = arith.negf %892 : vector<2x32xf32>
    %894 = math.exp %893 : vector<2x32xf32>
    %cst_204 = arith.constant 1.000000e+00 : f32
    %895 = vector.broadcast %cst_204 : f32 to vector<2x32xf32>
    %896 = arith.addf %895, %894 : vector<2x32xf32>
    %897 = arith.divf %895, %896 : vector<2x32xf32>
    %898 = vector.extract_strided_slice %885 {offsets = [0, 64], sizes = [2, 32], strides = [1, 1]} : vector<2x128xf32> to vector<2x32xf32>
    %899 = math.tanh %898 : vector<2x32xf32>
    %900 = vector.extract_strided_slice %885 {offsets = [0, 96], sizes = [2, 32], strides = [1, 1]} : vector<2x128xf32> to vector<2x32xf32>
    %901 = arith.negf %900 : vector<2x32xf32>
    %902 = math.exp %901 : vector<2x32xf32>
    %cst_205 = arith.constant 1.000000e+00 : f32
    %903 = vector.broadcast %cst_205 : f32 to vector<2x32xf32>
    %904 = arith.addf %903, %902 : vector<2x32xf32>
    %905 = arith.divf %903, %904 : vector<2x32xf32>
    %906 = arith.mulf %897, %769 : vector<2x32xf32>
    %907 = arith.mulf %891, %899 : vector<2x32xf32>
    %908 = arith.addf %906, %907 : vector<2x32xf32>
    %909 = math.tanh %908 : vector<2x32xf32>
    %910 = arith.mulf %905, %909 : vector<2x32xf32>
    %911 = vector.extract_strided_slice %851 {offsets = [0, 256], sizes = [2, 96], strides = [1, 1]} : vector<2x512xf32> to vector<2x96xf32>
    %cst_206 = arith.constant dense<0.000000e+00> : vector<2x96xf32>
    %912 = tpu.matmul %801, %9, %cst_206 {dimension_numbers = #tpu.dot_dimension_numbers<[1], [0], [0], [1], [0, 0, 1, 1], [], []>} : vector<2x32xf32>, vector<32x96xf32>, vector<2x96xf32> -> vector<2x96xf32>
    %913 = vector.broadcast %11 : vector<1x96xf32> to vector<2x96xf32>
    %914 = arith.addf %912, %913 : vector<2x96xf32>
    %915 = vector.extract_strided_slice %911 {offsets = [0, 0], sizes = [2, 32], strides = [1, 1]} : vector<2x96xf32> to vector<2x32xf32>
    %916 = vector.extract_strided_slice %914 {offsets = [0, 0], sizes = [2, 32], strides = [1, 1]} : vector<2x96xf32> to vector<2x32xf32>
    %917 = arith.addf %915, %916 : vector<2x32xf32>
    %918 = arith.negf %917 : vector<2x32xf32>
    %919 = math.exp %918 : vector<2x32xf32>
    %cst_207 = arith.constant 1.000000e+00 : f32
    %920 = vector.broadcast %cst_207 : f32 to vector<2x32xf32>
    %921 = arith.addf %920, %919 : vector<2x32xf32>
    %922 = arith.divf %920, %921 : vector<2x32xf32>
    %923 = vector.extract_strided_slice %911 {offsets = [0, 32], sizes = [2, 32], strides = [1, 1]} : vector<2x96xf32> to vector<2x32xf32>
    %924 = vector.extract_strided_slice %914 {offsets = [0, 32], sizes = [2, 32], strides = [1, 1]} : vector<2x96xf32> to vector<2x32xf32>
    %925 = arith.addf %923, %924 : vector<2x32xf32>
    %926 = arith.negf %925 : vector<2x32xf32>
    %927 = math.exp %926 : vector<2x32xf32>
    %cst_208 = arith.constant 1.000000e+00 : f32
    %928 = vector.broadcast %cst_208 : f32 to vector<2x32xf32>
    %929 = arith.addf %928, %927 : vector<2x32xf32>
    %930 = arith.divf %928, %929 : vector<2x32xf32>
    %931 = vector.extract_strided_slice %911 {offsets = [0, 64], sizes = [2, 32], strides = [1, 1]} : vector<2x96xf32> to vector<2x32xf32>
    %932 = vector.extract_strided_slice %914 {offsets = [0, 64], sizes = [2, 32], strides = [1, 1]} : vector<2x96xf32> to vector<2x32xf32>
    %933 = arith.mulf %922, %932 : vector<2x32xf32>
    %934 = arith.addf %931, %933 : vector<2x32xf32>
    %935 = math.tanh %934 : vector<2x32xf32>
    %cst_209 = arith.constant 1.000000e+00 : f32
    %936 = vector.broadcast %cst_209 : f32 to vector<2x32xf32>
    %937 = arith.subf %936, %930 : vector<2x32xf32>
    %938 = arith.mulf %937, %935 : vector<2x32xf32>
    %939 = arith.mulf %930, %801 : vector<2x32xf32>
    %940 = arith.addf %938, %939 : vector<2x32xf32>
    %941 = vector.extract_strided_slice %854 {offsets = [0, 384], sizes = [2, 96], strides = [1, 1]} : vector<2x512xf32> to vector<2x96xf32>
    %cst_210 = arith.constant dense<0.000000e+00> : vector<2x96xf32>
    %942 = tpu.matmul %831, %10, %cst_210 {dimension_numbers = #tpu.dot_dimension_numbers<[1], [0], [0], [1], [0, 0, 1, 1], [], []>} : vector<2x32xf32>, vector<32x96xf32>, vector<2x96xf32> -> vector<2x96xf32>
    %943 = vector.broadcast %12 : vector<1x96xf32> to vector<2x96xf32>
    %944 = arith.addf %942, %943 : vector<2x96xf32>
    %945 = vector.extract_strided_slice %941 {offsets = [0, 0], sizes = [2, 32], strides = [1, 1]} : vector<2x96xf32> to vector<2x32xf32>
    %946 = vector.extract_strided_slice %944 {offsets = [0, 0], sizes = [2, 32], strides = [1, 1]} : vector<2x96xf32> to vector<2x32xf32>
    %947 = arith.addf %945, %946 : vector<2x32xf32>
    %948 = arith.negf %947 : vector<2x32xf32>
    %949 = math.exp %948 : vector<2x32xf32>
    %cst_211 = arith.constant 1.000000e+00 : f32
    %950 = vector.broadcast %cst_211 : f32 to vector<2x32xf32>
    %951 = arith.addf %950, %949 : vector<2x32xf32>
    %952 = arith.divf %950, %951 : vector<2x32xf32>
    %953 = vector.extract_strided_slice %941 {offsets = [0, 32], sizes = [2, 32], strides = [1, 1]} : vector<2x96xf32> to vector<2x32xf32>
    %954 = vector.extract_strided_slice %944 {offsets = [0, 32], sizes = [2, 32], strides = [1, 1]} : vector<2x96xf32> to vector<2x32xf32>
    %955 = arith.addf %953, %954 : vector<2x32xf32>
    %956 = arith.negf %955 : vector<2x32xf32>
    %957 = math.exp %956 : vector<2x32xf32>
    %cst_212 = arith.constant 1.000000e+00 : f32
    %958 = vector.broadcast %cst_212 : f32 to vector<2x32xf32>
    %959 = arith.addf %958, %957 : vector<2x32xf32>
    %960 = arith.divf %958, %959 : vector<2x32xf32>
    %961 = vector.extract_strided_slice %941 {offsets = [0, 64], sizes = [2, 32], strides = [1, 1]} : vector<2x96xf32> to vector<2x32xf32>
    %962 = vector.extract_strided_slice %944 {offsets = [0, 64], sizes = [2, 32], strides = [1, 1]} : vector<2x96xf32> to vector<2x32xf32>
    %963 = arith.mulf %952, %962 : vector<2x32xf32>
    %964 = arith.addf %961, %963 : vector<2x32xf32>
    %965 = math.tanh %964 : vector<2x32xf32>
    %cst_213 = arith.constant 1.000000e+00 : f32
    %966 = vector.broadcast %cst_213 : f32 to vector<2x32xf32>
    %967 = arith.subf %966, %960 : vector<2x32xf32>
    %968 = arith.mulf %967, %965 : vector<2x32xf32>
    %969 = arith.mulf %960, %831 : vector<2x32xf32>
    %970 = arith.addf %968, %969 : vector<2x32xf32>
    %971 = arith.index_cast %c6_i32 : i32 to index
    %c0_214 = arith.constant 0 : index
    %c0_215 = arith.constant 0 : index
    %972 = vector.load %arg13[%971, %c0_214, %c0_215] : memref<8x2x32xf32, #tpu.memory_space<vmem>>, vector<1x2x32xf32>
    %973 = vector.shape_cast %972 : vector<1x2x32xf32> to vector<2x32xf32>
    %974 = vector.shape_cast %882 : vector<2x32xf32> to vector<1x2x32xf32>
    tpu.vector_store %arg13[%971, %c0_214, %c0_215], %974 {strides = array<i32>} : memref<8x2x32xf32, #tpu.memory_space<vmem>>, vector<1x2x32xf32>,
    %975 = arith.index_cast %848 : i32 to index
    %c0_216 = arith.constant 0 : index
    %c0_217 = arith.constant 0 : index
    %976 = vector.load %arg14[%975, %c0_216, %c0_217] : memref<8x2x32xf32, #tpu.memory_space<vmem>>, vector<1x2x32xf32>
    %977 = vector.shape_cast %976 : vector<1x2x32xf32> to vector<2x32xf32>
    %978 = vector.shape_cast %910 : vector<2x32xf32> to vector<1x2x32xf32>
    tpu.vector_store %arg14[%975, %c0_216, %c0_217], %978 {strides = array<i32>} : memref<8x2x32xf32, #tpu.memory_space<vmem>>, vector<1x2x32xf32>,
    %979 = arith.index_cast %c6_i32 : i32 to index
    %c0_218 = arith.constant 0 : index
    %c0_219 = arith.constant 0 : index
    %980 = vector.load %arg15[%979, %c0_218, %c0_219] : memref<8x2x32xf32, #tpu.memory_space<vmem>>, vector<1x2x32xf32>
    %981 = vector.shape_cast %980 : vector<1x2x32xf32> to vector<2x32xf32>
    %982 = vector.shape_cast %940 : vector<2x32xf32> to vector<1x2x32xf32>
    tpu.vector_store %arg15[%979, %c0_218, %c0_219], %982 {strides = array<i32>} : memref<8x2x32xf32, #tpu.memory_space<vmem>>, vector<1x2x32xf32>,
    %983 = arith.index_cast %848 : i32 to index
    %c0_220 = arith.constant 0 : index
    %c0_221 = arith.constant 0 : index
    %984 = vector.load %arg16[%983, %c0_220, %c0_221] : memref<8x2x32xf32, #tpu.memory_space<vmem>>, vector<1x2x32xf32>
    %985 = vector.shape_cast %984 : vector<1x2x32xf32> to vector<2x32xf32>
    %986 = vector.shape_cast %970 : vector<2x32xf32> to vector<1x2x32xf32>
    tpu.vector_store %arg16[%983, %c0_220, %c0_221], %986 {strides = array<i32>} : memref<8x2x32xf32, #tpu.memory_space<vmem>>, vector<1x2x32xf32>,
    %c7_i32_222 = arith.constant 7 : i32
    %c7_i32_223 = arith.constant 7 : i32
    %987 = arith.subi %c7_i32_223, %c7_i32_222 : i32
    %c2_i32_224 = arith.constant 2 : i32
    %988 = arith.muli %c7_i32_222, %c2_i32_224 : i32
    %989 = arith.index_cast %988 : i32 to index
    %c0_225 = arith.constant 0 : index
    %990 = vector.load %arg12[%989, %c0_225] : memref<16x512xf32, #tpu.memory_space<vmem>>, vector<2x512xf32>
    %c2_i32_226 = arith.constant 2 : i32
    %991 = arith.muli %987, %c2_i32_226 : i32
    %992 = arith.index_cast %991 : i32 to index
    %c0_227 = arith.constant 0 : index
    %993 = vector.load %arg12[%992, %c0_227] : memref<16x512xf32, #tpu.memory_space<vmem>>, vector<2x512xf32>
    %994 = vector.extract_strided_slice %990 {offsets = [0, 0], sizes = [2, 128], strides = [1, 1]} : vector<2x512xf32> to vector<2x128xf32>
    %cst_228 = arith.constant dense<0.000000e+00> : vector<2x128xf32>
    %995 = tpu.matmul %882, %7, %cst_228 {dimension_numbers = #tpu.dot_dimension_numbers<[1], [0], [0], [1], [0, 0, 1, 1], [], []>} : vector<2x32xf32>, vector<32x128xf32>, vector<2x128xf32> -> vector<2x128xf32>
    %996 = arith.addf %994, %995 : vector<2x128xf32>
    %997 = vector.extract_strided_slice %996 {offsets = [0, 0], sizes = [2, 32], strides = [1, 1]} : vector<2x128xf32> to vector<2x32xf32>
    %998 = arith.negf %997 : vector<2x32xf32>
    %999 = math.exp %998 : vector<2x32xf32>
    %cst_229 = arith.constant 1.000000e+00 : f32
    %1000 = vector.broadcast %cst_229 : f32 to vector<2x32xf32>
    %1001 = arith.addf %1000, %999 : vector<2x32xf32>
    %1002 = arith.divf %1000, %1001 : vector<2x32xf32>
    %1003 = vector.extract_strided_slice %996 {offsets = [0, 32], sizes = [2, 32], strides = [1, 1]} : vector<2x128xf32> to vector<2x32xf32>
    %1004 = arith.negf %1003 : vector<2x32xf32>
    %1005 = math.exp %1004 : vector<2x32xf32>
    %cst_230 = arith.constant 1.000000e+00 : f32
    %1006 = vector.broadcast %cst_230 : f32 to vector<2x32xf32>
    %1007 = arith.addf %1006, %1005 : vector<2x32xf32>
    %1008 = arith.divf %1006, %1007 : vector<2x32xf32>
    %1009 = vector.extract_strided_slice %996 {offsets = [0, 64], sizes = [2, 32], strides = [1, 1]} : vector<2x128xf32> to vector<2x32xf32>
    %1010 = math.tanh %1009 : vector<2x32xf32>
    %1011 = vector.extract_strided_slice %996 {offsets = [0, 96], sizes = [2, 32], strides = [1, 1]} : vector<2x128xf32> to vector<2x32xf32>
    %1012 = arith.negf %1011 : vector<2x32xf32>
    %1013 = math.exp %1012 : vector<2x32xf32>
    %cst_231 = arith.constant 1.000000e+00 : f32
    %1014 = vector.broadcast %cst_231 : f32 to vector<2x32xf32>
    %1015 = arith.addf %1014, %1013 : vector<2x32xf32>
    %1016 = arith.divf %1014, %1015 : vector<2x32xf32>
    %1017 = arith.mulf %1008, %880 : vector<2x32xf32>
    %1018 = arith.mulf %1002, %1010 : vector<2x32xf32>
    %1019 = arith.addf %1017, %1018 : vector<2x32xf32>
    %1020 = math.tanh %1019 : vector<2x32xf32>
    %1021 = arith.mulf %1016, %1020 : vector<2x32xf32>
    %1022 = vector.extract_strided_slice %993 {offsets = [0, 128], sizes = [2, 128], strides = [1, 1]} : vector<2x512xf32> to vector<2x128xf32>
    %cst_232 = arith.constant dense<0.000000e+00> : vector<2x128xf32>
    %1023 = tpu.matmul %910, %8, %cst_232 {dimension_numbers = #tpu.dot_dimension_numbers<[1], [0], [0], [1], [0, 0, 1, 1], [], []>} : vector<2x32xf32>, vector<32x128xf32>, vector<2x128xf32> -> vector<2x128xf32>
    %1024 = arith.addf %1022, %1023 : vector<2x128xf32>
    %1025 = vector.extract_strided_slice %1024 {offsets = [0, 0], sizes = [2, 32], strides = [1, 1]} : vector<2x128xf32> to vector<2x32xf32>
    %1026 = arith.negf %1025 : vector<2x32xf32>
    %1027 = math.exp %1026 : vector<2x32xf32>
    %cst_233 = arith.constant 1.000000e+00 : f32
    %1028 = vector.broadcast %cst_233 : f32 to vector<2x32xf32>
    %1029 = arith.addf %1028, %1027 : vector<2x32xf32>
    %1030 = arith.divf %1028, %1029 : vector<2x32xf32>
    %1031 = vector.extract_strided_slice %1024 {offsets = [0, 32], sizes = [2, 32], strides = [1, 1]} : vector<2x128xf32> to vector<2x32xf32>
    %1032 = arith.negf %1031 : vector<2x32xf32>
    %1033 = math.exp %1032 : vector<2x32xf32>
    %cst_234 = arith.constant 1.000000e+00 : f32
    %1034 = vector.broadcast %cst_234 : f32 to vector<2x32xf32>
    %1035 = arith.addf %1034, %1033 : vector<2x32xf32>
    %1036 = arith.divf %1034, %1035 : vector<2x32xf32>
    %1037 = vector.extract_strided_slice %1024 {offsets = [0, 64], sizes = [2, 32], strides = [1, 1]} : vector<2x128xf32> to vector<2x32xf32>
    %1038 = math.tanh %1037 : vector<2x32xf32>
    %1039 = vector.extract_strided_slice %1024 {offsets = [0, 96], sizes = [2, 32], strides = [1, 1]} : vector<2x128xf32> to vector<2x32xf32>
    %1040 = arith.negf %1039 : vector<2x32xf32>
    %1041 = math.exp %1040 : vector<2x32xf32>
    %cst_235 = arith.constant 1.000000e+00 : f32
    %1042 = vector.broadcast %cst_235 : f32 to vector<2x32xf32>
    %1043 = arith.addf %1042, %1041 : vector<2x32xf32>
    %1044 = arith.divf %1042, %1043 : vector<2x32xf32>
    %1045 = arith.mulf %1036, %908 : vector<2x32xf32>
    %1046 = arith.mulf %1030, %1038 : vector<2x32xf32>
    %1047 = arith.addf %1045, %1046 : vector<2x32xf32>
    %1048 = math.tanh %1047 : vector<2x32xf32>
    %1049 = arith.mulf %1044, %1048 : vector<2x32xf32>
    %1050 = vector.extract_strided_slice %990 {offsets = [0, 256], sizes = [2, 96], strides = [1, 1]} : vector<2x512xf32> to vector<2x96xf32>
    %cst_236 = arith.constant dense<0.000000e+00> : vector<2x96xf32>
    %1051 = tpu.matmul %940, %9, %cst_236 {dimension_numbers = #tpu.dot_dimension_numbers<[1], [0], [0], [1], [0, 0, 1, 1], [], []>} : vector<2x32xf32>, vector<32x96xf32>, vector<2x96xf32> -> vector<2x96xf32>
    %1052 = vector.broadcast %11 : vector<1x96xf32> to vector<2x96xf32>
    %1053 = arith.addf %1051, %1052 : vector<2x96xf32>
    %1054 = vector.extract_strided_slice %1050 {offsets = [0, 0], sizes = [2, 32], strides = [1, 1]} : vector<2x96xf32> to vector<2x32xf32>
    %1055 = vector.extract_strided_slice %1053 {offsets = [0, 0], sizes = [2, 32], strides = [1, 1]} : vector<2x96xf32> to vector<2x32xf32>
    %1056 = arith.addf %1054, %1055 : vector<2x32xf32>
    %1057 = arith.negf %1056 : vector<2x32xf32>
    %1058 = math.exp %1057 : vector<2x32xf32>
    %cst_237 = arith.constant 1.000000e+00 : f32
    %1059 = vector.broadcast %cst_237 : f32 to vector<2x32xf32>
    %1060 = arith.addf %1059, %1058 : vector<2x32xf32>
    %1061 = arith.divf %1059, %1060 : vector<2x32xf32>
    %1062 = vector.extract_strided_slice %1050 {offsets = [0, 32], sizes = [2, 32], strides = [1, 1]} : vector<2x96xf32> to vector<2x32xf32>
    %1063 = vector.extract_strided_slice %1053 {offsets = [0, 32], sizes = [2, 32], strides = [1, 1]} : vector<2x96xf32> to vector<2x32xf32>
    %1064 = arith.addf %1062, %1063 : vector<2x32xf32>
    %1065 = arith.negf %1064 : vector<2x32xf32>
    %1066 = math.exp %1065 : vector<2x32xf32>
    %cst_238 = arith.constant 1.000000e+00 : f32
    %1067 = vector.broadcast %cst_238 : f32 to vector<2x32xf32>
    %1068 = arith.addf %1067, %1066 : vector<2x32xf32>
    %1069 = arith.divf %1067, %1068 : vector<2x32xf32>
    %1070 = vector.extract_strided_slice %1050 {offsets = [0, 64], sizes = [2, 32], strides = [1, 1]} : vector<2x96xf32> to vector<2x32xf32>
    %1071 = vector.extract_strided_slice %1053 {offsets = [0, 64], sizes = [2, 32], strides = [1, 1]} : vector<2x96xf32> to vector<2x32xf32>
    %1072 = arith.mulf %1061, %1071 : vector<2x32xf32>
    %1073 = arith.addf %1070, %1072 : vector<2x32xf32>
    %1074 = math.tanh %1073 : vector<2x32xf32>
    %cst_239 = arith.constant 1.000000e+00 : f32
    %1075 = vector.broadcast %cst_239 : f32 to vector<2x32xf32>
    %1076 = arith.subf %1075, %1069 : vector<2x32xf32>
    %1077 = arith.mulf %1076, %1074 : vector<2x32xf32>
    %1078 = arith.mulf %1069, %940 : vector<2x32xf32>
    %1079 = arith.addf %1077, %1078 : vector<2x32xf32>
    %1080 = vector.extract_strided_slice %993 {offsets = [0, 384], sizes = [2, 96], strides = [1, 1]} : vector<2x512xf32> to vector<2x96xf32>
    %cst_240 = arith.constant dense<0.000000e+00> : vector<2x96xf32>
    %1081 = tpu.matmul %970, %10, %cst_240 {dimension_numbers = #tpu.dot_dimension_numbers<[1], [0], [0], [1], [0, 0, 1, 1], [], []>} : vector<2x32xf32>, vector<32x96xf32>, vector<2x96xf32> -> vector<2x96xf32>
    %1082 = vector.broadcast %12 : vector<1x96xf32> to vector<2x96xf32>
    %1083 = arith.addf %1081, %1082 : vector<2x96xf32>
    %1084 = vector.extract_strided_slice %1080 {offsets = [0, 0], sizes = [2, 32], strides = [1, 1]} : vector<2x96xf32> to vector<2x32xf32>
    %1085 = vector.extract_strided_slice %1083 {offsets = [0, 0], sizes = [2, 32], strides = [1, 1]} : vector<2x96xf32> to vector<2x32xf32>
    %1086 = arith.addf %1084, %1085 : vector<2x32xf32>
    %1087 = arith.negf %1086 : vector<2x32xf32>
    %1088 = math.exp %1087 : vector<2x32xf32>
    %cst_241 = arith.constant 1.000000e+00 : f32
    %1089 = vector.broadcast %cst_241 : f32 to vector<2x32xf32>
    %1090 = arith.addf %1089, %1088 : vector<2x32xf32>
    %1091 = arith.divf %1089, %1090 : vector<2x32xf32>
    %1092 = vector.extract_strided_slice %1080 {offsets = [0, 32], sizes = [2, 32], strides = [1, 1]} : vector<2x96xf32> to vector<2x32xf32>
    %1093 = vector.extract_strided_slice %1083 {offsets = [0, 32], sizes = [2, 32], strides = [1, 1]} : vector<2x96xf32> to vector<2x32xf32>
    %1094 = arith.addf %1092, %1093 : vector<2x32xf32>
    %1095 = arith.negf %1094 : vector<2x32xf32>
    %1096 = math.exp %1095 : vector<2x32xf32>
    %cst_242 = arith.constant 1.000000e+00 : f32
    %1097 = vector.broadcast %cst_242 : f32 to vector<2x32xf32>
    %1098 = arith.addf %1097, %1096 : vector<2x32xf32>
    %1099 = arith.divf %1097, %1098 : vector<2x32xf32>
    %1100 = vector.extract_strided_slice %1080 {offsets = [0, 64], sizes = [2, 32], strides = [1, 1]} : vector<2x96xf32> to vector<2x32xf32>
    %1101 = vector.extract_strided_slice %1083 {offsets = [0, 64], sizes = [2, 32], strides = [1, 1]} : vector<2x96xf32> to vector<2x32xf32>
    %1102 = arith.mulf %1091, %1101 : vector<2x32xf32>
    %1103 = arith.addf %1100, %1102 : vector<2x32xf32>
    %1104 = math.tanh %1103 : vector<2x32xf32>
    %cst_243 = arith.constant 1.000000e+00 : f32
    %1105 = vector.broadcast %cst_243 : f32 to vector<2x32xf32>
    %1106 = arith.subf %1105, %1099 : vector<2x32xf32>
    %1107 = arith.mulf %1106, %1104 : vector<2x32xf32>
    %1108 = arith.mulf %1099, %970 : vector<2x32xf32>
    %1109 = arith.addf %1107, %1108 : vector<2x32xf32>
    %1110 = arith.index_cast %c7_i32_222 : i32 to index
    %c0_244 = arith.constant 0 : index
    %c0_245 = arith.constant 0 : index
    %1111 = vector.load %arg13[%1110, %c0_244, %c0_245] : memref<8x2x32xf32, #tpu.memory_space<vmem>>, vector<1x2x32xf32>
    %1112 = vector.shape_cast %1111 : vector<1x2x32xf32> to vector<2x32xf32>
    %1113 = vector.shape_cast %1021 : vector<2x32xf32> to vector<1x2x32xf32>
    tpu.vector_store %arg13[%1110, %c0_244, %c0_245], %1113 {strides = array<i32>} : memref<8x2x32xf32, #tpu.memory_space<vmem>>, vector<1x2x32xf32>,
    %1114 = arith.index_cast %987 : i32 to index
    %c0_246 = arith.constant 0 : index
    %c0_247 = arith.constant 0 : index
    %1115 = vector.load %arg14[%1114, %c0_246, %c0_247] : memref<8x2x32xf32, #tpu.memory_space<vmem>>, vector<1x2x32xf32>
    %1116 = vector.shape_cast %1115 : vector<1x2x32xf32> to vector<2x32xf32>
    %1117 = vector.shape_cast %1049 : vector<2x32xf32> to vector<1x2x32xf32>
    tpu.vector_store %arg14[%1114, %c0_246, %c0_247], %1117 {strides = array<i32>} : memref<8x2x32xf32, #tpu.memory_space<vmem>>, vector<1x2x32xf32>,
    %1118 = arith.index_cast %c7_i32_222 : i32 to index
    %c0_248 = arith.constant 0 : index
    %c0_249 = arith.constant 0 : index
    %1119 = vector.load %arg15[%1118, %c0_248, %c0_249] : memref<8x2x32xf32, #tpu.memory_space<vmem>>, vector<1x2x32xf32>
    %1120 = vector.shape_cast %1119 : vector<1x2x32xf32> to vector<2x32xf32>
    %1121 = vector.shape_cast %1079 : vector<2x32xf32> to vector<1x2x32xf32>
    tpu.vector_store %arg15[%1118, %c0_248, %c0_249], %1121 {strides = array<i32>} : memref<8x2x32xf32, #tpu.memory_space<vmem>>, vector<1x2x32xf32>,
    %1122 = arith.index_cast %987 : i32 to index
    %c0_250 = arith.constant 0 : index
    %c0_251 = arith.constant 0 : index
    %1123 = vector.load %arg16[%1122, %c0_250, %c0_251] : memref<8x2x32xf32, #tpu.memory_space<vmem>>, vector<1x2x32xf32>
    %1124 = vector.shape_cast %1123 : vector<1x2x32xf32> to vector<2x32xf32>
    %1125 = vector.shape_cast %1109 : vector<2x32xf32> to vector<1x2x32xf32>
    tpu.vector_store %arg16[%1122, %c0_250, %c0_251], %1125 {strides = array<i32>} : memref<8x2x32xf32, #tpu.memory_space<vmem>>, vector<1x2x32xf32>,
    %c8_i32 = arith.constant 8 : i32
    %c0_252 = arith.constant 0 : index
    %c0_253 = arith.constant 0 : index
    %c0_254 = arith.constant 0 : index
    %1126 = vector.load %arg13[%c0_252, %c0_253, %c0_254] : memref<8x2x32xf32, #tpu.memory_space<vmem>>, vector<8x2x32xf32>
    %c0_255 = arith.constant 0 : index
    %c0_256 = arith.constant 0 : index
    %c0_257 = arith.constant 0 : index
    %1127 = vector.load %arg14[%c0_255, %c0_256, %c0_257] : memref<8x2x32xf32, #tpu.memory_space<vmem>>, vector<8x2x32xf32>
    %1128 = tpu.concatenate %1126, %1127 in 2 : vector<8x2x32xf32>, vector<8x2x32xf32> -> vector<8x2x64xf32>
    %c0_258 = arith.constant 0 : index
    %c0_259 = arith.constant 0 : index
    %c0_260 = arith.constant 0 : index
    %1129 = vector.load %arg15[%c0_258, %c0_259, %c0_260] : memref<8x2x32xf32, #tpu.memory_space<vmem>>, vector<8x2x32xf32>
    %c0_261 = arith.constant 0 : index
    %c0_262 = arith.constant 0 : index
    %c0_263 = arith.constant 0 : index
    %1130 = vector.load %arg16[%c0_261, %c0_262, %c0_263] : memref<8x2x32xf32, #tpu.memory_space<vmem>>, vector<8x2x32xf32>
    %1131 = tpu.concatenate %1129, %1130 in 2 : vector<8x2x32xf32>, vector<8x2x32xf32> -> vector<8x2x64xf32>
    "tpu.trace_start"() <{level = 10 : i32, message = "sbd,scd->sbc"}> : () -> ()
    %cst_264 = arith.constant dense<0.000000e+00> : vector<8x2x2xf32>
    %1132 = tpu.matmul %1128, %1131, %cst_264 {dimension_numbers = #tpu.dot_dimension_numbers<[2], [2], [1], [1], [0, 0, 0, 1, 1, 1], [0], [0]>} : vector<8x2x64xf32>, vector<8x2x64xf32>, vector<8x2x2xf32> -> vector<8x2x2xf32>
    "tpu.trace_stop"() : () -> ()
    %cst_265 = arith.constant 1.000000e+00 : f32
    %1133 = vector.broadcast %cst_265 : f32 to vector<8x2x2xf32>
    %1134 = arith.mulf %1132, %1133 : vector<8x2x2xf32>
    %cst_266 = arith.constant dense<0xFF800000> : vector<8x2xf32>
    %1135 = vector.multi_reduction <maximumf>, %1134, %cst_266 [2] : vector<8x2x2xf32> to vector<8x2xf32>
    %1136 = vector.shape_cast %1135 : vector<8x2xf32> to vector<8x2x1xf32>
    %1137 = vector.broadcast %1136 : vector<8x2x1xf32> to vector<8x2x2xf32>
    %1138 = arith.subf %1134, %1137 : vector<8x2x2xf32>
    %1139 = math.exp %1138 : vector<8x2x2xf32>
    %cst_267 = arith.constant dense<0.000000e+00> : vector<8x2xf32>
    %1140 = vector.multi_reduction <add>, %1139, %cst_267 [2] : vector<8x2x2xf32> to vector<8x2xf32>
    %1141 = vector.shape_cast %1140 : vector<8x2xf32> to vector<8x2x1xf32>
    %1142 = tpu.reciprocal %1141 {approx = true} : vector<8x2x1xf32> -> vector<8x2x1xf32>
    %1143 = arith.mulf %1141, %1142 : vector<8x2x1xf32>
    %cst_268 = arith.constant 2.000000e+00 : f32
    %1144 = vector.broadcast %cst_268 : f32 to vector<8x2x1xf32>
    %1145 = arith.subf %1144, %1143 : vector<8x2x1xf32>
    %1146 = arith.mulf %1142, %1145 : vector<8x2x1xf32>
    %1147 = vector.broadcast %1146 : vector<8x2x1xf32> to vector<8x2x2xf32>
    %1148 = arith.mulf %1139, %1147 : vector<8x2x2xf32>
    "tpu.trace_start"() <{level = 10 : i32, message = "sbc,scd->sbd"}> : () -> ()
    %cst_269 = arith.constant dense<0.000000e+00> : vector<8x2x64xf32>
    %1149 = tpu.matmul %1148, %1128, %cst_269 {dimension_numbers = #tpu.dot_dimension_numbers<[2], [1], [1], [2], [0, 0, 0, 1, 1, 2], [0], [0]>} : vector<8x2x2xf32>, vector<8x2x64xf32>, vector<8x2x64xf32> -> vector<8x2x64xf32>
    "tpu.trace_stop"() : () -> ()
    %cst_270 = arith.constant dense<0.000000e+00> : vector<8x64xf32>
    %1150 = vector.multi_reduction <add>, %1149, %cst_270 [1] : vector<8x2x64xf32> to vector<8x64xf32>
    %cst_271 = arith.constant 2.000000e+00 : f32
    %1151 = vector.broadcast %cst_271 : f32 to vector<8x64xf32>
    %1152 = arith.divf %1150, %1151 : vector<8x64xf32>
    %c0_272 = arith.constant 0 : index
    %c0_273 = arith.constant 0 : index
    %1153 = vector.load %arg9[%c0_272, %c0_273] : memref<64x3xf32, #tpu.memory_space<vmem>>, vector<64x3xf32>
    %cst_274 = arith.constant dense<0.000000e+00> : vector<8x3xf32>
    %1154 = tpu.matmul %1152, %1153, %cst_274 {dimension_numbers = #tpu.dot_dimension_numbers<[1], [0], [0], [1], [0, 0, 1, 1], [], []>} : vector<8x64xf32>, vector<64x3xf32>, vector<8x3xf32> -> vector<8x3xf32>
    %c0_275 = arith.constant 0 : index
    %c0_276 = arith.constant 0 : index
    %1155 = vector.load %arg10[%c0_275, %c0_276] : memref<1x3xf32, #tpu.memory_space<vmem>>, vector<1x3xf32>
    %1156 = vector.broadcast %1155 : vector<1x3xf32> to vector<8x3xf32>
    %1157 = arith.addf %1154, %1156 : vector<8x3xf32>
    %c0_277 = arith.constant 0 : index
    %c0_278 = arith.constant 0 : index
    %1158 = vector.load %arg11[%c0_277, %c0_278] : memref<8x3xf32, #tpu.memory_space<vmem>>, vector<8x3xf32>
    tpu.vector_store %arg11[%c0_277, %c0_278], %1157 {strides = array<i32>} : memref<8x3xf32, #tpu.memory_space<vmem>>, vector<8x3xf32>,
    return
  }
}

</mosaic_0001>

<bundles_post_ra>
// kernel: my_lstm_forward.1
= control target key start
LH: loop header
LB: loop body
LE: loop exit
PB: predicated region body
PF: predicated region fallthrough
CT: control target
= control target key end

     0   :  { %vm75_vm0 = vcmask 1043456   ;;  %v6652_v2 = vmov 0.0   ;;  %vm68_vm1 = vcmask 31744   ;;  %v6653_v16 = vmov 0.0|0.0   ;;  %s6655_s15 = smov 64   ;;  %s6656_s16 = smov 32   ;;  %s7673_s1 = inlined_call_operand.vmem [shape: f32[4,512], index: 1, kind: input, shape index: {}]   ;;  %s7674_s0 = inlined_call_operand.vmem [shape: f32[16,4], index: 0, kind: input, shape index: {}]   ;;  %s7675_s3 = inlined_call_operand.vmem [shape: f32[32,128], index: 3, kind: input, shape index: {}]   ;;  %s7676_s5 = inlined_call_operand.vmem [shape: f32[32,96], index: 5, kind: input, shape index: {}]   ;;  %s7677_s4 = inlined_call_operand.vmem [shape: f32[32,128], index: 4, kind: input, shape index: {}]   ;;  %s7678_s6 = inlined_call_operand.vmem [shape: f32[32,96], index: 6, kind: input, shape index: {}]   ;;  %s7679_s2 = inlined_call_operand.vmem [shape: f32[1,512], index: 2, kind: input, shape index: {}]   ;;  %s7680_s8 = inlined_call_operand.vmem [shape: f32[1,96], index: 8, kind: input, shape index: {}]   ;;  %s7681_s7 = inlined_call_operand.vmem [shape: f32[1,96], index: 7, kind: input, shape index: {}]   ;;  %s7682_s9 = inlined_call_operand.vmem [shape: f32[64,3], index: 9, kind: input, shape index: {}]   ;;  %s7683_s10 = inlined_call_operand.vmem [shape: f32[1,3], index: 10, kind: input, shape index: {}]   ;;  %s7684_s11 = inlined_call_operand.vmem [shape: f32[8,3], index: 11, kind: output, shape index: {}]  }
   0x1   :  { %v40_v0 = vld [vmem:[%s7673_s1] sm:$0xff]  ;;  %v41_v1 = vld [vmem:[%s7673_s1 + $0x8] sm:$0xff]  ;;  %148 = vmatprep.mubr.f32.mxu0 %v6652_v2  ;;  %225 = vmatprep.mubr.f32.mxu1 %v6652_v2  ;;  %v248_v12 = vld [vmem:[%s7675_s3 + $0x10] sm:$0xff]  ;;  %vm6654_vm2 = vmmov 0   ;;  %v44_v32 = vlaneseq  ;;  %s6657_s19 = smov 96   ;;  %vm268_vm3 = vcmask 261120  }
   0x2   :  { %v66_v3 = vcombine.high %v40_v0, %v40_v0  ;;  %v67_v4 = vcombine.high %v41_v1, %v41_v1  ;;  %v246_v5 = vld [vmem:[%s7675_s3] sm:$0xff]  ;;  %v247_v6 = vld [vmem:[%s7675_s3 + $0x8] sm:$0xff]  ;;  %v249_v13 = vld [vmem:[%s7675_s3 + $0x18] sm:$0xff]  ;;  %vm675_vm4 = vcmask 254976   ;;  %vm1120_vm5 = vcmask 257026  }
   0x3   :  { %v254_v7 = vld [vmem:[%s7676_s5] sm:$0xff]  ;;  %v255_v9 = vld [vmem:[%s7676_s5 + $0x8] sm:$0xff]  ;;  %v6743_v10 = vpack.c.bf16 %v247_v6, %v246_v5  ;;  %v256_v14 = vld [vmem:[%s7676_s5 + $0x10] sm:$0xff]  ;;  %v6770_v18 = vpack.c.bf16 %v249_v13, %v248_v12  ;;  %v45_v33 = vshrl.u32 %v44_v32, 7  ;;  %vm1127_vm6 = vcmask 259076  }
   0x4   :  { %v38_v8 = vld [vmem:[%s7674_s0] sm:$0xff]  ;;  %5426 = vmatprep.subr.msk.mxu0 %vm75_vm0, %v66_v3  ;;  %5430 = vmatprep.subr.msk.mxu1 %vm75_vm0, %v67_v4  ;;  %v6745_v11 = vpack.c.bf16 %v255_v9, %v254_v7  ;;  %v257_v15 = vld [vmem:[%s7676_s5 + $0x18] sm:$0xff]  ;;  %v39_v17 = vld [vmem:[%s7674_s0 + $0x8] sm:$0xff]  ;;  %vm682_vm7 = vcmask 261126   ;;  %vm3921_vm8 = vcmask 523264   ;;  %vm4647_vm9 = vcmask 1041408  }
   0x5   :  { %5427 = vmatpush1.msk.msra.mxu0 %vm75_vm0, %v40_v0  ;;  %5431 = vmatpush1.msk.msra.mxu1 %vm75_vm0, %v41_v1  ;;  %v6772_v19 = vpack.c.bf16 %v257_v15, %v256_v14  ;;  %v250_v20 = vld [vmem:[%s7677_s4] sm:$0xff]  ;;  %v251_v21 = vld [vmem:[%s7677_s4 + $0x8] sm:$0xff]  ;;  %v252_v23 = vld [vmem:[%s7677_s4 + $0x10] sm:$0xff]  ;;  %v46_v34 = vsub.s32 0, %v45_v33  ;;  %v54_v35 = vsub.s32 2, %v45_v33  ;;  %v58_v37 = vsub.s32 3, %v45_v33 }
   0x6   :  { %5428 = vmatmul.mubr.msk.f32.vlgmr.msra.gmra.mrb[0].mxu0 %vm68_vm1, %v38_v8  ;;  %5432 = vmatmul.mubr.msk.f32.vlgmr.msra.gmra.mrb[0].mxu1 %vm68_vm1, %v38_v8  ;;  %v6788_v22 = vpack.c.bf16 %v251_v21, %v250_v20  ;;  %v253_v24 = vld [vmem:[%s7677_s4 + $0x18] sm:$0xff]  ;;  %v258_v26 = vld [vmem:[%s7678_s6] sm:$0xff]  ;;  %v259_v27 = vld [vmem:[%s7678_s6 + $0x8] sm:$0xff]  ;;  %v50_v38 = vsub.s32 1, %v45_v33  ;;  %vm4530_vm10 = vcmask 9216   ;;  %vm4643_vm11 = vcmask 15360  }
   0x7   :  { %6182 = vmatprep.subr.bf16.mxu1 %v6653_v16  ;;  %6194 = vmatprep.subr.bf16.mxu0 %v6653_v16  ;;  %v6805_v25 = vpack.c.bf16 %v253_v24, %v252_v23  ;;  %v6821_v28 = vpack.c.bf16 %v259_v27, %v258_v26  ;;  %v260_v29 = vld [vmem:[%s7678_s6 + $0x10] sm:$0xff]  ;;  %v261_v30 = vld [vmem:[%s7678_s6 + $0x18] sm:$0xff]  ;;  %v42_v36 = vld [vmem:[%s7679_s2] sm:$0xf]  ;;  %vm5245_vm12 = vcmask 517120   ;;  %vm5334_vm13 = vcmask 1041409  }
   0x8   :  { %6184 = vmatpush3.bf16.msra.mxu1 %v6743_v10  ;;  %6196 = vmatpush3.bf16.msra.mxu0 %v6745_v11  ;;  %v6834_v31 = vpack.c.bf16 %v261_v30, %v260_v29  ;;  %v47_v39 = vrot.slane %v42_v36, %v46_v34  ;;  %v55_v40 = vrot.slane %v42_v36, %v54_v35  ;;  %v6854_v7 = vld [vmem:[%s7680_s8] ss:$0 sm:$0xff]  ;;  %vm5336_vm14 = vcmask 1042434  }
   0x9   :  { %231 = vmatprep.mubr.f32.mxu1 %v6652_v2  ;;  %154 = vmatprep.mubr.f32.mxu0 %v6652_v2  ;;  %v59_v41 = vrot.slane %v42_v36, %v58_v37  ;;  %v51_v42 = vrot.slane %v42_v36, %v50_v38  ;;  %v6863_v37 = vld [vmem:[%s7681_s7] ss:$0 sm:$0xff]  ;;  %vm5338_vm15 = vcmask 1043459   ;;  %vm5340_vm0 = vcmask 1044484  }
   0xa   :  { %5433 = vmatmul.mubr.msk.f32.gmra.mrb[2].mxu1 %vm68_vm1, %v39_v17  ;;  %6185 = vmatprep.subr.bf16.mxu1 %v6653_v16 }
   0xb   :  { %5429 = vmatmul.mubr.msk.f32.gmra.mrb[2].mxu0 %vm68_vm1, %v39_v17  ;;  %6197 = vmatprep.subr.bf16.mxu0 %v6653_v16  ;;  %vm5342_vm1 = vcmask 1045509  }
   0xc   :  { %6187 = vmatpush3.bf16.msra.mxu1 %v6770_v18  ;;  %6199 = vmatpush3.bf16.msra.mxu0 %v6772_v19 }
   0xd   :  { %5739 = vmatprep.mubr.msk.f32.mxu1 %vm6654_vm2, %v6652_v2  ;;  %6188 = vmatprep.subr.bf16.mxu1 %v6653_v16 }
   0xe   :  { %5761 = vmatprep.mubr.msk.f32.mxu0 %vm6654_vm2, %v6652_v2  ;;  %6206 = vmatprep.subr.bf16.mxu0 %v6653_v16 }
   0xf   :  { %5740 = vmatmul.mubr.f32.vlgmr.msra.gmra.mrb[4].mxu1 %v6652_v2  ;;  %5762 = vmatmul.mubr.f32.vlgmr.msra.gmra.mrb[4].mxu0 %v6652_v2 }
  0x10   :  { %6190 = vmatpush3.bf16.msra.mxu1 %v6788_v22  ;;  %5750 = vmatprep.mubr.msk.f32.mxu1 %vm6654_vm2, %v6652_v2 }
  0x11   :  { %6191 = vmatprep.subr.bf16.mxu1 %v6653_v16  ;;  %6208 = vmatpush3.bf16.msra.mxu0 %v6743_v10 }
  0x12   :  { %6209 = vmatprep.subr.bf16.mxu0 %v6653_v16  ;;  %5783 = vmatprep.mubr.msk.f32.mxu0 %vm6654_vm2, %v6652_v2 }
  0x14   :  { %6193 = vmatpush3.bf16.msra.mxu1 %v6805_v25 }
  0x15   :  { %6200 = vmatprep.subr.bf16.mxu1 %v6653_v16  ;;  %6211 = vmatpush3.bf16.msra.mxu0 %v6770_v18 }
  0x16   :  { %6218 = vmatprep.subr.bf16.mxu0 %v6653_v16 }
  0x17   :  { %5751 = vmatmul.mubr.f32.vlgmr.msra.gmra.mrb[6].mxu1 %v6652_v2 }
  0x18   :  { %6202 = vmatpush3.bf16.msra.mxu1 %v6821_v28  ;;  %5772 = vmatprep.mubr.msk.f32.mxu1 %vm6654_vm2, %v6652_v2 }
  0x19   :  { %6203 = vmatprep.subr.bf16.mxu1 %v6653_v16 }
  0x1c   :  { %6205 = vmatpush3.bf16.msra.mxu1 %v6834_v31 }
  0x1d   :  { %6212 = vmatprep.subr.bf16.mxu1 %v6653_v16 }
  0x1f   :  { %5773 = vmatmul.mubr.f32.vlgmr.msra.gmra.mrb[8].mxu1 %v6652_v2 }
  0x20   :  { %6214 = vmatpush3.bf16.msra.mxu1 %v6788_v22  ;;  %5794 = vmatprep.mubr.msk.f32.mxu1 %vm6654_vm2, %v6652_v2 }
  0x21   :  { %6215 = vmatprep.subr.bf16.mxu1 %v6653_v16 }
  0x24   :  { %6217 = vmatpush3.bf16.msra.mxu1 %v6805_v25 }
  0x25   :  { %6224 = vmatprep.subr.bf16.mxu1 %v6653_v16 }
  0xd9   :  { %v150_v43 = vpop.f32.mrb[0].mxu0  ;;  %v227_v44 = vpop.f32.mrb[0].mxu1 }
  0xda   :  { %v151_v45 = vadd.f32 %v150_v43, %v47_v39  ;;  %v228_v46 = vadd.f32 %v227_v44, %v55_v40  ;;  %v229_v47 = vpop.f32.mrb[1].mxu1  ;;  %v152_v48 = vpop.f32.mrb[1].mxu0 }
  0xdb   :  { %v230_v49 = vadd.f32 %v229_v47, %v59_v41  ;;  %v153_v50 = vadd.f32 %v152_v48, %v51_v42 }
  0xdc   :  { %238 = vst [vmem:[#allocation2] sm:$0xff] %v151_v45  ;;  %240 = vst [vmem:[#allocation2 + $0x10] sm:$0xff] %v228_v46 }
  0xdd   :  { %241 = vst [vmem:[#allocation2 + $0x18] sm:$0xff] %v230_v49  ;;  %239 = vst [vmem:[#allocation2 + $0x8] sm:$0xff] %v153_v50  ;;  %v233_v51 = vpop.f32.mrb[2].mxu1 }
  0xde   :  { %v234_v52 = vadd.f32 %v233_v51, %v55_v40  ;;  %v235_v53 = vpop.f32.mrb[3].mxu1  ;;  %v156_v54 = vpop.f32.mrb[2].mxu0 }
  0xdf   :  { %v236_v55 = vadd.f32 %v235_v53, %v59_v41  ;;  %v157_v56 = vadd.f32 %v156_v54, %v47_v39  ;;  %v158_v57 = vpop.f32.mrb[3].mxu0 }
  0xe0   :  { %244 = vst [vmem:[#allocation2 + $0x30] sm:$0xff] %v234_v52  ;;  %v159_v58 = vadd.f32 %v158_v57, %v51_v42 }
  0xe1   :  { %245 = vst [vmem:[#allocation2 + $0x38] sm:$0xff] %v236_v55  ;;  %242 = vst [vmem:[#allocation2 + $0x20] sm:$0xff] %v157_v56 }
  0xe2   :  { %243 = vst [vmem:[#allocation2 + $0x28] sm:$0xff] %v159_v58  ;;  %v338_v59 = vpop.f32.mrb[4].mxu1  ;;  %v537_v60 = vpop.f32.mrb[4].mxu0 }
  0xe3   :  { %v5741_v61 = vpop.f32.mrb[5].mxu1  ;;  %v5763_v62 = vpop.f32.mrb[5].mxu0  ;;  %v264_v24 = vld [vmem:[#allocation2] sm:$0x3]  ;;  %v538_v38 = vadd.f32 %v6863_v37, %v537_v60  ;;  %v265_v39 = vld [vmem:[#allocation2 + $0x10] sm:$0x3] }
  0xe4   :  { %v342_v27 = vadd.f32 %v338_v59, %v264_v24 }
  0xe5   :  { %v541_v41 = vadd.f32 %v538_v38, %v265_v39 }
  0xe6   :  { %v5434_v40 = vmul.f32 -1.442695, %v342_v27 }
  0xe7   :  { %v5437_v42 = vmul.f32 -1.442695, %v541_v41 }
  0xe8   :  { %v267_v13 = vld [vmem:[#allocation2 + $0x38] sm:$0xc0] }
  0xe9   :  { %v266_v63 = vld [vmem:[#allocation2 + $0x28] sm:$0xc0] }
  0xea   :  { %v433_v0 = vpop.f32.mrb[6].mxu1 }
  0xeb   :  { %v438_v1 = vrot.slane %v433_v0, 2  ;;  %v5752_v3 = vpop.f32.mrb[7].mxu1 }
  0xed   :  { %v440_v4 = vadd.f32 %v438_v1, %v266_v63 }
  0xef   :  { %6394 = vtanh.f32 %v440_v4  ;;  %v5435_v14 = vmul.f32 -1.442695, %v440_v4 }
  0xf1   :  { %6396 = vpow2.f32 %v5435_v14 }
  0xf2   :  { %v639_v5 = vpop.f32.mrb[8].mxu1 }
  0xf3   :  { %v5774_v6 = vpop.f32.mrb[9].mxu1  ;;  %v640_v8 = vadd.f32 %v6854_v7, %v639_v5 }
  0xf5   :  { %v644_v12 = vrot.slane %v640_v8, 2 }
  0xf7   :  { %v646_v15 = vadd.f32 %v644_v12, %v267_v13 }
  0xf9   :  { %v6395_v9 = vpop.eup %6394  ;;  %v5439_v17 = vmul.f32 -1.442695, %v646_v15 }
  0xfa   :  { %450 = vrot.lane.b32.xlu0 %v6395_v9, %s6655_s15 }
  0xfb   :  { %6398 = vpow2.f32 %v5439_v17  ;;  %v6397_v20 = vpop.eup %6396 }
  0xfc   :  { %v444_v21 = vadd.f32 1.0, %v6397_v20 }
  0xfe   :  { %653 = vrot.lane.b32.xlu0 %v644_v12, %s6655_s15  ;;  %6400 = vrcp.f32 %v444_v21 }
 0x105   :  { %v6399_v23 = vpop.eup %6398 }
 0x106   :  { %v650_v26 = vadd.f32 1.0, %v6399_v23 }
 0x108   :  { %6402 = vrcp.f32 %v650_v26  ;;  %v6401_v29 = vpop.eup %6400 }
 0x109   :  { %6404 = vtanh.f32 %v342_v27  ;;  %v448_v47 = vmul.f32 0.0, %v6401_v29 }
 0x10a   :  { %6406 = vpow2.f32 %v5434_v40 }
 0x10b   :  { %6408 = vpow2.f32 %v5437_v42 }
 0x112   :  { %v6403_v33 = vpop.eup %6402 }
 0x113   :  { %v6405_v36 = vpop.eup %6404  ;;  %v663_v5 = vsub.f32 1.0, %v6403_v33  ;;  %v669_v8 = vmul.f32 0.0, %v6403_v33 }
 0x114   :  { %v6407_v43 = vpop.eup %6406 }
 0x115   :  { %v346_v44 = vadd.f32 1.0, %v6407_v43  ;;  %v6409_v45 = vpop.eup %6408 }
 0x116   :  { %v545_v46 = vadd.f32 1.0, %v6409_v45  ;;  %v698_v45 = vld [vmem:[#allocation2 + $0x38] sm:$0x30] }
 0x117   :  { %6410 = vrcp.f32 %v346_v44 }
 0x118   :  { %6412 = vrcp.f32 %v545_v46 }
 0x121   :  { %v6411_v50 = vpop.eup %6410 }
 0x122   :  { %v6413_v55 = vpop.eup %6412  ;;  %v350_v60 = vmul.f32 0.0, %v6411_v50 }
 0x123   :  { %v559_v23 = vsub.f32 1.0, %v6413_v55  ;;  %v565_v27 = vmul.f32 0.0, %v6413_v55 }
 0x16c   :  { %v451_v30 = vpop.permute.xlu0 %450 }
 0x16d   :  { %v453_v32 = vmul.f32 %v6401_v29, %v451_v30 }
 0x16f   :  { %455 = vrot.lane.b32.xlu1 %v453_v32, %s6656_s16 }
 0x170   :  { %v654_v34 = vpop.permute.xlu0 %653 }
 0x171   :  { %v656_v35 = vmul.f32 %v6403_v33, %v654_v34 }
 0x173   :  { %658 = vrot.lane.b32.xlu0 %v656_v35, %s6655_s15  ;;  %352 = vrot.lane.b32.xlu1 %v6405_v36, %s6655_s15 }
 0x177   :  { %549 = vrot.lane.b32.xlu1 %v538_v38, %s6655_s15  ;;  %v697_v38 = vld [vmem:[#allocation2 + $0x28] sm:$0x30] }
 0x1e1   :  { %v456_v48 = vpop.permute.xlu1 %455 }
 0x1e2   :  { %v6869_v49 = vadd.f32 %v456_v48, %v448_v47 }
 0x1e4   :  { %6414 = vtanh.f32 %v6869_v49 }
 0x1e5   :  { %v659_v51 = vpop.permute.xlu0 %658  ;;  %v353_v52 = vpop.permute.xlu1 %352 }
 0x1e6   :  { %v661_v53 = vadd.f32 %v659_v51, %v267_v13  ;;  %v355_v54 = vmul.f32 %v6411_v50, %v353_v52 }
 0x1e8   :  { %6416 = vtanh.f32 %v661_v53  ;;  %357 = vrot.lane.b32.xlu0 %v355_v54, %s6656_s16 }
 0x1e9   :  { %v550_v56 = vpop.permute.xlu1 %549 }
 0x1ea   :  { %v552_v57 = vmul.f32 %v6413_v55, %v550_v56 }
 0x1ec   :  { %554 = vrot.lane.b32.xlu0 %v552_v57, %s6655_s15  ;;  %v695_v57 = vld [vmem:[#allocation2] sm:$0xc] }
 0x1ee   :  { %v6415_v58 = vpop.eup %6414 }
 0x1ef   :  { %461 = vrot.lane.b32.xlu1 %v6415_v58, %s6655_s15 }
 0x1f2   :  { %v6417_v59 = vpop.eup %6416 }
 0x1f3   :  { %665 = vrot.lane.b32.xlu1 %v6417_v59, %s6657_s19 }
 0x25a   :  { %v358_v61 = vpop.permute.xlu0 %357 }
 0x25b   :  { %v6876_v62 = vadd.f32 %v358_v61, %v350_v60 }
 0x25d   :  { %6418 = vtanh.f32 %v6876_v62 }
 0x25e   :  { %v555_v63 = vpop.permute.xlu0 %554 }
 0x25f   :  { %v557_v0 = vadd.f32 %v555_v63, %v265_v39 }
 0x261   :  { %6420 = vtanh.f32 %v557_v0  ;;  %v462_v1 = vpop.permute.xlu1 %461 }
 0x262   :  { %v6879_v3 = vmul.f32 %v6401_v29, %v462_v1 }
 0x264   :  { %v802_v4 = vrot.slane %v6879_v3, 6 }
 0x265   :  { %v666_v6 = vpop.permute.xlu1 %665 }
 0x266   :  { %v668_v9 = vmul.f32 %v666_v6, %v663_v5  ;;  %803 = vrot.lane.b32.xlu0 %v802_v4, %s6656_s16 }
 0x267   :  { %v6419_v12 = vpop.eup %6418 }
 0x268   :  { %v6883_v13 = vadd.f32 %v669_v8, %v668_v9  ;;  %363 = vrot.lane.b32.xlu1 %v6419_v12, %s6655_s15  ;;  %v696_v12 = vld [vmem:[#allocation2 + $0x10] sm:$0xc] }
 0x26a   :  { %v1010_v14 = vrot.slane %v6883_v13, 6 }
 0x26b   :  { %v6421_v15 = vpop.eup %6420 }
 0x26c   :  { %1011 = vrot.lane.b32.xlu0 %v1010_v14, %s6657_s19  ;;  %561 = vrot.lane.b32.xlu1 %v6421_v15, %s6657_s19 }
 0x2d8   :  { %v804_v17 = vpop.permute.xlu0 %803 }
 0x2d9   :  { %5795 = vmatmul.mubr.msk.f32.vlgmr.msra.gmra.mrb[10].mxu1 %vm268_vm3, %v804_v17 }
 0x2da   :  { %6226 = vmatpush3.bf16.msra.mxu1 %v6821_v28  ;;  %v364_v20 = vpop.permute.xlu1 %363  ;;  %5816 = vmatprep.mubr.msk.f32.mxu1 %vm6654_vm2, %v6652_v2 }
 0x2db   :  { %v366_v21 = vmul.f32 %v6411_v50, %v364_v20  ;;  %6227 = vmatprep.subr.bf16.mxu1 %v6653_v16 }
 0x2dd   :  { %672 = vrot.lane.b32.xlu0 %v366_v21, %s6656_s16 }
 0x2de   :  { %6229 = vmatpush3.bf16.msra.mxu1 %v6834_v31  ;;  %v1012_v24 = vpop.permute.xlu0 %1011  ;;  %v562_v26 = vpop.permute.xlu1 %561 }
 0x2df   :  { %v564_v29 = vmul.f32 %v562_v26, %v559_v23  ;;  %6236 = vmatprep.subr.bf16.mxu1 %v6653_v16  ;;  %v889_v26 = vrot.slane %v6869_v49, 2 }
 0x2e1   :  { %v6897_v30 = vadd.f32 %v565_v27, %v564_v29  ;;  %5817 = vmatmul.mubr.msk.f32.vlgmr.msra.gmra.mrb[12].mxu1 %vm268_vm3, %v1012_v24 }
 0x2e2   :  { %6238 = vmatpush3.bf16.msra.mxu1 %v6788_v22  ;;  %5838 = vmatprep.mubr.msk.f32.mxu1 %vm6654_vm2, %v6652_v2 }
 0x2e3   :  { %685 = vrot.lane.b32.xlu1 %v6897_v30, %s6657_s19  ;;  %6239 = vmatprep.subr.bf16.mxu1 %v6653_v16 }
 0x2e6   :  { %6241 = vmatpush3.bf16.msra.mxu1 %v6805_v25 }
 0x2e7   :  { %6248 = vmatprep.subr.bf16.mxu1 %v6653_v16 }
 0x34f   :  { %v673_v32 = vpop.permute.xlu0 %672 }
 0x350   :  { %676 = vst.msk [vmem:[#allocation3] sm:$0x3] %vm675_vm4, %v673_v32  ;;  %5784 = vmatmul.mubr.msk.f32.vlgmr.msra.gmra.mrb[6].mxu0 %vm268_vm3, %v673_v32 }
 0x351   :  { %6220 = vmatpush3.bf16.msra.mxu0 %v6745_v11  ;;  %5805 = vmatprep.mubr.msk.f32.mxu0 %vm6654_vm2, %v6652_v2 }
 0x352   :  { %6221 = vmatprep.subr.bf16.mxu0 %v6653_v16 }
 0x355   :  { %6223 = vmatpush3.bf16.msra.mxu0 %v6772_v19  ;;  %v686_v33 = vpop.permute.xlu1 %685 }
 0x356   :  { %688 = vst.msk [vmem:[#allocation5] sm:$0x3] %vm675_vm4, %v686_v33  ;;  %6230 = vmatprep.subr.bf16.mxu0 %v6653_v16 }
 0x358   :  { %5806 = vmatmul.mubr.msk.f32.vlgmr.msra.gmra.mrb[8].mxu0 %vm268_vm3, %v686_v33 }
 0x359   :  { %6232 = vmatpush3.bf16.msra.mxu0 %v6743_v10  ;;  %5827 = vmatprep.mubr.msk.f32.mxu0 %vm6654_vm2, %v6652_v2 }
 0x35a   :  { %6233 = vmatprep.subr.bf16.mxu0 %v6653_v16 }
 0x35d   :  { %6235 = vmatpush3.bf16.msra.mxu0 %v6770_v18 }
 0x35e   :  { %6242 = vmatprep.subr.bf16.mxu0 %v6653_v16 }
 0x3ac   :  { %v873_v34 = vpop.f32.mrb[10].mxu1 }
 0x3ad   :  { %v878_v35 = vrot.slane %v873_v34, 4  ;;  %v5796_v36 = vpop.f32.mrb[11].mxu1 }
 0x3af   :  { %v880_v39 = vadd.f32 %v878_v35, %v697_v38 }
 0x3b1   :  { %6422 = vtanh.f32 %v880_v39  ;;  %v5443_v47 = vmul.f32 -1.442695, %v880_v39 }
 0x3b3   :  { %6424 = vpow2.f32 %v5443_v47 }
 0x3b4   :  { %v1081_v40 = vpop.f32.mrb[12].mxu1 }
 0x3b5   :  { %v1082_v41 = vadd.f32 %v6854_v7, %v1081_v40  ;;  %v5818_v42 = vpop.f32.mrb[13].mxu1 }
 0x3b7   :  { %v1086_v43 = vrot.slane %v1082_v41, 4 }
 0x3b9   :  { %1095 = vrot.lane.b32.xlu1 %v1086_v43, %s6655_s15  ;;  %v1088_v46 = vadd.f32 %v1086_v43, %v698_v45  ;;  %v783_v43 = vrot.slane %v6876_v62, 6 }
 0x3bb   :  { %v6423_v44 = vpop.eup %6422  ;;  %v5447_v48 = vmul.f32 -1.442695, %v1088_v46 }
 0x3bc   :  { %893 = vrot.lane.b32.xlu0 %v6423_v44, %s6655_s15 }
 0x3bd   :  { %6426 = vpow2.f32 %v5447_v48  ;;  %v6425_v50 = vpop.eup %6424 }
 0x3be   :  { %v884_v52 = vadd.f32 1.0, %v6425_v50 }
 0x3c0   :  { %6428 = vrcp.f32 %v884_v52 }
 0x3c7   :  { %v6427_v51 = vpop.eup %6426 }
 0x3c8   :  { %v1092_v53 = vadd.f32 1.0, %v6427_v51 }
 0x3ca   :  { %6430 = vrcp.f32 %v1092_v53  ;;  %v6429_v61 = vpop.eup %6428 }
 0x3cb   :  { %v891_v27 = vmul.f32 %v6429_v61, %v889_v26 }
 0x3d4   :  { %v6431_v4 = vpop.eup %6430 }
 0x3d5   :  { %v1105_v53 = vsub.f32 1.0, %v6431_v4 }
 0x423   :  { %v767_v54 = vpop.f32.mrb[6].mxu0 }
 0x424   :  { %v772_v55 = vrot.slane %v767_v54, 6  ;;  %v5785_v56 = vpop.f32.mrb[7].mxu0  ;;  %v1111_v54 = vrot.slane %v6883_v13, 2 }
 0x426   :  { %v774_v58 = vadd.f32 %v772_v55, %v695_v57  ;;  %v1113_v62 = vmul.f32 %v6431_v4, %v1111_v54 }
 0x428   :  { %6432 = vtanh.f32 %v774_v58  ;;  %v5441_v14 = vmul.f32 -1.442695, %v774_v58 }
 0x42a   :  { %6434 = vpow2.f32 %v5441_v14 }
 0x42b   :  { %v976_v59 = vpop.f32.mrb[8].mxu0  ;;  %v1096_v1 = vpop.permute.xlu1 %1095 }
 0x42c   :  { %v5807_v60 = vpop.f32.mrb[9].mxu0  ;;  %v977_v5 = vadd.f32 %v6863_v37, %v976_v59  ;;  %v1098_v8 = vmul.f32 %v6431_v4, %v1096_v1  ;;  %v1006_v1 = vrot.slane %v6897_v30, 6 }
 0x42e   :  { %v894_v63 = vpop.permute.xlu0 %893  ;;  %v981_v9 = vrot.slane %v977_v5, 6 }
 0x42f   :  { %v896_v0 = vmul.f32 %v6429_v61, %v894_v63 }
 0x430   :  { %v983_v15 = vadd.f32 %v981_v9, %v696_v12 }
 0x431   :  { %898 = vrot.lane.b32.xlu0 %v896_v0, %s6656_s16 }
 0x432   :  { %v6433_v6 = vpop.eup %6432  ;;  %v5445_v17 = vmul.f32 -1.442695, %v983_v15 }
 0x433   :  { %787 = vrot.lane.b32.xlu1 %v6433_v6, %s6655_s15 }
 0x434   :  { %6436 = vpow2.f32 %v5445_v17  ;;  %v6435_v20 = vpop.eup %6434 }
 0x435   :  { %1100 = vrot.lane.b32.xlu0 %v1098_v8, %s6655_s15  ;;  %v778_v21 = vadd.f32 1.0, %v6435_v20 }
 0x437   :  { %990 = vrot.lane.b32.xlu1 %v981_v9, %s6655_s15  ;;  %6438 = vrcp.f32 %v778_v21 }
 0x43e   :  { %v6437_v23 = vpop.eup %6436 }
 0x43f   :  { %v987_v24 = vadd.f32 1.0, %v6437_v23 }
 0x441   :  { %6440 = vrcp.f32 %v987_v24  ;;  %v6439_v33 = vpop.eup %6438  ;;  %v1143_v24 = vld [vmem:[#allocation2 + $0x28] sm:$0xc] }
 0x442   :  { %v785_v44 = vmul.f32 %v6439_v33, %v783_v43 }
 0x44b   :  { %v6441_v39 = vpop.eup %6440 }
 0x44c   :  { %v1000_v5 = vsub.f32 1.0, %v6441_v39  ;;  %v1008_v9 = vmul.f32 %v6441_v39, %v1006_v1  ;;  %v1142_v1 = vld [vmem:[#allocation2 + $0x10] sm:$0x30] }
 0x4a3   :  { %v899_v29 = vpop.permute.xlu0 %898 }
 0x4a4   :  { %v6933_v32 = vadd.f32 %v899_v29, %v891_v27 }
 0x4a5   :  { %v788_v34 = vpop.permute.xlu1 %787 }
 0x4a6   :  { %6442 = vtanh.f32 %v6933_v32  ;;  %v790_v35 = vmul.f32 %v6439_v33, %v788_v34 }
 0x4a7   :  { %v1101_v36 = vpop.permute.xlu0 %1100 }
 0x4a8   :  { %v1103_v38 = vadd.f32 %v1101_v36, %v698_v45  ;;  %792 = vrot.lane.b32.xlu0 %v790_v35, %s6656_s16  ;;  %v1144_v36 = vld [vmem:[#allocation2 + $0x38] sm:$0xc] }
 0x4a9   :  { %v991_v40 = vpop.permute.xlu1 %990 }
 0x4aa   :  { %6444 = vtanh.f32 %v1103_v38  ;;  %v993_v41 = vmul.f32 %v6441_v39, %v991_v40 }
 0x4ac   :  { %995 = vrot.lane.b32.xlu0 %v993_v41, %s6655_s15 }
 0x4b0   :  { %v6443_v49 = vpop.eup %6442 }
 0x4b1   :  { %904 = vrot.lane.b32.xlu1 %v6443_v49, %s6655_s15 }
 0x4b4   :  { %v6445_v42 = vpop.eup %6444 }
 0x4b5   :  { %1107 = vrot.lane.b32.xlu1 %v6445_v42, %s6657_s19 }
 0x51a   :  { %v793_v46 = vpop.permute.xlu0 %792 }
 0x51b   :  { %v6941_v47 = vadd.f32 %v793_v46, %v785_v44 }
 0x51d   :  { %6446 = vtanh.f32 %v6941_v47 }
 0x51e   :  { %v996_v45 = vpop.permute.xlu0 %995 }
 0x51f   :  { %v998_v48 = vadd.f32 %v996_v45, %v696_v12 }
 0x521   :  { %6448 = vtanh.f32 %v998_v48  ;;  %v1141_v48 = vld [vmem:[#allocation2] sm:$0x30] }
 0x523   :  { %v905_v50 = vpop.permute.xlu1 %904 }
 0x524   :  { %v6944_v51 = vmul.f32 %v6429_v61, %v905_v50 }
 0x526   :  { %v1251_v52 = vrot.slane %v6944_v51, 4 }
 0x527   :  { %v6447_v55 = vpop.eup %6446  ;;  %v1108_v56 = vpop.permute.xlu1 %1107 }
 0x528   :  { %v1110_v57 = vmul.f32 %v1108_v56, %v1105_v53  ;;  %798 = vrot.lane.b32.xlu1 %v6447_v55, %s6655_s15  ;;  %1252 = vrot.lane.b32.xlu0 %v1251_v52, %s6656_s16 }
 0x52a   :  { %v6950_v58 = vadd.f32 %v1113_v62, %v1110_v57 }
 0x52b   :  { %v6449_v59 = vpop.eup %6448 }
 0x52c   :  { %1002 = vrot.lane.b32.xlu1 %v6449_v59, %s6657_s19  ;;  %v1462_v60 = vrot.slane %v6950_v58, 4 }
 0x52e   :  { %1463 = vrot.lane.b32.xlu0 %v1462_v60, %s6657_s19 }
 0x59a   :  { %v1253_v61 = vpop.permute.xlu0 %1252  ;;  %v799_v63 = vpop.permute.xlu1 %798 }
 0x59b   :  { %v6955_v0 = vmul.f32 %v6439_v33, %v799_v63  ;;  %5839 = vmatmul.mubr.msk.f32.vlgmr.msra.gmra.mrb[14].mxu1 %vm268_vm3, %v1253_v61 }
 0x59c   :  { %6250 = vmatpush3.bf16.msra.mxu1 %v6821_v28  ;;  %5860 = vmatprep.mubr.msk.f32.mxu1 %vm6654_vm2, %v6652_v2 }
 0x59d   :  { %v1145_v4 = vrot.slane %v6955_v0, 2  ;;  %6251 = vmatprep.subr.bf16.mxu1 %v6653_v16 }
 0x59e   :  { %v1003_v6 = vpop.permute.xlu1 %1002 }
 0x59f   :  { %v1005_v8 = vmul.f32 %v1003_v6, %v1000_v5  ;;  %1146 = vrot.lane.b32.xlu0 %v1145_v4, %s6656_s16 }
 0x5a0   :  { %6253 = vmatpush3.bf16.msra.mxu1 %v6834_v31  ;;  %v1464_v12 = vpop.permute.xlu0 %1463 }
 0x5a1   :  { %v6966_v14 = vadd.f32 %v1008_v9, %v1005_v8  ;;  %6260 = vmatprep.subr.bf16.mxu1 %v6653_v16 }
 0x5a3   :  { %5861 = vmatmul.mubr.msk.f32.vlgmr.msra.gmra.mrb[16].mxu1 %vm268_vm3, %v1464_v12  ;;  %v1357_v30 = vrot.slane %v6966_v14, 2 }
 0x5a4   :  { %6262 = vmatpush3.bf16.msra.mxu1 %v6788_v22  ;;  %5882 = vmatprep.mubr.msk.f32.mxu1 %vm6654_vm2, %v6652_v2 }
 0x5a5   :  { %1358 = vrot.lane.b32.xlu1 %v1357_v30, %s6657_s19  ;;  %6263 = vmatprep.subr.bf16.mxu1 %v6653_v16 }
 0x5a8   :  { %6265 = vmatpush3.bf16.msra.mxu1 %v6805_v25 }
 0x5a9   :  { %6272 = vmatprep.subr.bf16.mxu1 %v6653_v16 }
 0x611   :  { %v1147_v15 = vpop.permute.xlu0 %1146 }
 0x612   :  { %5828 = vmatmul.mubr.msk.f32.vlgmr.msra.gmra.mrb[10].mxu0 %vm268_vm3, %v1147_v15  ;;  %v1338_v15 = vrot.slane %v6933_v32, 2 }
 0x613   :  { %6244 = vmatpush3.bf16.msra.mxu0 %v6745_v11  ;;  %5849 = vmatprep.mubr.msk.f32.mxu0 %vm6654_vm2, %v6652_v2 }
 0x614   :  { %6245 = vmatprep.subr.bf16.mxu0 %v6653_v16 }
 0x617   :  { %6247 = vmatpush3.bf16.msra.mxu0 %v6772_v19  ;;  %v1359_v17 = vpop.permute.xlu1 %1358 }
 0x618   :  { %6254 = vmatprep.subr.bf16.mxu0 %v6653_v16 }
 0x61a   :  { %5850 = vmatmul.mubr.msk.f32.vlgmr.msra.gmra.mrb[12].mxu0 %vm268_vm3, %v1359_v17 }
 0x61b   :  { %6256 = vmatpush3.bf16.msra.mxu0 %v6743_v10  ;;  %5871 = vmatprep.mubr.msk.f32.mxu0 %vm6654_vm2, %v6652_v2 }
 0x61c   :  { %6257 = vmatprep.subr.bf16.mxu0 %v6653_v16 }
 0x61f   :  { %6259 = vmatpush3.bf16.msra.mxu0 %v6770_v18 }
 0x620   :  { %6266 = vmatprep.subr.bf16.mxu0 %v6653_v16 }
 0x66e   :  { %v1322_v20 = vpop.f32.mrb[14].mxu1 }
 0x66f   :  { %v1327_v21 = vrot.slane %v1322_v20, 6  ;;  %v5840_v23 = vpop.f32.mrb[15].mxu1 }
 0x671   :  { %v1329_v26 = vadd.f32 %v1327_v21, %v1143_v24 }
 0x673   :  { %6450 = vtanh.f32 %v1329_v26  ;;  %v5451_v39 = vmul.f32 -1.442695, %v1329_v26 }
 0x675   :  { %6452 = vpow2.f32 %v5451_v39  ;;  %v1232_v39 = vrot.slane %v6941_v47, 6 }
 0x676   :  { %v1533_v27 = vpop.f32.mrb[16].mxu1 }
 0x677   :  { %v1534_v29 = vadd.f32 %v6854_v7, %v1533_v27  ;;  %v5862_v33 = vpop.f32.mrb[17].mxu1 }
 0x679   :  { %v1538_v34 = vrot.slane %v1534_v29, 6 }
 0x67b   :  { %1547 = vrot.lane.b32.xlu1 %v1538_v34, %s6655_s15  ;;  %v1540_v38 = vadd.f32 %v1538_v34, %v1144_v36 }
 0x67d   :  { %v6451_v35 = vpop.eup %6450  ;;  %v5455_v40 = vmul.f32 -1.442695, %v1540_v38 }
 0x67e   :  { %1342 = vrot.lane.b32.xlu0 %v6451_v35, %s6655_s15 }
 0x67f   :  { %6454 = vpow2.f32 %v5455_v40  ;;  %v6453_v41 = vpop.eup %6452 }
 0x680   :  { %v1333_v42 = vadd.f32 1.0, %v6453_v41 }
 0x682   :  { %6456 = vrcp.f32 %v1333_v42 }
 0x689   :  { %v6455_v49 = vpop.eup %6454 }
 0x68a   :  { %v1544_v43 = vadd.f32 1.0, %v6455_v49 }
 0x68c   :  { %6458 = vrcp.f32 %v1544_v43  ;;  %v6457_v54 = vpop.eup %6456 }
 0x68d   :  { %v1340_v17 = vmul.f32 %v6457_v54, %v1338_v15  ;;  %v1593_v15 = vld [vmem:[#allocation2 + $0x28] sm:$0x3] }
 0x696   :  { %v6459_v57 = vpop.eup %6458 }
 0x6e5   :  { %v1216_v44 = vpop.f32.mrb[10].mxu0 }
 0x6e6   :  { %v1221_v46 = vrot.slane %v1216_v44, 4  ;;  %v5829_v45 = vpop.f32.mrb[11].mxu0 }
 0x6e7   :  { %v1557_v45 = vsub.f32 1.0, %v6459_v57 }
 0x6e8   :  { %v1223_v50 = vadd.f32 %v1221_v46, %v1141_v48  ;;  %v1563_v48 = vrot.slane %v6950_v58, 2 }
 0x6ea   :  { %6460 = vtanh.f32 %v1223_v50  ;;  %v5449_v4 = vmul.f32 -1.442695, %v1223_v50  ;;  %v1565_v47 = vmul.f32 %v6459_v57, %v1563_v48 }
 0x6ec   :  { %6462 = vpow2.f32 %v5449_v4 }
 0x6ed   :  { %v1428_v52 = vpop.f32.mrb[12].mxu0  ;;  %v1548_v62 = vpop.permute.xlu1 %1547 }
 0x6ee   :  { %v5851_v53 = vpop.f32.mrb[13].mxu0  ;;  %v1429_v59 = vadd.f32 %v6863_v37, %v1428_v52  ;;  %v1550_v61 = vmul.f32 %v6459_v57, %v1548_v62 }
 0x6f0   :  { %v1343_v55 = vpop.permute.xlu0 %1342  ;;  %v1433_v63 = vrot.slane %v1429_v59, 4 }
 0x6f1   :  { %v1345_v56 = vmul.f32 %v6457_v54, %v1343_v55 }
 0x6f2   :  { %v1435_v5 = vadd.f32 %v1433_v63, %v1142_v1 }
 0x6f3   :  { %1347 = vrot.lane.b32.xlu0 %v1345_v56, %s6656_s16 }
 0x6f4   :  { %v6461_v60 = vpop.eup %6460  ;;  %v5453_v6 = vmul.f32 -1.442695, %v1435_v5 }
 0x6f5   :  { %1236 = vrot.lane.b32.xlu1 %v6461_v60, %s6655_s15 }
 0x6f6   :  { %6464 = vpow2.f32 %v5453_v6  ;;  %v6463_v8 = vpop.eup %6462 }
 0x6f7   :  { %1552 = vrot.lane.b32.xlu0 %v1550_v61, %s6655_s15  ;;  %v1227_v9 = vadd.f32 1.0, %v6463_v8 }
 0x6f9   :  { %1442 = vrot.lane.b32.xlu1 %v1433_v63, %s6655_s15  ;;  %6466 = vrcp.f32 %v1227_v9  ;;  %v1458_v63 = vrot.slane %v6966_v14, 6 }
 0x700   :  { %v6465_v12 = vpop.eup %6464 }
 0x701   :  { %v1439_v30 = vadd.f32 1.0, %v6465_v12 }
 0x703   :  { %6468 = vrcp.f32 %v1439_v30  ;;  %v6467_v23 = vpop.eup %6466 }
 0x704   :  { %v1234_v40 = vmul.f32 %v6467_v23, %v1232_v39 }
 0x70d   :  { %v6469_v33 = vpop.eup %6468 }
 0x70e   :  { %v1452_v61 = vsub.f32 1.0, %v6469_v33  ;;  %v1460_v4 = vmul.f32 %v6469_v33, %v1458_v63  ;;  %v1592_v63 = vld [vmem:[#allocation2 + $0x10] sm:$0xc0] }
 0x765   :  { %v1348_v20 = vpop.permute.xlu0 %1347 }
 0x766   :  { %v7001_v21 = vadd.f32 %v1348_v20, %v1340_v17 }
 0x767   :  { %v1237_v24 = vpop.permute.xlu1 %1236 }
 0x768   :  { %6470 = vtanh.f32 %v7001_v21  ;;  %v1239_v26 = vmul.f32 %v6467_v23, %v1237_v24 }
 0x769   :  { %v1553_v27 = vpop.permute.xlu0 %1552 }
 0x76a   :  { %v1555_v29 = vadd.f32 %v1553_v27, %v1144_v36  ;;  %1241 = vrot.lane.b32.xlu0 %v1239_v26, %s6656_s16 }
 0x76b   :  { %v1443_v34 = vpop.permute.xlu1 %1442 }
 0x76c   :  { %6472 = vtanh.f32 %v1555_v29  ;;  %v1445_v35 = vmul.f32 %v6469_v33, %v1443_v34  ;;  %v1594_v33 = vld [vmem:[#allocation2 + $0x38] sm:$0x3] }
 0x76e   :  { %1447 = vrot.lane.b32.xlu0 %v1445_v35, %s6655_s15 }
 0x772   :  { %v6471_v32 = vpop.eup %6470 }
 0x773   :  { %1353 = vrot.lane.b32.xlu1 %v6471_v32, %s6655_s15 }
 0x776   :  { %v6473_v38 = vpop.eup %6472 }
 0x777   :  { %1559 = vrot.lane.b32.xlu1 %v6473_v38, %s6657_s19 }
 0x7dc   :  { %v1242_v41 = vpop.permute.xlu0 %1241 }
 0x7dd   :  { %v7009_v49 = vadd.f32 %v1242_v41, %v1234_v40 }
 0x7df   :  { %6474 = vtanh.f32 %v7009_v49 }
 0x7e0   :  { %v1448_v36 = vpop.permute.xlu0 %1447 }
 0x7e1   :  { %v1450_v42 = vadd.f32 %v1448_v36, %v1142_v1 }
 0x7e3   :  { %6476 = vtanh.f32 %v1450_v42 }
 0x7e5   :  { %v1354_v43 = vpop.permute.xlu1 %1353 }
 0x7e6   :  { %v7012_v44 = vmul.f32 %v6457_v54, %v1354_v43  ;;  %v1591_v43 = vld [vmem:[#allocation2] sm:$0xc0] }
 0x7e8   :  { %v1701_v46 = vrot.slane %v7012_v44, 2 }
 0x7e9   :  { %v6475_v50 = vpop.eup %6474  ;;  %v1560_v52 = vpop.permute.xlu1 %1559 }
 0x7ea   :  { %v1562_v53 = vmul.f32 %v1560_v52, %v1557_v45  ;;  %1247 = vrot.lane.b32.xlu1 %v6475_v50, %s6655_s15  ;;  %1702 = vrot.lane.b32.xlu0 %v1701_v46, %s6656_s16 }
 0x7ec   :  { %v7018_v55 = vadd.f32 %v1565_v47, %v1562_v53 }
 0x7ed   :  { %v6477_v56 = vpop.eup %6476 }
 0x7ee   :  { %1454 = vrot.lane.b32.xlu1 %v6477_v56, %s6657_s19  ;;  %v1909_v54 = vrot.slane %v7018_v55, 2 }
 0x7f0   :  { %1910 = vrot.lane.b32.xlu0 %v1909_v54, %s6657_s19 }
 0x85c   :  { %v1703_v62 = vpop.permute.xlu0 %1702  ;;  %v1248_v59 = vpop.permute.xlu1 %1247 }
 0x85d   :  { %v7025_v60 = vmul.f32 %v6467_v23, %v1248_v59  ;;  %5883 = vmatmul.mubr.msk.f32.vlgmr.msra.gmra.mrb[18].mxu1 %vm268_vm3, %v1703_v62 }
 0x85e   :  { %6274 = vmatpush3.bf16.msra.mxu1 %v6821_v28  ;;  %5904 = vmatprep.mubr.msk.f32.mxu1 %vm6654_vm2, %v6652_v2 }
 0x85f   :  { %v1595_v57 = vrot.slane %v7025_v60, 4  ;;  %6275 = vmatprep.subr.bf16.mxu1 %v6653_v16 }
 0x860   :  { %v1455_v1 = vpop.permute.xlu1 %1454 }
 0x861   :  { %v1457_v5 = vmul.f32 %v1455_v1, %v1452_v61  ;;  %1596 = vrot.lane.b32.xlu0 %v1595_v57, %s6656_s16 }
 0x862   :  { %6277 = vmatpush3.bf16.msra.mxu1 %v6834_v31  ;;  %v1911_v6 = vpop.permute.xlu0 %1910 }
 0x863   :  { %v7036_v8 = vadd.f32 %v1460_v4, %v1457_v5  ;;  %6284 = vmatprep.subr.bf16.mxu1 %v6653_v16 }
 0x865   :  { %5905 = vmatmul.mubr.msk.f32.vlgmr.msra.gmra.mrb[20].mxu1 %vm268_vm3, %v1911_v6  ;;  %v1804_v9 = vrot.slane %v7036_v8, 4 }
 0x866   :  { %6286 = vmatpush3.bf16.msra.mxu1 %v6788_v22  ;;  %5926 = vmatprep.mubr.msk.f32.mxu1 %vm6654_vm2, %v6652_v2 }
 0x867   :  { %1805 = vrot.lane.b32.xlu1 %v1804_v9, %s6657_s19  ;;  %6287 = vmatprep.subr.bf16.mxu1 %v6653_v16 }
 0x86a   :  { %6289 = vmatpush3.bf16.msra.mxu1 %v6805_v25 }
 0x86b   :  { %6296 = vmatprep.subr.bf16.mxu1 %v6653_v16 }
 0x8d3   :  { %v1597_v12 = vpop.permute.xlu0 %1596 }
 0x8d4   :  { %5872 = vmatmul.mubr.msk.f32.vlgmr.msra.gmra.mrb[14].mxu0 %vm268_vm3, %v1597_v12 }
 0x8d5   :  { %6268 = vmatpush3.bf16.msra.mxu0 %v6745_v11  ;;  %5893 = vmatprep.mubr.msk.f32.mxu0 %vm6654_vm2, %v6652_v2 }
 0x8d6   :  { %6269 = vmatprep.subr.bf16.mxu0 %v6653_v16 }
 0x8d9   :  { %6271 = vmatpush3.bf16.msra.mxu0 %v6772_v19  ;;  %v1806_v30 = vpop.permute.xlu1 %1805 }
 0x8da   :  { %6278 = vmatprep.subr.bf16.mxu0 %v6653_v16 }
 0x8dc   :  { %5894 = vmatmul.mubr.msk.f32.vlgmr.msra.gmra.mrb[16].mxu0 %vm268_vm3, %v1806_v30 }
 0x8dd   :  { %6280 = vmatpush3.bf16.msra.mxu0 %v6743_v10  ;;  %5915 = vmatprep.mubr.msk.f32.mxu0 %vm6654_vm2, %v6652_v2 }
 0x8de   :  { %6281 = vmatprep.subr.bf16.mxu0 %v6653_v16 }
 0x8e1   :  { %6283 = vmatpush3.bf16.msra.mxu0 %v6770_v18 }
 0x8e2   :  { %6290 = vmatprep.subr.bf16.mxu0 %v6653_v16 }
 0x930   :  { %v1772_v17 = vpop.f32.mrb[18].mxu1 }
 0x931   :  { %v1776_v20 = vadd.f32 %v1772_v17, %v1593_v15  ;;  %v5884_v23 = vpop.f32.mrb[19].mxu1 }
 0x933   :  { %6478 = vtanh.f32 %v1776_v20  ;;  %v5459_v34 = vmul.f32 -1.442695, %v1776_v20 }
 0x935   :  { %6480 = vpow2.f32 %v5459_v34 }
 0x938   :  { %v1980_v24 = vpop.f32.mrb[20].mxu1 }
 0x939   :  { %v1981_v26 = vadd.f32 %v6854_v7, %v1980_v24  ;;  %v5906_v27 = vpop.f32.mrb[21].mxu1 }
 0x93b   :  { %1992 = vrot.lane.b32.xlu1 %v1981_v26, %s6655_s15  ;;  %v1984_v35 = vadd.f32 %v1981_v26, %v1594_v33 }
 0x93d   :  { %v6479_v29 = vpop.eup %6478  ;;  %v5463_v32 = vmul.f32 -1.442695, %v1984_v35 }
 0x93e   :  { %1789 = vrot.lane.b32.xlu0 %v6479_v29, %s6655_s15 }
 0x93f   :  { %6482 = vpow2.f32 %v5463_v32  ;;  %v6481_v38 = vpop.eup %6480 }
 0x940   :  { %v1780_v39 = vadd.f32 1.0, %v6481_v38 }
 0x942   :  { %6484 = vrcp.f32 %v1780_v39  ;;  %v1682_v39 = vrot.slane %v7009_v49, 6 }
 0x949   :  { %v6483_v40 = vpop.eup %6482 }
 0x94a   :  { %v1988_v41 = vadd.f32 1.0, %v6483_v40 }
 0x94c   :  { %6486 = vrcp.f32 %v1988_v41  ;;  %v6485_v48 = vpop.eup %6484 }
 0x956   :  { %v6487_v56 = vpop.eup %6486 }
 0x9a7   :  { %v1666_v36 = vpop.f32.mrb[14].mxu0 }
 0x9a8   :  { %v1671_v42 = vrot.slane %v1666_v36, 2  ;;  %v5873_v7 = vpop.f32.mrb[15].mxu0 }
 0x9aa   :  { %v1673_v46 = vadd.f32 %v1671_v42, %v1591_v43 }
 0x9ac   :  { %6488 = vtanh.f32 %v1673_v46  ;;  %v5457_v1 = vmul.f32 -1.442695, %v1673_v46  ;;  %v2002_v46 = vsub.f32 1.0, %v6487_v56 }
 0x9ad   :  { %v1993_v53 = vpop.permute.xlu1 %1992 }
 0x9ae   :  { %v1995_v62 = vmul.f32 %v6487_v56, %v1993_v53  ;;  %6490 = vpow2.f32 %v5457_v1 }
 0x9af   :  { %v1875_v45 = vpop.f32.mrb[16].mxu0 }
 0x9b0   :  { %v5895_v50 = vpop.f32.mrb[17].mxu0  ;;  %v1790_v52 = vpop.permute.xlu0 %1789  ;;  %v1876_v59 = vadd.f32 %v6863_v37, %v1875_v45  ;;  %v1785_v37 = vrot.slane %v7001_v21, 2 }
 0x9b1   :  { %v1792_v47 = vmul.f32 %v6485_v48, %v1790_v52  ;;  %v2009_v50 = vmul.f32 %v6487_v56, %v1909_v54 }
 0x9b2   :  { %v1880_v61 = vrot.slane %v1876_v59, 2  ;;  %v1787_v15 = vmul.f32 %v6485_v48, %v1785_v37 }
 0x9b3   :  { %1794 = vrot.lane.b32.xlu0 %v1792_v47, %s6656_s16 }
 0x9b4   :  { %v1882_v4 = vadd.f32 %v1880_v61, %v1592_v63 }
 0x9b6   :  { %v6489_v57 = vpop.eup %6488  ;;  %v5461_v5 = vmul.f32 -1.442695, %v1882_v4 }
 0x9b7   :  { %1686 = vrot.lane.b32.xlu1 %v6489_v57, %s6655_s15  ;;  %1997 = vrot.lane.b32.xlu0 %v1995_v62, %s6655_s15 }
 0x9b8   :  { %6492 = vpow2.f32 %v5461_v5  ;;  %v6491_v6 = vpop.eup %6490 }
 0x9b9   :  { %v1677_v9 = vadd.f32 1.0, %v6491_v6 }
 0x9bb   :  { %1889 = vrot.lane.b32.xlu1 %v1880_v61, %s6655_s15  ;;  %6494 = vrcp.f32 %v1677_v9  ;;  %v1905_v61 = vrot.slane %v7036_v8, 6 }
 0x9c2   :  { %v6493_v12 = vpop.eup %6492 }
 0x9c3   :  { %v1886_v30 = vadd.f32 1.0, %v6493_v12 }
 0x9c5   :  { %6496 = vrcp.f32 %v1886_v30  ;;  %v6495_v23 = vpop.eup %6494 }
 0x9c6   :  { %v1684_v40 = vmul.f32 %v6495_v23, %v1682_v39 }
 0x9cf   :  { %v6497_v34 = vpop.eup %6496 }
 0x9d0   :  { %v1899_v57 = vsub.f32 1.0, %v6497_v34  ;;  %v1907_v1 = vmul.f32 %v6497_v34, %v1905_v61  ;;  %v7146_v61 = vld [vmem:[%s7681_s7] ss:$0 sm:$0xff] }
 0xa25   :  { %v1795_v17 = vpop.permute.xlu0 %1794 }
 0xa26   :  { %v7071_v20 = vadd.f32 %v1795_v17, %v1787_v15  ;;  %v2037_v17 = vld [vmem:[#allocation2 + $0x8] sm:$0xc0] }
 0xa28   :  { %6498 = vtanh.f32 %v7071_v20 }
 0xa29   :  { %v1998_v24 = vpop.permute.xlu0 %1997  ;;  %v1687_v26 = vpop.permute.xlu1 %1686 }
 0xa2a   :  { %v2000_v27 = vadd.f32 %v1998_v24, %v1594_v33  ;;  %v1689_v29 = vmul.f32 %v6495_v23, %v1687_v26  ;;  %v7135_v26 = vld [vmem:[%s7680_s8] ss:$0 sm:$0xff] }
 0xa2c   :  { %6500 = vtanh.f32 %v2000_v27  ;;  %1691 = vrot.lane.b32.xlu0 %v1689_v29, %s6656_s16 }
 0xa2d   :  { %v1890_v35 = vpop.permute.xlu1 %1889 }
 0xa2e   :  { %v1892_v32 = vmul.f32 %v6497_v34, %v1890_v35 }
 0xa30   :  { %1894 = vrot.lane.b32.xlu0 %v1892_v32, %s6655_s15  ;;  %v2038_v32 = vld [vmem:[#allocation2 + $0x18] sm:$0xc0] }
 0xa32   :  { %v6499_v21 = vpop.eup %6498 }
 0xa33   :  { %1800 = vrot.lane.b32.xlu1 %v6499_v21, %s6655_s15 }
 0xa36   :  { %v6501_v38 = vpop.eup %6500 }
 0xa37   :  { %2004 = vrot.lane.b32.xlu1 %v6501_v38, %s6657_s19 }
 0xa9e   :  { %v1692_v41 = vpop.permute.xlu0 %1691 }
 0xa9f   :  { %v7079_v33 = vadd.f32 %v1692_v41, %v1684_v40 }
 0xaa1   :  { %6502 = vtanh.f32 %v7079_v33 }
 0xaa2   :  { %v1895_v36 = vpop.permute.xlu0 %1894 }
 0xaa3   :  { %v1897_v42 = vadd.f32 %v1895_v36, %v1592_v63 }
 0xaa5   :  { %6504 = vtanh.f32 %v1897_v42  ;;  %v1801_v7 = vpop.permute.xlu1 %1800 }
 0xaa6   :  { %v1803_v43 = vmul.f32 %v6485_v48, %v1801_v7  ;;  %v2035_v7 = vld [vmem:[#allocation2 + $0x20] sm:$0x3] }
 0xaa8   :  { %2018 = vrot.lane.b32.xlu0 %v1803_v43, %s6656_s16 }
 0xaa9   :  { %v2005_v45 = vpop.permute.xlu1 %2004 }
 0xaaa   :  { %v2007_v52 = vmul.f32 %v2005_v45, %v2002_v46 }
 0xaab   :  { %v6503_v49 = vpop.eup %6502 }
 0xaac   :  { %v7085_v47 = vadd.f32 %v2009_v50, %v2007_v52  ;;  %1697 = vrot.lane.b32.xlu1 %v6503_v49, %s6655_s15 }
 0xaae   :  { %2030 = vrot.lane.b32.xlu0 %v7085_v47, %s6657_s19 }
 0xaaf   :  { %v6505_v53 = vpop.eup %6504 }
 0xab0   :  { %1901 = vrot.lane.b32.xlu1 %v6505_v53, %s6657_s19 }
 0xb1a   :  { %v2019_v48 = vpop.permute.xlu0 %2018 }
 0xb1b   :  { %2022 = vst.msk [vmem:[#allocation4 + $0x8] sm:$0x3] %vm675_vm4, %v2019_v48  ;;  %5927 = vmatmul.mubr.msk.f32.vlgmr.msra.gmra.mrb[22].mxu1 %vm268_vm3, %v2019_v48 }
 0xb1c   :  { %6298 = vmatpush3.bf16.msra.mxu1 %v6821_v28  ;;  %5948 = vmatprep.mubr.msk.f32.mxu1 %vm6654_vm2, %v6652_v2 }
 0xb1d   :  { %6299 = vmatprep.subr.bf16.mxu1 %v6653_v16 }
 0xb1e   :  { %v1698_v54 = vpop.permute.xlu1 %1697 }
 0xb1f   :  { %v7097_v56 = vmul.f32 %v6495_v23, %v1698_v54 }
 0xb20   :  { %6301 = vmatpush3.bf16.msra.mxu1 %v6834_v31  ;;  %v2031_v62 = vpop.permute.xlu0 %2030 }
 0xb21   :  { %v2039_v59 = vrot.slane %v7097_v56, 6  ;;  %2034 = vst.msk [vmem:[#allocation6 + $0x8] sm:$0x3] %vm675_vm4, %v2031_v62  ;;  %6308 = vmatprep.subr.bf16.mxu1 %v6653_v16 }
 0xb22   :  { %v1902_v63 = vpop.permute.xlu1 %1901 }
 0xb23   :  { %5949 = vmatmul.mubr.msk.f32.vlgmr.msra.gmra.mrb[24].mxu1 %vm268_vm3, %v2031_v62  ;;  %v1904_v4 = vmul.f32 %v1902_v63, %v1899_v57  ;;  %2040 = vrot.lane.b32.xlu0 %v2039_v59, %s6656_s16 }
 0xb24   :  { %6310 = vmatpush3.bf16.msra.mxu1 %v6788_v22  ;;  %5970 = vmatprep.mubr.msk.f32.mxu1 %vm6654_vm2, %v6652_v2 }
 0xb25   :  { %v7109_v5 = vadd.f32 %v1907_v1, %v1904_v4  ;;  %6311 = vmatprep.subr.bf16.mxu1 %v6653_v16  ;;  %v2036_v1 = vld [vmem:[#allocation2 + $0x30] sm:$0x3] }
 0xb27   :  { %v2245_v6 = vrot.slane %v7109_v5, 6 }
 0xb28   :  { %6313 = vmatpush3.bf16.msra.mxu1 %v6805_v25 }
 0xb29   :  { %2246 = vrot.lane.b32.xlu1 %v2245_v6, %s6657_s19  ;;  %6320 = vmatprep.subr.bf16.mxu1 %v6653_v16 }
 0xb95   :  { %v2041_v9 = vpop.permute.xlu0 %2040 }
 0xb96   :  { %5916 = vmatmul.mubr.msk.f32.vlgmr.msra.gmra.mrb[18].mxu0 %vm268_vm3, %v2041_v9 }
 0xb97   :  { %6292 = vmatpush3.bf16.msra.mxu0 %v6745_v11  ;;  %5937 = vmatprep.mubr.msk.f32.mxu0 %vm6654_vm2, %v6652_v2 }
 0xb98   :  { %6293 = vmatprep.subr.bf16.mxu0 %v6653_v16 }
 0xb9b   :  { %6295 = vmatpush3.bf16.msra.mxu0 %v6772_v19  ;;  %v2247_v12 = vpop.permute.xlu1 %2246 }
 0xb9c   :  { %6302 = vmatprep.subr.bf16.mxu0 %v6653_v16 }
 0xb9e   :  { %5938 = vmatmul.mubr.msk.f32.vlgmr.msra.gmra.mrb[20].mxu0 %vm268_vm3, %v2247_v12 }
 0xb9f   :  { %6304 = vmatpush3.bf16.msra.mxu0 %v6743_v10  ;;  %5959 = vmatprep.mubr.msk.f32.mxu0 %vm6654_vm2, %v6652_v2 }
 0xba0   :  { %6305 = vmatprep.subr.bf16.mxu0 %v6653_v16 }
 0xba3   :  { %6307 = vmatpush3.bf16.msra.mxu0 %v6770_v18 }
 0xba4   :  { %6314 = vmatprep.subr.bf16.mxu0 %v6653_v16 }
 0xbee   :  { %v2210_v30 = vpop.f32.mrb[22].mxu1 }
 0xbef   :  { %v2215_v37 = vrot.slane %v2210_v30, 2  ;;  %v5928_v15 = vpop.f32.mrb[23].mxu1 }
 0xbf1   :  { %v2217_v23 = vadd.f32 %v2215_v37, %v2037_v17 }
 0xbf3   :  { %6506 = vtanh.f32 %v2217_v23  ;;  %v5467_v21 = vmul.f32 -1.442695, %v2217_v23  ;;  %v2226_v23 = vrot.slane %v7071_v20, 2 }
 0xbf5   :  { %6508 = vpow2.f32 %v5467_v21 }
 0xbf6   :  { %v2415_v24 = vpop.f32.mrb[24].mxu1 }
 0xbf7   :  { %v2416_v27 = vadd.f32 %v7135_v26, %v2415_v24  ;;  %v5950_v29 = vpop.f32.mrb[25].mxu1 }
 0xbf9   :  { %v2420_v34 = vrot.slane %v2416_v27, 2 }
 0xbfb   :  { %2429 = vrot.lane.b32.xlu1 %v2420_v34, %s6655_s15  ;;  %v2422_v38 = vadd.f32 %v2420_v34, %v2038_v32 }
 0xbfd   :  { %v6507_v35 = vpop.eup %6506  ;;  %v5471_v39 = vmul.f32 -1.442695, %v2422_v38 }
 0xbfe   :  { %2230 = vrot.lane.b32.xlu0 %v6507_v35, %s6655_s15 }
 0xbff   :  { %6510 = vpow2.f32 %v5471_v39  ;;  %v6509_v40 = vpop.eup %6508 }
 0xc00   :  { %v2221_v41 = vadd.f32 1.0, %v6509_v40 }
 0xc02   :  { %6512 = vrcp.f32 %v2221_v41 }
 0xc09   :  { %v6511_v36 = vpop.eup %6510 }
 0xc0a   :  { %v2426_v42 = vadd.f32 1.0, %v6511_v36 }
 0xc0c   :  { %6514 = vrcp.f32 %v2426_v42  ;;  %v6513_v50 = vpop.eup %6512 }
 0xc0d   :  { %v2228_v24 = vmul.f32 %v6513_v50, %v2226_v23 }
 0xc16   :  { %v6515_v62 = vpop.eup %6514 }
 0xc69   :  { %v2110_v43 = vpop.f32.mrb[18].mxu0 }
 0xc6a   :  { %v2114_v46 = vadd.f32 %v2110_v43, %v2035_v7  ;;  %v5917_v45 = vpop.f32.mrb[19].mxu0  ;;  %v2123_v7 = vrot.slane %v7079_v33, 6 }
 0xc6c   :  { %6516 = vtanh.f32 %v2114_v46  ;;  %v5465_v4 = vmul.f32 -1.442695, %v2114_v46 }
 0xc6d   :  { %v2430_v48 = vpop.permute.xlu1 %2429 }
 0xc6e   :  { %v2432_v59 = vmul.f32 %v6515_v62, %v2430_v48  ;;  %6518 = vpow2.f32 %v5465_v4  ;;  %v2445_v48 = vrot.slane %v7085_v47, 2 }
 0xc70   :  { %v2231_v52 = vpop.permute.xlu0 %2230 }
 0xc71   :  { %v2233_v49 = vmul.f32 %v6513_v50, %v2231_v52  ;;  %v2316_v53 = vpop.f32.mrb[20].mxu0 }
 0xc72   :  { %v5939_v54 = vpop.f32.mrb[21].mxu0  ;;  %v2317_v63 = vadd.f32 %v7146_v61, %v2316_v53 }
 0xc73   :  { %2235 = vrot.lane.b32.xlu0 %v2233_v49, %s6656_s16 }
 0xc74   :  { %v2320_v9 = vadd.f32 %v2317_v63, %v2036_v1 }
 0xc76   :  { %v6517_v57 = vpop.eup %6516  ;;  %v5469_v12 = vmul.f32 -1.442695, %v2320_v9 }
 0xc77   :  { %2127 = vrot.lane.b32.xlu1 %v6517_v57, %s6655_s15  ;;  %2434 = vrot.lane.b32.xlu0 %v2432_v59, %s6655_s15  ;;  %v2439_v59 = vsub.f32 1.0, %v6515_v62 }
 0xc78   :  { %6520 = vpow2.f32 %v5469_v12  ;;  %v6519_v30 = vpop.eup %6518 }
 0xc79   :  { %v2118_v37 = vadd.f32 1.0, %v6519_v30 }
 0xc7b   :  { %2328 = vrot.lane.b32.xlu1 %v2317_v63, %s6655_s15  ;;  %6522 = vrcp.f32 %v2118_v37  ;;  %v2447_v63 = vmul.f32 %v6515_v62, %v2445_v48 }
 0xc82   :  { %v6521_v15 = vpop.eup %6520 }
 0xc83   :  { %v2324_v17 = vadd.f32 1.0, %v6521_v15 }
 0xc85   :  { %6524 = vrcp.f32 %v2324_v17  ;;  %v6523_v34 = vpop.eup %6522 }
 0xc86   :  { %v2125_v43 = vmul.f32 %v6523_v34, %v2123_v7  ;;  %v2476_v7 = vld [vmem:[#allocation2 + $0x18] sm:$0x30] }
 0xc8f   :  { %v6525_v40 = vpop.eup %6524 }
 0xc90   :  { %v2338_v30 = vsub.f32 1.0, %v6525_v40  ;;  %v2345_v17 = vmul.f32 %v6525_v40, %v2245_v6 }
 0xce5   :  { %v2236_v27 = vpop.permute.xlu0 %2235 }
 0xce6   :  { %v7151_v29 = vadd.f32 %v2236_v27, %v2228_v24 }
 0xce8   :  { %6526 = vtanh.f32 %v7151_v29 }
 0xce9   :  { %v2435_v35 = vpop.permute.xlu0 %2434  ;;  %v2128_v21 = vpop.permute.xlu1 %2127 }
 0xcea   :  { %v2437_v38 = vadd.f32 %v2435_v35, %v2038_v32  ;;  %v2130_v39 = vmul.f32 %v6523_v34, %v2128_v21 }
 0xcec   :  { %6528 = vtanh.f32 %v2437_v38  ;;  %2132 = vrot.lane.b32.xlu0 %v2130_v39, %s6656_s16  ;;  %v2475_v38 = vld [vmem:[#allocation2 + $0x8] sm:$0x30] }
 0xced   :  { %v2329_v41 = vpop.permute.xlu1 %2328 }
 0xcee   :  { %v2331_v36 = vmul.f32 %v6525_v40, %v2329_v41 }
 0xcf0   :  { %2333 = vrot.lane.b32.xlu0 %v2331_v36, %s6655_s15 }
 0xcf2   :  { %v6527_v20 = vpop.eup %6526 }
 0xcf3   :  { %2241 = vrot.lane.b32.xlu1 %v6527_v20, %s6655_s15 }
 0xcf6   :  { %v6529_v42 = vpop.eup %6528 }
 0xcf7   :  { %2441 = vrot.lane.b32.xlu1 %v6529_v42, %s6657_s19 }
 0xd5e   :  { %v2133_v46 = vpop.permute.xlu0 %2132 }
 0xd5f   :  { %v7159_v32 = vadd.f32 %v2133_v46, %v2125_v43 }
 0xd61   :  { %6530 = vtanh.f32 %v7159_v32 }
 0xd62   :  { %v2334_v45 = vpop.permute.xlu0 %2333 }
 0xd63   :  { %v2336_v52 = vadd.f32 %v2334_v45, %v2036_v1 }
 0xd65   :  { %6532 = vtanh.f32 %v2336_v52  ;;  %v2242_v49 = vpop.permute.xlu1 %2241 }
 0xd66   :  { %v7162_v53 = vmul.f32 %v6513_v50, %v2242_v49 }
 0xd68   :  { %v2580_v54 = vrot.slane %v7162_v53, 6 }
 0xd69   :  { %v2442_v57 = vpop.permute.xlu1 %2441 }
 0xd6a   :  { %v2444_v33 = vmul.f32 %v2442_v57, %v2439_v59  ;;  %2581 = vrot.lane.b32.xlu0 %v2580_v54, %s6656_s16 }
 0xd6b   :  { %v6531_v4 = vpop.eup %6530 }
 0xd6c   :  { %v7167_v9 = vadd.f32 %v2447_v63, %v2444_v33  ;;  %2138 = vrot.lane.b32.xlu1 %v6531_v4, %s6655_s15  ;;  %v2473_v33 = vld [vmem:[#allocation2 + $0x20] sm:$0xc] }
 0xd6e   :  { %v2788_v1 = vrot.slane %v7167_v9, 6 }
 0xd6f   :  { %v6533_v12 = vpop.eup %6532 }
 0xd70   :  { %2340 = vrot.lane.b32.xlu1 %v6533_v12, %s6657_s19  ;;  %2789 = vrot.lane.b32.xlu0 %v2788_v1, %s6657_s19 }
 0xddc   :  { %v2582_v47 = vpop.permute.xlu0 %2581 }
 0xddd   :  { %5971 = vmatmul.mubr.msk.f32.vlgmr.msra.gmra.mrb[26].mxu1 %vm268_vm3, %v2582_v47 }
 0xdde   :  { %6322 = vmatpush3.bf16.msra.mxu1 %v6821_v28  ;;  %v2139_v50 = vpop.permute.xlu1 %2138  ;;  %5992 = vmatprep.mubr.msk.f32.mxu1 %vm6654_vm2, %v6652_v2 }
 0xddf   :  { %v2141_v62 = vmul.f32 %v6523_v34, %v2139_v50  ;;  %6323 = vmatprep.subr.bf16.mxu1 %v6653_v16 }
 0xde1   :  { %2450 = vrot.lane.b32.xlu0 %v2141_v62, %s6656_s16 }
 0xde2   :  { %6325 = vmatpush3.bf16.msra.mxu1 %v6834_v31  ;;  %v2790_v37 = vpop.permute.xlu0 %2789  ;;  %v2341_v15 = vpop.permute.xlu1 %2340 }
 0xde3   :  { %v2343_v23 = vmul.f32 %v2341_v15, %v2338_v30  ;;  %6332 = vmatprep.subr.bf16.mxu1 %v6653_v16 }
 0xde5   :  { %v7183_v24 = vadd.f32 %v2345_v17, %v2343_v23  ;;  %5993 = vmatmul.mubr.msk.f32.vlgmr.msra.gmra.mrb[28].mxu1 %vm268_vm3, %v2790_v37 }
 0xde6   :  { %6334 = vmatpush3.bf16.msra.mxu1 %v6788_v22  ;;  %6014 = vmatprep.mubr.msk.f32.mxu1 %vm6654_vm2, %v6652_v2 }
 0xde7   :  { %2462 = vrot.lane.b32.xlu1 %v7183_v24, %s6657_s19  ;;  %6335 = vmatprep.subr.bf16.mxu1 %v6653_v16 }
 0xdea   :  { %6337 = vmatpush3.bf16.msra.mxu1 %v6805_v25 }
 0xdeb   :  { %6344 = vmatprep.subr.bf16.mxu1 %v6653_v16 }
 0xe53   :  { %v2451_v6 = vpop.permute.xlu0 %2450 }
 0xe54   :  { %2454 = vst.msk [vmem:[#allocation3 + $0x8] sm:$0x3] %vm675_vm4, %v2451_v6  ;;  %5960 = vmatmul.mubr.msk.f32.vlgmr.msra.gmra.mrb[22].mxu0 %vm268_vm3, %v2451_v6 }
 0xe55   :  { %6316 = vmatpush3.bf16.msra.mxu0 %v6745_v11  ;;  %5981 = vmatprep.mubr.msk.f32.mxu0 %vm6654_vm2, %v6652_v2 }
 0xe56   :  { %6317 = vmatprep.subr.bf16.mxu0 %v6653_v16 }
 0xe59   :  { %6319 = vmatpush3.bf16.msra.mxu0 %v6772_v19  ;;  %v2463_v27 = vpop.permute.xlu1 %2462 }
 0xe5a   :  { %2466 = vst.msk [vmem:[#allocation5 + $0x8] sm:$0x3] %vm675_vm4, %v2463_v27  ;;  %6326 = vmatprep.subr.bf16.mxu0 %v6653_v16 }
 0xe5c   :  { %5982 = vmatmul.mubr.msk.f32.vlgmr.msra.gmra.mrb[24].mxu0 %vm268_vm3, %v2463_v27  ;;  %v2474_v27 = vld [vmem:[#allocation2 + $0x30] sm:$0xc] }
 0xe5d   :  { %6328 = vmatpush3.bf16.msra.mxu0 %v6743_v10  ;;  %6003 = vmatprep.mubr.msk.f32.mxu0 %vm6654_vm2, %v6652_v2 }
 0xe5e   :  { %6329 = vmatprep.subr.bf16.mxu0 %v6653_v16 }
 0xe61   :  { %6331 = vmatpush3.bf16.msra.mxu0 %v6770_v18 }
 0xe62   :  { %6338 = vmatprep.subr.bf16.mxu0 %v6653_v16 }
 0xeb0   :  { %v2651_v34 = vpop.f32.mrb[26].mxu1 }
 0xeb1   :  { %v2656_v35 = vrot.slane %v2651_v34, 4  ;;  %v5972_v21 = vpop.f32.mrb[27].mxu1 }
 0xeb3   :  { %v2658_v39 = vadd.f32 %v2656_v35, %v2475_v38 }
 0xeb5   :  { %6534 = vtanh.f32 %v2658_v39  ;;  %v5475_v46 = vmul.f32 -1.442695, %v2658_v39 }
 0xeb7   :  { %6536 = vpow2.f32 %v5475_v46 }
 0xeb8   :  { %v2859_v40 = vpop.f32.mrb[28].mxu1 }
 0xeb9   :  { %v2860_v41 = vadd.f32 %v7135_v26, %v2859_v40  ;;  %v5994_v36 = vpop.f32.mrb[29].mxu1 }
 0xeba   :  { %v2667_v36 = vrot.slane %v7151_v29, 2 }
 0xebb   :  { %v2864_v20 = vrot.slane %v2860_v41, 4 }
 0xebd   :  { %2873 = vrot.lane.b32.xlu1 %v2864_v20, %s6655_s15  ;;  %v2866_v43 = vadd.f32 %v2864_v20, %v2476_v7 }
 0xebf   :  { %v6535_v42 = vpop.eup %6534  ;;  %v5479_v45 = vmul.f32 -1.442695, %v2866_v43 }
 0xec0   :  { %2671 = vrot.lane.b32.xlu0 %v6535_v42, %s6655_s15 }
 0xec1   :  { %6538 = vpow2.f32 %v5479_v45  ;;  %v6537_v52 = vpop.eup %6536 }
 0xec2   :  { %v2662_v48 = vadd.f32 1.0, %v6537_v52 }
 0xec4   :  { %6540 = vrcp.f32 %v2662_v48 }
 0xecb   :  { %v6539_v49 = vpop.eup %6538 }
 0xecc   :  { %v2870_v54 = vadd.f32 1.0, %v6539_v49 }
 0xece   :  { %6542 = vrcp.f32 %v2870_v54  ;;  %v6541_v47 = vpop.eup %6540 }
 0xecf   :  { %v2669_v20 = vmul.f32 %v6541_v47, %v2667_v36 }
 0xed8   :  { %v6543_v37 = vpop.eup %6542 }
 0xf27   :  { %v2545_v59 = vpop.f32.mrb[22].mxu0 }
 0xf28   :  { %v2550_v57 = vrot.slane %v2545_v59, 6  ;;  %v5961_v63 = vpop.f32.mrb[23].mxu0 }
 0xf2a   :  { %v2552_v4 = vadd.f32 %v2550_v57, %v2473_v33  ;;  %v2561_v33 = vrot.slane %v7159_v32, 6 }
 0xf2c   :  { %6544 = vtanh.f32 %v2552_v4  ;;  %v5473_v34 = vmul.f32 -1.442695, %v2552_v4 }
 0xf2e   :  { %6546 = vpow2.f32 %v5473_v34 }
 0xf2f   :  { %v2754_v1 = vpop.f32.mrb[24].mxu0  ;;  %v2874_v30 = vpop.permute.xlu1 %2873 }
 0xf30   :  { %v5983_v12 = vpop.f32.mrb[25].mxu0  ;;  %v2755_v15 = vadd.f32 %v7146_v61, %v2754_v1  ;;  %v2876_v23 = vmul.f32 %v6543_v37, %v2874_v30 }
 0xf32   :  { %v2672_v50 = vpop.permute.xlu0 %2671  ;;  %v2759_v6 = vrot.slane %v2755_v15, 6 }
 0xf33   :  { %v2674_v62 = vmul.f32 %v6541_v47, %v2672_v50 }
 0xf34   :  { %v2761_v35 = vadd.f32 %v2759_v6, %v2474_v27 }
 0xf35   :  { %2676 = vrot.lane.b32.xlu0 %v2674_v62, %s6656_s16 }
 0xf36   :  { %v6545_v17 = vpop.eup %6544  ;;  %v5477_v21 = vmul.f32 -1.442695, %v2761_v35 }
 0xf37   :  { %2565 = vrot.lane.b32.xlu1 %v6545_v17, %s6655_s15  ;;  %v2883_v17 = vsub.f32 1.0, %v6543_v37 }
 0xf38   :  { %6548 = vpow2.f32 %v5477_v21  ;;  %v6547_v38 = vpop.eup %6546 }
 0xf39   :  { %2878 = vrot.lane.b32.xlu0 %v2876_v23, %s6655_s15  ;;  %v2556_v39 = vadd.f32 1.0, %v6547_v38  ;;  %v2889_v23 = vrot.slane %v7167_v9, 2 }
 0xf3b   :  { %2768 = vrot.lane.b32.xlu1 %v2759_v6, %s6655_s15  ;;  %6550 = vrcp.f32 %v2556_v39  ;;  %v2891_v32 = vmul.f32 %v6543_v37, %v2889_v23  ;;  %v2784_v37 = vrot.slane %v7183_v24, 6 }
 0xf42   :  { %v6549_v40 = vpop.eup %6548 }
 0xf43   :  { %v2765_v41 = vadd.f32 1.0, %v6549_v40 }
 0xf45   :  { %6552 = vrcp.f32 %v2765_v41  ;;  %v6551_v46 = vpop.eup %6550 }
 0xf46   :  { %v2563_v4 = vmul.f32 %v6551_v46, %v2561_v33 }
 0xf4f   :  { %v6553_v54 = vpop.eup %6552 }
 0xf50   :  { %v2778_v36 = vsub.f32 1.0, %v6553_v54 }
 0xfa7   :  { %v2677_v42 = vpop.permute.xlu0 %2676 }
 0xfa8   :  { %v7219_v43 = vadd.f32 %v2677_v42, %v2669_v20 }
 0xfa9   :  { %v2566_v45 = vpop.permute.xlu1 %2565 }
 0xfaa   :  { %6554 = vtanh.f32 %v7219_v43  ;;  %v2568_v52 = vmul.f32 %v6551_v46, %v2566_v45  ;;  %v2786_v45 = vmul.f32 %v6553_v54, %v2784_v37 }
 0xfab   :  { %v2879_v49 = vpop.permute.xlu0 %2878 }
 0xfac   :  { %v2881_v48 = vadd.f32 %v2879_v49, %v2476_v7  ;;  %2570 = vrot.lane.b32.xlu0 %v2568_v52, %s6656_s16 }
 0xfad   :  { %v2769_v59 = vpop.permute.xlu1 %2768 }
 0xfae   :  { %6556 = vtanh.f32 %v2881_v48  ;;  %v2771_v57 = vmul.f32 %v6553_v54, %v2769_v59  ;;  %v2919_v59 = vld [vmem:[#allocation2 + $0x8] sm:$0xc] }
 0xfb0   :  { %2773 = vrot.lane.b32.xlu0 %v2771_v57, %s6655_s15 }
 0xfb4   :  { %v6555_v29 = vpop.eup %6554 }
 0xfb5   :  { %2682 = vrot.lane.b32.xlu1 %v6555_v29, %s6655_s15 }
 0xfb8   :  { %v6557_v63 = vpop.eup %6556 }
 0xfb9   :  { %2885 = vrot.lane.b32.xlu1 %v6557_v63, %s6657_s19 }
0x101e   :  { %v2571_v1 = vpop.permute.xlu0 %2570 }
0x101f   :  { %v7227_v12 = vadd.f32 %v2571_v1, %v2563_v4  ;;  %v2920_v1 = vld [vmem:[#allocation2 + $0x18] sm:$0xc] }
0x1021   :  { %6558 = vtanh.f32 %v7227_v12 }
0x1022   :  { %v2774_v7 = vpop.permute.xlu0 %2773 }
0x1023   :  { %v2776_v50 = vadd.f32 %v2774_v7, %v2474_v27 }
0x1025   :  { %6560 = vtanh.f32 %v2776_v50 }
0x1027   :  { %v2683_v62 = vpop.permute.xlu1 %2682 }
0x1028   :  { %v7230_v30 = vmul.f32 %v6541_v47, %v2683_v62 }
0x102a   :  { %v3027_v15 = vrot.slane %v7230_v30, 4 }
0x102b   :  { %v6559_v6 = vpop.eup %6558  ;;  %v2886_v34 = vpop.permute.xlu1 %2885 }
0x102c   :  { %v2888_v35 = vmul.f32 %v2886_v34, %v2883_v17  ;;  %2576 = vrot.lane.b32.xlu1 %v6559_v6, %s6655_s15  ;;  %3028 = vrot.lane.b32.xlu0 %v3027_v15, %s6656_s16 }
0x102e   :  { %v7236_v21 = vadd.f32 %v2891_v32, %v2888_v35  ;;  %v2917_v35 = vld [vmem:[#allocation2 + $0x20] sm:$0x30] }
0x102f   :  { %v6561_v27 = vpop.eup %6560 }
0x1030   :  { %2780 = vrot.lane.b32.xlu1 %v6561_v27, %s6657_s19  ;;  %v3238_v47 = vrot.slane %v7236_v21, 4 }
0x1032   :  { %3239 = vrot.lane.b32.xlu0 %v3238_v47, %s6657_s19 }
0x109e   :  { %v3029_v38 = vpop.permute.xlu0 %3028  ;;  %v2577_v39 = vpop.permute.xlu1 %2576 }
0x109f   :  { %v7241_v40 = vmul.f32 %v6551_v46, %v2577_v39  ;;  %6015 = vmatmul.mubr.msk.f32.vlgmr.msra.gmra.mrb[30].mxu1 %vm268_vm3, %v3029_v38 }
0x10a0   :  { %6346 = vmatpush3.bf16.msra.mxu1 %v6821_v28  ;;  %6036 = vmatprep.mubr.msk.f32.mxu1 %vm6654_vm2, %v6652_v2 }
0x10a1   :  { %v2921_v41 = vrot.slane %v7241_v40, 2  ;;  %6347 = vmatprep.subr.bf16.mxu1 %v6653_v16 }
0x10a2   :  { %v2781_v20 = vpop.permute.xlu1 %2780 }
0x10a3   :  { %v2783_v42 = vmul.f32 %v2781_v20, %v2778_v36  ;;  %2922 = vrot.lane.b32.xlu0 %v2921_v41, %s6656_s16 }
0x10a4   :  { %6349 = vmatpush3.bf16.msra.mxu1 %v6834_v31  ;;  %v3240_v46 = vpop.permute.xlu0 %3239 }
0x10a5   :  { %v7252_v52 = vadd.f32 %v2786_v45, %v2783_v42  ;;  %6356 = vmatprep.subr.bf16.mxu1 %v6653_v16 }
0x10a7   :  { %6037 = vmatmul.mubr.msk.f32.vlgmr.msra.gmra.mrb[32].mxu1 %vm268_vm3, %v3240_v46  ;;  %v3133_v24 = vrot.slane %v7252_v52, 2 }
0x10a8   :  { %6358 = vmatpush3.bf16.msra.mxu1 %v6788_v22  ;;  %6058 = vmatprep.mubr.msk.f32.mxu1 %vm6654_vm2, %v6652_v2 }
0x10a9   :  { %3134 = vrot.lane.b32.xlu1 %v3133_v24, %s6657_s19  ;;  %6359 = vmatprep.subr.bf16.mxu1 %v6653_v16 }
0x10ac   :  { %6361 = vmatpush3.bf16.msra.mxu1 %v6805_v25 }
0x10ad   :  { %6368 = vmatprep.subr.bf16.mxu1 %v6653_v16 }
0x1115   :  { %v2923_v49 = vpop.permute.xlu0 %2922 }
0x1116   :  { %6004 = vmatmul.mubr.msk.f32.vlgmr.msra.gmra.mrb[26].mxu0 %vm268_vm3, %v2923_v49  ;;  %v2918_v49 = vld [vmem:[#allocation2 + $0x30] sm:$0x30] }
0x1117   :  { %6340 = vmatpush3.bf16.msra.mxu0 %v6745_v11  ;;  %6025 = vmatprep.mubr.msk.f32.mxu0 %vm6654_vm2, %v6652_v2 }
0x1118   :  { %6341 = vmatprep.subr.bf16.mxu0 %v6653_v16 }
0x111b   :  { %6343 = vmatpush3.bf16.msra.mxu0 %v6772_v19  ;;  %v3135_v22 = vpop.permute.xlu1 %3134 }
0x111c   :  { %6350 = vmatprep.subr.bf16.mxu0 %v6653_v16 }
0x111e   :  { %6026 = vmatmul.mubr.msk.f32.vlgmr.msra.gmra.mrb[28].mxu0 %vm268_vm3, %v3135_v22 }
0x111f   :  { %6352 = vmatpush3.bf16.msra.mxu0 %v6743_v10  ;;  %6047 = vmatprep.mubr.msk.f32.mxu0 %vm6654_vm2, %v6652_v2 }
0x1120   :  { %6353 = vmatprep.subr.bf16.mxu0 %v6653_v16 }
0x1123   :  { %6355 = vmatpush3.bf16.msra.mxu0 %v6770_v18 }
0x1124   :  { %6362 = vmatprep.subr.bf16.mxu0 %v6653_v16 }
0x1172   :  { %v3098_v25 = vpop.f32.mrb[30].mxu1 }
0x1173   :  { %v3103_v48 = vrot.slane %v3098_v25, 6  ;;  %v6016_v54 = vpop.f32.mrb[31].mxu1 }
0x1175   :  { %v3105_v57 = vadd.f32 %v3103_v48, %v2919_v59 }
0x1177   :  { %6562 = vtanh.f32 %v3105_v57  ;;  %v5483_v50 = vmul.f32 -1.442695, %v3105_v57 }
0x117a   :  { %v3309_v29 = vpop.f32.mrb[32].mxu1 }
0x117b   :  { %v3310_v63 = vadd.f32 %v7135_v26, %v3309_v29  ;;  %v6038_v33 = vpop.f32.mrb[33].mxu1 }
0x117d   :  { %v3314_v10 = vrot.slane %v3310_v63, 6  ;;  %v3114_v63 = vrot.slane %v7219_v43, 2 }
0x117f   :  { %3323 = vrot.lane.b32.xlu1 %v3314_v10, %s6655_s15  ;;  %v3316_v18 = vadd.f32 %v3314_v10, %v2920_v1 }
0x1181   :  { %v6563_v4 = vpop.eup %6562  ;;  %v5487_v7 = vmul.f32 -1.442695, %v3316_v18 }
0x1182   :  { %3118 = vrot.lane.b32.xlu0 %v6563_v4, %s6655_s15 }
0x1183   :  { %6564 = vpow2.f32 %v5487_v7 }
0x1184   :  { %6566 = vpow2.f32 %v5483_v50 }
0x118d   :  { %v6565_v62 = vpop.eup %6564 }
0x118e   :  { %v6567_v15 = vpop.eup %6566  ;;  %v3320_v17 = vadd.f32 1.0, %v6565_v62 }
0x118f   :  { %v3109_v23 = vadd.f32 1.0, %v6567_v15 }
0x1190   :  { %6568 = vrcp.f32 %v3320_v17 }
0x1191   :  { %6570 = vrcp.f32 %v3109_v23 }
0x119a   :  { %v7281_v47 = vpop.eup %6568 }
0x119b   :  { %v6571_v20 = vpop.eup %6570 }
0x119c   :  { %v3116_v33 = vmul.f32 %v6571_v20, %v3114_v63 }
0x11e9   :  { %v2992_v6 = vpop.f32.mrb[26].mxu0 }
0x11ea   :  { %v2997_v34 = vrot.slane %v2992_v6, 4  ;;  %v6005_v32 = vpop.f32.mrb[27].mxu0 }
0x11ec   :  { %v2999_v27 = vadd.f32 %v2997_v34, %v2917_v35 }
0x11ee   :  { %6572 = vtanh.f32 %v2999_v27  ;;  %v5481_v22 = vmul.f32 -1.442695, %v2999_v27 }
0x11f0   :  { %6574 = vpow2.f32 %v5481_v22 }
0x11f1   :  { %v3204_v38 = vpop.f32.mrb[28].mxu0  ;;  %v3324_v39 = vpop.permute.xlu1 %3323 }
0x11f2   :  { %v3205_v37 = vadd.f32 %v7146_v61, %v3204_v38  ;;  %v3326_v41 = vmul.f32 %v7281_v47, %v3324_v39  ;;  %v6027_v36 = vpop.f32.mrb[29].mxu0 }
0x11f4   :  { %3328 = vrot.lane.b32.xlu1 %v3326_v41, %s6655_s15  ;;  %v3119_v42 = vpop.permute.xlu0 %3118  ;;  %v3209_v46 = vrot.slane %v3205_v37, 4 }
0x11f5   :  { %v3121_v45 = vmul.f32 %v6571_v20, %v3119_v42  ;;  %v3333_v42 = vsub.f32 1.0, %v7281_v47 }
0x11f6   :  { %v3211_v25 = vadd.f32 %v3209_v46, %v2918_v49 }
0x11f7   :  { %3123 = vrot.lane.b32.xlu0 %v3121_v45, %s6656_s16  ;;  %v3339_v45 = vrot.slane %v7236_v21, 2 }
0x11f8   :  { %3218 = vrot.lane.b32.xlu1 %v3209_v46, %s6655_s15  ;;  %v6573_v24 = vpop.eup %6572  ;;  %v5485_v48 = vmul.f32 -1.442695, %v3211_v25 }
0x11fa   :  { %6576 = vpow2.f32 %v5485_v48  ;;  %v6575_v54 = vpop.eup %6574 }
0x11fb   :  { %3012 = vrot.lane.b32.xlu0 %v6573_v24, %s6655_s15  ;;  %v3003_v59 = vadd.f32 1.0, %v6575_v54 }
0x11fd   :  { %6578 = vrcp.f32 %v3003_v59 }
0x1204   :  { %v6577_v57 = vpop.eup %6576 }
0x1205   :  { %v3215_v29 = vadd.f32 1.0, %v6577_v57 }
0x1207   :  { %6580 = vrcp.f32 %v3215_v29  ;;  %v6579_v50 = vpop.eup %6578  ;;  %v3234_v29 = vrot.slane %v7252_v52, 6 }
0x1211   :  { %v6581_v23 = vpop.eup %6580 }
0x1212   :  { %v3228_v57 = vsub.f32 1.0, %v6581_v23 }
0x1266   :  { %v3329_v10 = vpop.permute.xlu1 %3328 }
0x1267   :  { %v3331_v7 = vadd.f32 %v3329_v10, %v2920_v1  ;;  %v3008_v1 = vrot.slane %v7227_v12, 6  ;;  %v3341_v12 = vmul.f32 %v7281_v47, %v3339_v45  ;;  %v3236_v10 = vmul.f32 %v6581_v23, %v3234_v29 }
0x1269   :  { %v3124_v4 = vpop.permute.xlu0 %3123  ;;  %v3010_v32 = vmul.f32 %v6579_v50, %v3008_v1 }
0x126a   :  { %v7290_v18 = vadd.f32 %v3124_v4, %v3116_v33  ;;  %v3219_v17 = vpop.permute.xlu1 %3218 }
0x126b   :  { %v3221_v6 = vmul.f32 %v6581_v23, %v3219_v17 }
0x126c   :  { %6582 = vtanh.f32 %v7290_v18 }
0x126d   :  { %v3013_v62 = vpop.permute.xlu0 %3012  ;;  %6584 = vtanh.f32 %v3331_v7 }
0x126e   :  { %v3015_v15 = vmul.f32 %v6579_v50, %v3013_v62  ;;  %v3369_v62 = vld [vmem:[#allocation2 + $0x8] sm:$0x3] }
0x1270   :  { %3017 = vrot.lane.b32.xlu0 %v3015_v15, %s6656_s16 }
0x1274   :  { %3223 = vrot.lane.b32.xlu0 %v3221_v6, %s6655_s15 }
0x1276   :  { %v6583_v43 = vpop.eup %6582 }
0x1277   :  { %3129 = vrot.lane.b32.xlu1 %v6583_v43, %s6655_s15  ;;  %v6585_v34 = vpop.eup %6584 }
0x127b   :  { %3335 = vrot.lane.b32.xlu1 %v6585_v34, %s6657_s19  ;;  %v3370_v34 = vld [vmem:[#allocation2 + $0x18] sm:$0x3] }
0x12e2   :  { %v3018_v35 = vpop.permute.xlu0 %3017 }
0x12e3   :  { %v7298_v27 = vadd.f32 %v3018_v35, %v3010_v32 }
0x12e5   :  { %6586 = vtanh.f32 %v7298_v27 }
0x12e6   :  { %v3224_v38 = vpop.permute.xlu0 %3223 }
0x12e7   :  { %v3226_v39 = vadd.f32 %v3224_v38, %v2918_v49 }
0x12e9   :  { %6588 = vtanh.f32 %v3226_v39  ;;  %v3130_v37 = vpop.permute.xlu1 %3129 }
0x12ea   :  { %v7301_v41 = vmul.f32 %v6571_v20, %v3130_v37 }
0x12ec   :  { %v3477_v36 = vrot.slane %v7301_v41, 2 }
0x12ed   :  { %v3336_v46 = vpop.permute.xlu1 %3335 }
0x12ee   :  { %v3338_v24 = vmul.f32 %v3336_v46, %v3333_v42  ;;  %3478 = vrot.lane.b32.xlu0 %v3477_v36, %s6656_s16  ;;  %v3367_v46 = vld [vmem:[#allocation2 + $0x20] sm:$0xc0] }
0x12ef   :  { %v6587_v22 = vpop.eup %6586 }
0x12f0   :  { %v7308_v25 = vadd.f32 %v3341_v12, %v3338_v24  ;;  %3023 = vrot.lane.b32.xlu1 %v6587_v22, %s6655_s15 }
0x12f2   :  { %v3685_v20 = vrot.slane %v7308_v25, 2 }
0x12f3   :  { %v6589_v49 = vpop.eup %6588 }
0x12f4   :  { %3230 = vrot.lane.b32.xlu1 %v6589_v49, %s6657_s19  ;;  %3686 = vrot.lane.b32.xlu0 %v3685_v20, %s6657_s19 }
0x1360   :  { %v3479_v48 = vpop.permute.xlu0 %3478 }
0x1361   :  { %6059 = vmatmul.mubr.msk.f32.vlgmr.msra.gmra.mrb[34].mxu1 %vm268_vm3, %v3479_v48 }
0x1362   :  { %6370 = vmatpush3.bf16.msra.mxu1 %v6821_v28  ;;  %v3024_v47 = vpop.permute.xlu1 %3023  ;;  %6080 = vmatprep.mubr.msk.f32.mxu1 %vm6654_vm2, %v6652_v2 }
0x1363   :  { %v7320_v54 = vmul.f32 %v6579_v50, %v3024_v47  ;;  %6371 = vmatprep.subr.bf16.mxu1 %v6653_v16 }
0x1365   :  { %v3371_v59 = vrot.slane %v7320_v54, 4 }
0x1366   :  { %6373 = vmatpush3.bf16.msra.mxu1 %v6834_v31  ;;  %v3687_v63 = vpop.permute.xlu0 %3686  ;;  %v3231_v33 = vpop.permute.xlu1 %3230 }
0x1367   :  { %v3233_v4 = vmul.f32 %v3231_v33, %v3228_v57  ;;  %3372 = vrot.lane.b32.xlu0 %v3371_v59, %s6656_s16  ;;  %6088 = vmatprep.subr.mxu1 %v6652_v2 }
0x1369   :  { %v7328_v28 = vadd.f32 %v3236_v10, %v3233_v4  ;;  %6081 = vmatmul.mubr.msk.f32.vlgmr.msra.gmra.mrb[36].mxu1 %vm268_vm3, %v3687_v63  ;;  %v3368_v4 = vld [vmem:[#allocation2 + $0x30] sm:$0xc0] }
0x136a   :  { %6090 = vmatprep.mubr.msk.f32.mxu1 %vm6654_vm2, %v6652_v2 }
0x136b   :  { %v3580_v7 = vrot.slane %v7328_v28, 4 }
0x136d   :  { %3581 = vrot.lane.b32.xlu1 %v3580_v7, %s6657_s19 }
0x13d9   :  { %v3373_v31 = vpop.permute.xlu0 %3372 }
0x13da   :  { %6048 = vmatmul.mubr.msk.f32.vlgmr.msra.gmra.mrb[30].mxu0 %vm268_vm3, %v3373_v31 }
0x13db   :  { %6364 = vmatpush3.bf16.msra.mxu0 %v6745_v11  ;;  %6069 = vmatprep.mubr.msk.f32.mxu0 %vm6654_vm2, %v6652_v2 }
0x13dc   :  { %6365 = vmatprep.subr.bf16.mxu0 %v6653_v16 }
0x13df   :  { %6367 = vmatpush3.bf16.msra.mxu0 %v6772_v19  ;;  %v3582_v50 = vpop.permute.xlu1 %3581 }
0x13e0   :  { %6083 = vmatprep.subr.mxu0 %v6652_v2 }
0x13e2   :  { %6070 = vmatmul.mubr.msk.f32.vlgmr.msra.gmra.mrb[32].mxu0 %vm268_vm3, %v3582_v50 }
0x13e3   :  { %6085 = vmatprep.mubr.msk.f32.mxu0 %vm6654_vm2, %v6652_v2 }
0x1434   :  { %v3548_v15 = vpop.f32.mrb[34].mxu1 }
0x1435   :  { %v3552_v17 = vadd.f32 %v3548_v15, %v3369_v62  ;;  %v6060_v23 = vpop.f32.mrb[35].mxu1 }
0x1437   :  { %6590 = vtanh.f32 %v3552_v17  ;;  %v5491_v35 = vmul.f32 -1.442695, %v3552_v17 }
0x143c   :  { %v3756_v11 = vpop.f32.mrb[36].mxu1 }
0x143d   :  { %v3757_v6 = vadd.f32 %v7135_v26, %v3756_v11  ;;  %v6082_v43 = vpop.f32.mrb[37].mxu1 }
0x143f   :  { %3768 = vrot.lane.b32.xlu0 %v3757_v6, %s6655_s15  ;;  %v3760_v1 = vadd.f32 %v3757_v6, %v3370_v34 }
0x1441   :  { %v6591_v19 = vpop.eup %6590  ;;  %v5495_v32 = vmul.f32 -1.442695, %v3760_v1 }
0x1442   :  { %3565 = vrot.lane.b32.xlu1 %v6591_v19, %s6655_s15 }
0x1443   :  { %6592 = vpow2.f32 %v5495_v32 }
0x1444   :  { %6594 = vpow2.f32 %v5491_v35 }
0x144d   :  { %v6593_v38 = vpop.eup %6592 }
0x144e   :  { %v6595_v39 = vpop.eup %6594  ;;  %v3764_v37 = vadd.f32 1.0, %v6593_v38 }
0x144f   :  { %v3556_v36 = vadd.f32 1.0, %v6595_v39 }
0x1450   :  { %6596 = vrcp.f32 %v3764_v37 }
0x1451   :  { %6598 = vrcp.f32 %v3556_v36 }
0x145a   :  { %v7348_v24 = vpop.eup %6596 }
0x145b   :  { %v7351_v48 = vpop.eup %6598 }
0x14ad   :  { %v3442_v42 = vpop.f32.mrb[30].mxu0 }
0x14ae   :  { %v3447_v26 = vrot.slane %v3442_v42, 2  ;;  %v6049_v45 = vpop.f32.mrb[31].mxu0 }
0x14af   :  { %v3778_v45 = vsub.f32 1.0, %v7348_v24 }
0x14b0   :  { %v3449_v12 = vadd.f32 %v3447_v26, %v3367_v46  ;;  %v3458_v26 = vrot.slane %v7298_v27, 6 }
0x14b1   :  { %v3769_v22 = vpop.permute.xlu0 %3768 }
0x14b2   :  { %6600 = vtanh.f32 %v3449_v12  ;;  %v3771_v49 = vmul.f32 %v7348_v24, %v3769_v22  ;;  %v5489_v50 = vmul.f32 -1.442695, %v3449_v12 }
0x14b4   :  { %3773 = vrot.lane.b32.xlu0 %v3771_v49, %s6655_s15  ;;  %v3566_v47 = vpop.permute.xlu1 %3565 }
0x14b5   :  { %v3651_v59 = vpop.f32.mrb[32].mxu0  ;;  %v3568_v57 = vmul.f32 %v7351_v48, %v3566_v47 }
0x14b6   :  { %v3652_v29 = vadd.f32 %v7146_v61, %v3651_v59  ;;  %v6071_v63 = vpop.f32.mrb[33].mxu0  ;;  %v3561_v61 = vrot.slane %v7290_v18, 2 }
0x14b7   :  { %3570 = vrot.lane.b32.xlu1 %v3568_v57, %s6656_s16 }
0x14b8   :  { %v3656_v33 = vrot.slane %v3652_v29, 2  ;;  %v3563_v43 = vmul.f32 %v7351_v48, %v3561_v61 }
0x14ba   :  { %3665 = vrot.lane.b32.xlu0 %v3656_v33, %s6655_s15  ;;  %v3658_v7 = vadd.f32 %v3656_v33, %v3368_v4 }
0x14bc   :  { %v6601_v10 = vpop.eup %6600  ;;  %v5493_v31 = vmul.f32 -1.442695, %v3658_v7 }
0x14bd   :  { %3462 = vrot.lane.b32.xlu1 %v6601_v10, %s6655_s15 }
0x14be   :  { %6602 = vpow2.f32 %v5493_v31 }
0x14bf   :  { %6604 = vpow2.f32 %v5489_v50 }
0x14c8   :  { %v6603_v62 = vpop.eup %6602 }
0x14c9   :  { %v6605_v15 = vpop.eup %6604  ;;  %v3662_v17 = vadd.f32 1.0, %v6603_v62 }
0x14ca   :  { %v3453_v23 = vadd.f32 1.0, %v6605_v15 }
0x14cb   :  { %6606 = vrcp.f32 %v3662_v17 }
0x14cc   :  { %6608 = vrcp.f32 %v3453_v23 }
0x14d5   :  { %v7361_v32 = vpop.eup %6606 }
0x14d6   :  { %v7364_v39 = vpop.eup %6608 }
0x14d7   :  { %v3460_v46 = vmul.f32 %v7364_v39, %v3458_v26 }
0x1526   :  { %v3774_v11 = vpop.permute.xlu0 %3773 }
0x1527   :  { %v3776_v6 = vadd.f32 %v3774_v11, %v3370_v34 }
0x1529   :  { %6610 = vtanh.f32 %v3776_v6  ;;  %v3571_v19 = vpop.permute.xlu1 %3570 }
0x152a   :  { %v3573_v1 = vadd.f32 %v3571_v19, %v3563_v43  ;;  %v3877_v19 = vld [vmem:[#allocation6 + $0x8] sm:$0x3] }
0x152c   :  { %6612 = vtanh.f32 %v3573_v1  ;;  %v3666_v35 = vpop.permute.xlu0 %3665 }
0x152d   :  { %v3668_v38 = vmul.f32 %v7361_v32, %v3666_v35  ;;  %v3821_v35 = vld [vmem:[#allocation4 + $0x8] sm:$0x3] }
0x152f   :  { %3670 = vrot.lane.b32.xlu0 %v3668_v38, %s6655_s15  ;;  %v3463_v37 = vpop.permute.xlu1 %3462 }
0x1530   :  { %v3465_v18 = vmul.f32 %v7364_v39, %v3463_v37 }
0x1533   :  { %v6611_v36 = vpop.eup %6610  ;;  %3467 = vrot.lane.b32.xlu0 %v3465_v18, %s6656_s16 }
0x1534   :  { %3780 = vrot.lane.b32.xlu1 %v6611_v36, %s6657_s19 }
0x1536   :  { %v6613_v34 = vpop.eup %6612 }
0x1537   :  { %3350 = vrot.lane.b32.xlu0 %v7301_v41, %s6656_s16 }
0x1538   :  { %3576 = vrot.lane.b32.xlu1 %v6613_v34, %s6655_s15 }
0x153b   :  { %2900 = vrot.lane.b32.xlu0 %v7230_v30, %s6656_s16 }
0x153c   :  { %3362 = vrot.lane.b32.xlu1 %v7308_v25, %s6657_s19 }
0x153f   :  { %1586 = vrot.lane.b32.xlu0 %v7018_v55, %s6657_s19 }
0x1540   :  { %2912 = vrot.lane.b32.xlu1 %v7236_v21, %s6657_s19  ;;  %v3785_v21 = vmul.f32 %v7348_v24, %v3685_v20 }
0x1544   :  { %2468 = vrot.lane.b32.xlu1 %v7167_v9, %s6657_s19 }
0x1548   :  { %2456 = vrot.lane.b32.xlu1 %v7162_v53, %s6656_s16 }
0x15a1   :  { %v3671_v41 = vpop.permute.xlu0 %3670 }
0x15a2   :  { %v3673_v42 = vadd.f32 %v3671_v41, %v3368_v4 }
0x15a4   :  { %6614 = vtanh.f32 %v3673_v42 }
0x15a5   :  { %v3468_v30 = vpop.permute.xlu0 %3467 }
0x15a6   :  { %v3781_v55 = vpop.permute.xlu1 %3780  ;;  %v3470_v9 = vadd.f32 %v3468_v30, %v3460_v46 }
0x15a7   :  { %v3783_v12 = vmul.f32 %v3781_v55, %v3778_v45 }
0x15a8   :  { %6616 = vtanh.f32 %v3470_v9 }
0x15a9   :  { %v3786_v22 = vadd.f32 %v3785_v21, %v3783_v12  ;;  %v3351_v53 = vpop.permute.xlu0 %3350 }
0x15aa   :  { %3354 = vst.msk [vmem:[#allocation4] sm:$0xc] %vm1120_vm5, %v3351_v53  ;;  %v3577_v49 = vpop.permute.xlu1 %3576 }
0x15ab   :  { %3805 = vrot.lane.b32.xlu0 %v3786_v22, %s6657_s19  ;;  %v3579_v27 = vmul.f32 %v7351_v48, %v3577_v49 }
0x15ad   :  { %v2901_v47 = vpop.permute.xlu0 %2900 }
0x15ae   :  { %v6615_v59 = vpop.eup %6614  ;;  %2904 = vst.msk [vmem:[#allocation4] sm:$0x30] %vm1127_vm6, %v2901_v47  ;;  %v3363_v25 = vpop.permute.xlu1 %3362 }
0x15af   :  { %3366 = vst.msk [vmem:[#allocation6] sm:$0xc] %vm1120_vm5, %v3363_v25  ;;  %3677 = vrot.lane.b32.xlu1 %v6615_v59, %s6657_s19  ;;  %3794 = vrot.lane.b32.xlu0 %v3579_v27, %s6656_s16 }
0x15b1   :  { %v1587_v20 = vpop.permute.xlu0 %1586 }
0x15b2   :  { %1590 = vst.msk [vmem:[#allocation6 + $0x8] sm:$0xc] %vm1120_vm5, %v1587_v20  ;;  %v2913_v24 = vpop.permute.xlu1 %2912  ;;  %v6617_v48 = vpop.eup %6616 }
0x15b3   :  { %2916 = vst.msk [vmem:[#allocation6] sm:$0x30] %vm1127_vm6, %v2913_v24  ;;  %1574 = vrot.lane.b32.xlu1 %v7012_v44, %s6656_s16  ;;  %1136 = vrot.lane.b32.xlu0 %v6950_v58, %s6657_s19 }
0x15b6   :  { %v2469_v57 = vpop.permute.xlu1 %2468 }
0x15b7   :  { %2472 = vst.msk [vmem:[#allocation6] sm:$0xc0] %vm682_vm7, %v2469_v57  ;;  %3473 = vrot.lane.b32.xlu1 %v6617_v48, %s6655_s15  ;;  %690 = vrot.lane.b32.xlu0 %v6883_v13, %s6657_s19  ;;  %v3818_v13 = vld [vmem:[#allocation4 + $0x2] sm:$0x3] }
0x15b9   :  { %v3878_v15 = vld [vmem:[#allocation6 + $0xa] sm:$0x3] }
0x15ba   :  { %v2457_v29 = vpop.permute.xlu1 %2456 }
0x15bb   :  { %2460 = vst.msk [vmem:[#allocation4] sm:$0xc0] %vm682_vm7, %v2457_v29  ;;  %678 = vrot.lane.b32.xlu1 %v6879_v3, %s6656_s16  ;;  %1123 = vrot.lane.b32.xlu0 %v6944_v51, %s6656_s16  ;;  %v3874_v3 = vld [vmem:[#allocation6 + $0x2] sm:$0x3]  ;;  %v3875_v51 = vld [vmem:[#allocation6 + $0x4] sm:$0x3] }
0x15bc   :  { %v3865_v29 = vld [vmem:[#allocation5] sm:$0x3] }
0x15be   :  { %v3876_v58 = vld [vmem:[#allocation6 + $0x6] sm:$0x3] }
0x15bf   :  { %1116 = vrot.lane.b32.xlu1 %v6955_v0, %s6656_s16  ;;  %1130 = vrot.lane.b32.xlu0 %v6966_v14, %s6657_s19  ;;  %v3819_v0 = vld [vmem:[#allocation4 + $0x4] sm:$0x3] }
0x15c2   :  { %v3820_v14 = vld [vmem:[#allocation4 + $0x6] sm:$0x3] }
0x15c3   :  { %2024 = vrot.lane.b32.xlu1 %v7109_v5, %s6657_s19  ;;  %1580 = vrot.lane.b32.xlu0 %v7036_v8, %s6657_s19  ;;  %v3681_v8 = vrot.slane %v7328_v28, 6 }
0x15c7   :  { %2012 = vrot.lane.b32.xlu1 %v7097_v56, %s6656_s16  ;;  %1568 = vrot.lane.b32.xlu0 %v7025_v60, %s6656_s16  ;;  %v3675_v60 = vsub.f32 1.0, %v7361_v32 }
0x15cb   :  { %2906 = vrot.lane.b32.xlu1 %v7252_v52, %s6657_s19  ;;  %3891 = vrot.lane.b32.xlu0 %v3874_v3, %s6656_s16 }
0x15cf   :  { %3356 = vrot.lane.b32.xlu1 %v7328_v28, %s6657_s19  ;;  %2894 = vrot.lane.b32.xlu0 %v7241_v40, %s6656_s16  ;;  %v3683_v40 = vmul.f32 %v7361_v32, %v3681_v8 }
0x15d3   :  { %3835 = vrot.lane.b32.xlu0 %v3818_v13, %s6656_s16  ;;  %3893 = vrot.lane.b32.xlu1 %v3875_v51, %s6656_s16 }
0x15d7   :  { %3895 = vrot.lane.b32.xlu1 %v3876_v58, %s6656_s16 }
0x15db   :  { %3837 = vrot.lane.b32.xlu1 %v3819_v0, %s6656_s16 }
0x15df   :  { %3839 = vrot.lane.b32.xlu1 %v3820_v14, %s6656_s16  ;;  %v3809_v14 = vld [vmem:[#allocation3] sm:$0x3] }
0x161d   :  { %v3806_v44 = vpop.permute.xlu0 %3805 }
0x161e   :  { %3808 = vst.msk [vmem:[#allocation6] sm:$0x3] %vm675_vm4, %v3806_v44 }
0x1621   :  { %v3795_v56 = vpop.permute.xlu0 %3794  ;;  %v3678_v5 = vpop.permute.xlu1 %3677 }
0x1622   :  { %3797 = vst.msk [vmem:[#allocation4] sm:$0x3] %vm675_vm4, %v3795_v56  ;;  %v3680_v52 = vmul.f32 %v3678_v5, %v3675_v60  ;;  %vm5420_vm4 = vcmask 23552  }
0x1624   :  { %v3684_v63 = vadd.f32 %v3683_v40, %v3680_v52 }
0x1625   :  { %v1137_v33 = vpop.permute.xlu0 %1136  ;;  %v1575_v10 = vpop.permute.xlu1 %1574  ;;  %v3873_v11 = vld [vmem:[#allocation6] sm:$0x3] }
0x1626   :  { %1140 = vst.msk [vmem:[#allocation6 + $0x8] sm:$0x30] %vm1127_vm6, %v1137_v33  ;;  %3799 = vrot.lane.b32.xlu0 %v3684_v63, %s6657_s19 }
0x1627   :  { %1578 = vst.msk [vmem:[#allocation4 + $0x8] sm:$0xc] %vm1120_vm5, %v1575_v10  ;;  %v3869_v10 = vld [vmem:[#allocation5 + $0x8] sm:$0x3] }
0x1629   :  { %v691_v4 = vpop.permute.xlu0 %690  ;;  %v3474_v7 = vpop.permute.xlu1 %3473  ;;  %v3817_v31 = vld [vmem:[#allocation4] sm:$0x3] }
0x162a   :  { %694 = vst.msk [vmem:[#allocation6 + $0x8] sm:$0xc0] %vm682_vm7, %v691_v4  ;;  %3833 = vrot.lane.b32.xlu1 %v3817_v31, %s6656_s16  ;;  %3344 = vrot.lane.b32.xlu0 %v7320_v54, %s6656_s16  ;;  %v3476_v28 = vmul.f32 %v7364_v39, %v3474_v7 }
0x162d   :  { %v1124_v50 = vpop.permute.xlu0 %1123  ;;  %v679_v62 = vpop.permute.xlu1 %678  ;;  %v3879_v36 = vld [vmem:[#allocation6 + $0xc] sm:$0x3] }
0x162e   :  { %1128 = vst.msk [vmem:[#allocation4 + $0x8] sm:$0x30] %vm1127_vm6, %v1124_v50  ;;  %3899 = vrot.lane.b32.xlu1 %v3878_v15, %s6656_s16  ;;  %3788 = vrot.lane.b32.xlu0 %v3476_v28, %s6656_s16  ;;  %v3822_v61 = vld [vmem:[#allocation4 + $0xa] sm:$0x3] }
0x162f   :  { %683 = vst.msk [vmem:[#allocation4 + $0x8] sm:$0xc0] %vm682_vm7, %v679_v62  ;;  %v3813_v62 = vld [vmem:[#allocation3 + $0x8] sm:$0x3] }
0x1631   :  { %v1131_v17 = vpop.permute.xlu0 %1130  ;;  %v1117_v23 = vpop.permute.xlu1 %1116  ;;  %v3880_v43 = vld [vmem:[#allocation6 + $0xe] sm:$0x3] }
0x1632   :  { %1134 = vst.msk [vmem:[#allocation5] sm:$0xc] %vm1120_vm5, %v1131_v17  ;;  %1121 = vst.msk [vmem:[#allocation3] sm:$0xc] %vm1120_vm5, %v1117_v23  ;;  %3843 = vrot.lane.b32.xlu1 %v3822_v61, %s6656_s16  ;;  %3889 = vrot.lane.b32.xlu0 %v3873_v11, %s6656_s16 }
0x1635   :  { %v1581_v54 = vpop.permute.xlu0 %1580  ;;  %v2025_v6 = vpop.permute.xlu1 %2024  ;;  %v3823_v26 = vld [vmem:[#allocation4 + $0xc] sm:$0x3] }
0x1636   :  { %1584 = vst.msk [vmem:[#allocation5] sm:$0x30] %vm1127_vm6, %v1581_v54  ;;  %3903 = vrot.lane.b32.xlu1 %v3880_v43, %s6656_s16  ;;  %3897 = vrot.lane.b32.xlu0 %v3877_v19, %s6656_s16  ;;  %v3824_v38 = vld [vmem:[#allocation4 + $0xe] sm:$0x3] }
0x1637   :  { %2028 = vst.msk [vmem:[#allocation5] sm:$0xc0] %vm682_vm7, %v2025_v6 }
0x1639   :  { %v1569_v1 = vpop.permute.xlu0 %1568  ;;  %v2013_v32 = vpop.permute.xlu1 %2012  ;;  %v3866_v39 = vld [vmem:[#allocation5 + $0x2] sm:$0x3] }
0x163a   :  { %1572 = vst.msk [vmem:[#allocation3] sm:$0x30] %vm1127_vm6, %v1569_v1  ;;  %3841 = vrot.lane.b32.xlu0 %v3821_v35, %s6656_s16  ;;  %3847 = vrot.lane.b32.xlu1 %v3824_v38, %s6656_s16  ;;  %v3810_v45 = vld [vmem:[#allocation3 + $0x2] sm:$0x3] }
0x163b   :  { %2016 = vst.msk [vmem:[#allocation3] sm:$0xc0] %vm682_vm7, %v2013_v32 }
0x163d   :  { %v3892_v37 = vpop.permute.xlu0 %3891  ;;  %v2907_v18 = vpop.permute.xlu1 %2906  ;;  %v3867_v44 = vld [vmem:[#allocation5 + $0x4] sm:$0x3] }
0x163e   :  { %v3914_v34 = vsel %vm268_vm3, %v3866_v39, %v3892_v37  ;;  %2910 = vst.msk [vmem:[#allocation5 + $0x8] sm:$0xc] %vm1120_vm5, %v2907_v18  ;;  %3901 = vrot.lane.b32.xlu0 %v3879_v36, %s6656_s16  ;;  %v3868_v21 = vld [vmem:[#allocation5 + $0x6] sm:$0x3] }
0x163f   :  { %6089 = vmatpush3.xpose.msk.msra.mxu1 %vm3921_vm8, %v3914_v34 }
0x1640   :  { %6098 = vmatprep.subr.mxu1 %v6652_v2 }
0x1641   :  { %v2895_v41 = vpop.permute.xlu0 %2894  ;;  %v3357_v42 = vpop.permute.xlu1 %3356  ;;  %v3811_v63 = vld [vmem:[#allocation3 + $0x4] sm:$0x3] }
0x1642   :  { %2898 = vst.msk [vmem:[#allocation3 + $0x8] sm:$0xc] %vm1120_vm5, %v2895_v41  ;;  %3845 = vrot.lane.b32.xlu0 %v3823_v26, %s6656_s16  ;;  %v3812_v53 = vld [vmem:[#allocation3 + $0x6] sm:$0x3] }
0x1643   :  { %3360 = vst.msk [vmem:[#allocation5 + $0x8] sm:$0x30] %vm1127_vm6, %v3357_v42 }
0x1645   :  { %v3836_v30 = vpop.permute.xlu0 %3835  ;;  %v3894_v46 = vpop.permute.xlu1 %3893  ;;  %v3870_v24 = vld [vmem:[#allocation5 + $0xa] sm:$0x3] }
0x1646   :  { %v7475_v55 = vsel %vm268_vm3, %v3810_v45, %v3836_v30  ;;  %v3915_v40 = vsel %vm268_vm3, %v3867_v44, %v3894_v46 }
0x1647   :  { %6091 = vmatmul.mubr.msk.f32.vlgmr.msra.gmra.mrb[38].mxu1 %vm3921_vm8, %v7475_v55 }
0x1648   :  { %6100 = vmatprep.mubr.msk.f32.mxu1 %vm6654_vm2, %v6652_v2 }
0x1649   :  { %v3896_v12 = vpop.permute.xlu1 %3895  ;;  %v3814_v13 = vld [vmem:[#allocation3 + $0xa] sm:$0x3] }
0x164a   :  { %v3916_v9 = vsel %vm268_vm3, %v3868_v21, %v3896_v12  ;;  %v3871_v23 = vld [vmem:[#allocation5 + $0xc] sm:$0x3] }
0x164b   :  { %6099 = vmatpush3.xpose.msk.msra.mxu1 %vm3921_vm8, %v3916_v9 }
0x164c   :  { %6108 = vmatprep.subr.mxu1 %v6652_v2 }
0x164d   :  { %v3838_v22 = vpop.permute.xlu1 %3837 }
0x164e   :  { %v7517_v33 = vsel %vm268_vm3, %v3811_v63, %v3838_v22 }
0x1651   :  { %v3840_v49 = vpop.permute.xlu1 %3839 }
0x1652   :  { %v7485_v27 = vsel %vm268_vm3, %v3812_v53, %v3840_v49 }
0x1653   :  { %6101 = vmatmul.mubr.msk.f32.vlgmr.msra.gmra.mrb[40].mxu1 %vm3921_vm8, %v7485_v27 }
0x1654   :  { %6110 = vmatprep.mubr.msk.f32.mxu1 %vm6654_vm2, %v6652_v2 }
0x1698   :  { %v3800_v47 = vpop.permute.xlu0 %3799 }
0x1699   :  { %3803 = vst.msk [vmem:[#allocation5 + $0x8] sm:$0xc0] %vm682_vm7, %v3800_v47 }
0x169c   :  { %v3345_v59 = vpop.permute.xlu0 %3344  ;;  %v3834_v25 = vpop.permute.xlu1 %3833 }
0x169d   :  { %3348 = vst.msk [vmem:[#allocation3 + $0x8] sm:$0x30] %vm1127_vm6, %v3345_v59  ;;  %v3857_v60 = vsel %vm268_vm3, %v3809_v14, %v3834_v25 }
0x16a0   :  { %v3789_v20 = vpop.permute.xlu0 %3788  ;;  %v3900_v48 = vpop.permute.xlu1 %3899  ;;  %v3872_v56 = vld [vmem:[#allocation5 + $0xe] sm:$0x3] }
0x16a1   :  { %3792 = vst.msk [vmem:[#allocation3 + $0x8] sm:$0xc0] %vm682_vm7, %v3789_v20  ;;  %v3918_v57 = vsel %vm268_vm3, %v3870_v24, %v3900_v48 }
0x16a2   :  { %6109 = vmatpush3.xpose.msk.msra.mxu1 %vm3921_vm8, %v3918_v57 }
0x16a3   :  { %6118 = vmatprep.subr.mxu1 %v6652_v2 }
0x16a4   :  { %v3890_v3 = vpop.permute.xlu0 %3889  ;;  %v3844_v51 = vpop.permute.xlu1 %3843  ;;  %v3815_v11 = vld [vmem:[#allocation3 + $0xc] sm:$0x3] }
0x16a5   :  { %v3913_v58 = vsel %vm268_vm3, %v3865_v29, %v3890_v3  ;;  %v7499_v0 = vsel %vm268_vm3, %v3814_v13, %v3844_v51 }
0x16a6   :  { %6084 = vmatpush3.xpose.msk.msra.mxu0 %vm3921_vm8, %v3913_v58  ;;  %6111 = vmatmul.mubr.msk.f32.vlgmr.msra.gmra.mrb[42].mxu1 %vm3921_vm8, %v7499_v0 }
0x16a7   :  { %6093 = vmatprep.subr.mxu0 %v6652_v2  ;;  %6120 = vmatprep.mubr.msk.f32.mxu1 %vm6654_vm2, %v6652_v2 }
0x16a8   :  { %v3898_v8 = vpop.permute.xlu0 %3897  ;;  %v3904_v5 = vpop.permute.xlu1 %3903  ;;  %v3816_v7 = vld [vmem:[#allocation3 + $0xe] sm:$0x3] }
0x16a9   :  { %v3920_v52 = vsel %vm268_vm3, %v3872_v56, %v3904_v5  ;;  %6086 = vmatmul.mubr.msk.f32.vlgmr.msra.gmra.mrb[34].mxu0 %vm3921_vm8, %v3857_v60  ;;  %v3917_v28 = vsel %vm268_vm3, %v3869_v10, %v3898_v8 }
0x16aa   :  { %6094 = vmatpush3.xpose.msk.msra.mxu0 %vm3921_vm8, %v3915_v40  ;;  %6119 = vmatpush3.xpose.msk.msra.mxu1 %vm3921_vm8, %v3920_v52 }
0x16ab   :  { %6095 = vmatprep.mubr.msk.f32.mxu0 %vm6654_vm2, %v6652_v2  ;;  %6103 = vmatprep.subr.mxu0 %v6652_v2 }
0x16ac   :  { %v3842_v4 = vpop.permute.xlu0 %3841  ;;  %v3848_v31 = vpop.permute.xlu1 %3847  ;;  %6128 = vmatprep.subr.mxu1 %v6652_v2 }
0x16ad   :  { %v7522_v50 = vsel %vm268_vm3, %v3816_v7, %v3848_v31  ;;  %6096 = vmatmul.mubr.msk.f32.vlgmr.msra.gmra.mrb[36].mxu0 %vm3921_vm8, %v7517_v33  ;;  %v7534_v15 = vsel %vm268_vm3, %v3813_v62, %v3842_v4 }
0x16ae   :  { %6104 = vmatpush3.xpose.msk.msra.mxu0 %vm3921_vm8, %v3917_v28  ;;  %6121 = vmatmul.mubr.msk.f32.vlgmr.msra.gmra.mrb[44].mxu1 %vm3921_vm8, %v7522_v50 }
0x16af   :  { %6129 = vmatpush3.msk.msra.mxu1 %vm4647_vm9, %v7475_v55  ;;  %6105 = vmatprep.mubr.msk.f32.mxu0 %vm6654_vm2, %v6652_v2 }
0x16b0   :  { %v3902_v17 = vpop.permute.xlu0 %3901  ;;  %6113 = vmatprep.subr.mxu0 %v6652_v2  ;;  %6130 = vmatprep.mubr.msk.f32.mxu1 %vm6654_vm2, %v6652_v2 }
0x16b1   :  { %v3919_v61 = vsel %vm268_vm3, %v3871_v23, %v3902_v17  ;;  %6106 = vmatmul.mubr.msk.f32.vlgmr.msra.gmra.mrb[38].mxu0 %vm3921_vm8, %v7534_v15  ;;  %6138 = vmatprep.subr.mxu1 %v6652_v2 }
0x16b2   :  { %6114 = vmatpush3.xpose.msk.msra.mxu0 %vm3921_vm8, %v3919_v61  ;;  %6115 = vmatprep.mubr.msk.f32.mxu0 %vm6654_vm2, %v6652_v2 }
0x16b3   :  { %6123 = vmatprep.subr.mxu0 %v6652_v2 }
0x16b4   :  { %v3846_v54 = vpop.permute.xlu0 %3845 }
0x16b5   :  { %v7548_v6 = vsel %vm268_vm3, %v3815_v11, %v3846_v54  ;;  %vm5346_vm3 = vcmask 1047559  }
0x16b6   :  { %6116 = vmatmul.mubr.msk.f32.vlgmr.msra.gmra.mrb[40].mxu0 %vm3921_vm8, %v7548_v6 }
0x16b7   :  { %6124 = vmatpush3.msk.msra.mxu0 %vm4647_vm9, %v3857_v60  ;;  %6125 = vmatprep.mubr.msk.f32.mxu0 %vm6654_vm2, %v6652_v2 }
0x16b8   :  { %6133 = vmatprep.subr.mxu0 %v6652_v2 }
0x171a   :  { %v4070_v43 = vpop.f32.mrb[38].mxu1 }
0x171b   :  { %v6092_v19 = vpop.f32.mrb[39].mxu1  ;;  %v4534_v1 = vsel %vm4530_vm10, %v4070_v43, -inf }
0x171c   :  { %4535 = vmax.xlane.f32.xlu1 %v4534_v1 }
0x1726   :  { %v4222_v32 = vpop.f32.mrb[40].mxu1 }
0x1727   :  { %v6102_v35 = vpop.f32.mrb[41].mxu1  ;;  %v4540_v55 = vsel %vm4530_vm10, %v4222_v32, -inf }
0x1779   :  { %v4374_v38 = vpop.f32.mrb[42].mxu1 }
0x177a   :  { %v6112_v39 = vpop.f32.mrb[43].mxu1  ;;  %v4546_v9 = vsel %vm4530_vm10, %v4374_v38, -inf }
0x177c   :  { %v3994_v37 = vpop.f32.mrb[34].mxu0 }
0x177d   :  { %v6087_v18 = vpop.f32.mrb[35].mxu0  ;;  %v4531_v36 = vsel %vm4530_vm10, %v3994_v37, -inf }
0x177e   :  { %4532 = vmax.xlane.f32.xlu0 %v4531_v36 }
0x1780   :  { %v4146_v34 = vpop.f32.mrb[36].mxu0 }
0x1781   :  { %v6097_v41 = vpop.f32.mrb[37].mxu0  ;;  %v4526_v42 = vpop.f32.mrb[44].mxu1  ;;  %v4537_v26 = vsel %vm4530_vm10, %v4146_v34, -inf }
0x1782   :  { %4538 = vmax.xlane.f32.xlu0 %v4537_v26  ;;  %v6122_v30 = vpop.f32.mrb[45].mxu1  ;;  %v4552_v49 = vsel %vm4530_vm10, %v4526_v42, -inf }
0x1784   :  { %v4298_v45 = vpop.f32.mrb[38].mxu0 }
0x1785   :  { %v6107_v46 = vpop.f32.mrb[39].mxu0  ;;  %v4543_v21 = vsel %vm4530_vm10, %v4298_v45, -inf }
0x1786   :  { %4541 = vmax.xlane.f32.xlu0 %v4540_v55  ;;  %4544 = vmax.xlane.f32.xlu1 %v4543_v21 }
0x1789   :  { %v4450_v12 = vpop.f32.mrb[40].mxu0 }
0x178a   :  { %v6117_v22 = vpop.f32.mrb[41].mxu0  ;;  %4547 = vmax.xlane.f32.xlu0 %v4546_v9  ;;  %v4549_v53 = vsel %vm4530_vm10, %v4450_v12, -inf }
0x178b   :  { %4550 = vmax.xlane.f32.xlu1 %v4549_v53 }
0x178e   :  { %4553 = vmax.xlane.f32.xlu0 %v4552_v49 }
0x17a9   :  { %v4536_v47 = vpop.xlane.xlu1 %4535 }
0x17aa   :  { %v4556_v59 = vsub.f32 %v4070_v43, %v4536_v47 }
0x17ac   :  { %v4565_v25 = vmul.f32 1.442695, %v4556_v59 }
0x17ae   :  { %6618 = vpow2.f32 %v4565_v25 }
0x17b8   :  { %v6619_v20 = vpop.eup %6618 }
0x17b9   :  { %v4582_v24 = vsel %vm4530_vm10, %v6619_v20, 0.0 }
0x17ba   :  { %4583 = vadd.xlane.f32.xlu0 %v4582_v24 }
0x180b   :  { %v4533_v48 = vpop.xlane.xlu0 %4532 }
0x180c   :  { %v4555_v57 = vsub.f32 %v3994_v37, %v4533_v48 }
0x180e   :  { %v4563_v29 = vmul.f32 1.442695, %v4555_v57 }
0x180f   :  { %v4539_v3 = vpop.xlane.xlu0 %4538 }
0x1810   :  { %6620 = vpow2.f32 %v4563_v29  ;;  %v4557_v13 = vsub.f32 %v4146_v34, %v4539_v3 }
0x1812   :  { %v4567_v51 = vmul.f32 1.442695, %v4557_v13 }
0x1813   :  { %v4542_v58 = vpop.xlane.xlu0 %4541  ;;  %v4545_v14 = vpop.xlane.xlu1 %4544 }
0x1814   :  { %6622 = vpow2.f32 %v4567_v51  ;;  %v4558_v44 = vsub.f32 %v4222_v32, %v4542_v58  ;;  %v4559_v60 = vsub.f32 %v4298_v45, %v4545_v14 }
0x1816   :  { %v4569_v8 = vmul.f32 1.442695, %v4558_v44  ;;  %v4571_v56 = vmul.f32 1.442695, %v4559_v60 }
0x1817   :  { %v4548_v5 = vpop.xlane.xlu0 %4547 }
0x1818   :  { %6624 = vpow2.f32 %v4569_v8  ;;  %v4560_v40 = vsub.f32 %v4374_v38, %v4548_v5  ;;  %v4551_v52 = vpop.xlane.xlu1 %4550 }
0x1819   :  { %6626 = vpow2.f32 %v4571_v56  ;;  %v4561_v63 = vsub.f32 %v4450_v12, %v4551_v52 }
0x181a   :  { %v6621_v10 = vpop.eup %6620  ;;  %v4573_v4 = vmul.f32 1.442695, %v4560_v40 }
0x181b   :  { %v4575_v7 = vmul.f32 1.442695, %v4561_v63  ;;  %v4554_v31 = vpop.xlane.xlu0 %4553  ;;  %v4579_v28 = vsel %vm4530_vm10, %v6621_v10, 0.0 }
0x181c   :  { %6628 = vpow2.f32 %v4573_v4  ;;  %v4562_v62 = vsub.f32 %v4526_v42, %v4554_v31  ;;  %4580 = vadd.xlane.f32.xlu1 %v4579_v28 }
0x181d   :  { %6630 = vpow2.f32 %v4575_v7 }
0x181e   :  { %v6623_v17 = vpop.eup %6622  ;;  %v4577_v23 = vmul.f32 1.442695, %v4562_v62 }
0x181f   :  { %v4585_v61 = vsel %vm4530_vm10, %v6623_v17, 0.0 }
0x1820   :  { %6632 = vpow2.f32 %v4577_v23  ;;  %4586 = vadd.xlane.f32.xlu1 %v4585_v61  ;;  %v5313_v61 = vld [vmem:[%s7682_s9 + $0x10] sm:$0xff] }
0x1822   :  { %v7567_v11 = vpop.eup %6624 }
0x1823   :  { %v7569_v54 = vpop.eup %6626  ;;  %v4588_v43 = vsel %vm4530_vm10, %v7567_v11, 0.0 }
0x1824   :  { %4589 = vadd.xlane.f32.xlu0 %v4588_v43  ;;  %v4591_v19 = vsel %vm4530_vm10, %v7569_v54, 0.0  ;;  %v5315_v43 = vld [vmem:[%s7682_s9 + $0x20] sm:$0xff] }
0x1825   :  { %4592 = vadd.xlane.f32.xlu1 %v4591_v19  ;;  %v5316_v19 = vld [vmem:[%s7682_s9 + $0x28] sm:$0xff] }
0x1826   :  { %v7575_v1 = vpop.eup %6628 }
0x1827   :  { %v7577_v32 = vpop.eup %6630  ;;  %v4594_v35 = vsel %vm4530_vm10, %v7575_v1, 0.0 }
0x1828   :  { %4595 = vadd.xlane.f32.xlu0 %v4594_v35  ;;  %v4597_v38 = vsel %vm4530_vm10, %v7577_v32, 0.0  ;;  %v5317_v35 = vld [vmem:[%s7682_s9 + $0x30] sm:$0xff] }
0x1829   :  { %4598 = vadd.xlane.f32.xlu1 %v4597_v38  ;;  %v5318_v38 = vld [vmem:[%s7682_s9 + $0x38] sm:$0xff] }
0x182a   :  { %v7583_v39 = vpop.eup %6632 }
0x182b   :  { %v4600_v37 = vsel %vm4530_vm10, %v7583_v39, 0.0 }
0x182c   :  { %4601 = vadd.xlane.f32.xlu0 %v4600_v37 }
0x1847   :  { %v4584_v18 = vpop.xlane.xlu0 %4583 }
0x1848   :  { %6634 = vrcp.f32 %v4584_v18 }
0x1852   :  { %v6635_v36 = vpop.eup %6634 }
0x1853   :  { %v4612_v34 = vmul.f32 %v6635_v36, %v4584_v18 }
0x1855   :  { %v4620_v41 = vsub.f32 2.0, %v4612_v34 }
0x1857   :  { %v4628_v42 = vmul.f32 %v6635_v36, %v4620_v41 }
0x1859   :  { %v4636_v26 = vmul.f32 %v6619_v20, %v4628_v42 }
0x185b   :  { %6131 = vmatmul.mubr.msk.f32.vlgmr.msra.gmra.mrb[46].mxu1 %vm4643_vm11, %v4636_v26 }
0x185c   :  { %6139 = vmatpush3.msk.msra.mxu1 %vm4647_vm9, %v7485_v27  ;;  %6140 = vmatprep.mubr.msk.f32.mxu1 %vm6654_vm2, %v6652_v2 }
0x185d   :  { %6148 = vmatprep.subr.mxu1 %v6652_v2 }
0x18a9   :  { %v4581_v30 = vpop.xlane.xlu1 %4580 }
0x18aa   :  { %6636 = vrcp.f32 %v4581_v30 }
0x18ad   :  { %v4587_v45 = vpop.xlane.xlu1 %4586 }
0x18ae   :  { %6638 = vrcp.f32 %v4587_v45 }
0x18b1   :  { %v4590_v46 = vpop.xlane.xlu0 %4589 }
0x18b2   :  { %6640 = vrcp.f32 %v4590_v46  ;;  %v4593_v55 = vpop.xlane.xlu1 %4592 }
0x18b3   :  { %6642 = vrcp.f32 %v4593_v55 }
0x18b4   :  { %v6637_v21 = vpop.eup %6636 }
0x18b5   :  { %v4611_v12 = vmul.f32 %v6637_v21, %v4581_v30  ;;  %v4596_v9 = vpop.xlane.xlu0 %4595 }
0x18b6   :  { %6644 = vrcp.f32 %v4596_v9  ;;  %v4599_v22 = vpop.xlane.xlu1 %4598 }
0x18b7   :  { %v4619_v53 = vsub.f32 2.0, %v4611_v12  ;;  %6646 = vrcp.f32 %v4599_v22 }
0x18b8   :  { %v6639_v27 = vpop.eup %6638 }
0x18b9   :  { %v4627_v49 = vmul.f32 %v6637_v21, %v4619_v53  ;;  %v4613_v47 = vmul.f32 %v6639_v27, %v4587_v45  ;;  %v4602_v59 = vpop.xlane.xlu0 %4601 }
0x18ba   :  { %6648 = vrcp.f32 %v4602_v59 }
0x18bb   :  { %v4635_v25 = vmul.f32 %v6621_v10, %v4627_v49  ;;  %v4621_v20 = vsub.f32 2.0, %v4613_v47 }
0x18bc   :  { %v6641_v24 = vpop.eup %6640 }
0x18bd   :  { %v6643_v48 = vpop.eup %6642  ;;  %v4629_v57 = vmul.f32 %v6639_v27, %v4621_v20  ;;  %v4614_v29 = vmul.f32 %v6641_v24, %v4590_v46  ;;  %6126 = vmatmul.mubr.msk.f32.vlgmr.msra.gmra.mrb[42].mxu0 %vm4643_vm11, %v4635_v25 }
0x18be   :  { %v4615_v3 = vmul.f32 %v6643_v48, %v4593_v55  ;;  %6134 = vmatpush3.msk.msra.mxu0 %vm4647_vm9, %v7517_v33  ;;  %6135 = vmatprep.mubr.msk.f32.mxu0 %vm6654_vm2, %v6652_v2 }
0x18bf   :  { %v4637_v13 = vmul.f32 %v6623_v17, %v4629_v57  ;;  %v4622_v51 = vsub.f32 2.0, %v4614_v29  ;;  %6143 = vmatprep.subr.mxu0 %v6652_v2 }
0x18c0   :  { %v6645_v58 = vpop.eup %6644  ;;  %v4623_v14 = vsub.f32 2.0, %v4615_v3 }
0x18c1   :  { %v6647_v44 = vpop.eup %6646  ;;  %v4630_v60 = vmul.f32 %v6641_v24, %v4622_v51  ;;  %v4616_v8 = vmul.f32 %v6645_v58, %v4596_v9  ;;  %6136 = vmatmul.mubr.msk.f32.vlgmr.msra.gmra.mrb[44].mxu0 %vm4643_vm11, %v4637_v13 }
0x18c2   :  { %v4631_v56 = vmul.f32 %v6643_v48, %v4623_v14  ;;  %v4617_v5 = vmul.f32 %v6647_v44, %v4599_v22  ;;  %6144 = vmatpush3.msk.msra.mxu0 %vm4647_vm9, %v7534_v15  ;;  %6145 = vmatprep.mubr.msk.f32.mxu0 %vm6654_vm2, %v6652_v2 }
0x18c3   :  { %v4638_v33 = vmul.f32 %v7567_v11, %v4630_v60  ;;  %v4624_v40 = vsub.f32 2.0, %v4616_v8  ;;  %6153 = vmatprep.subr.mxu0 %v6652_v2 }
0x18c4   :  { %v6649_v52 = vpop.eup %6648  ;;  %v4639_v63 = vmul.f32 %v7569_v54, %v4631_v56  ;;  %v4625_v10 = vsub.f32 2.0, %v4617_v5 }
0x18c5   :  { %v4632_v4 = vmul.f32 %v6645_v58, %v4624_v40  ;;  %v4618_v7 = vmul.f32 %v6649_v52, %v4602_v59  ;;  %6141 = vmatmul.mubr.msk.f32.vlgmr.msra.gmra.mrb[48].mxu1 %vm4643_vm11, %v4638_v33 }
0x18c6   :  { %v4633_v31 = vmul.f32 %v6647_v44, %v4625_v10  ;;  %6146 = vmatmul.mubr.msk.f32.vlgmr.msra.gmra.mrb[46].mxu0 %vm4643_vm11, %v4639_v63  ;;  %6149 = vmatpush3.msk.msra.mxu1 %vm4647_vm9, %v7499_v0 }
0x18c7   :  { %v4640_v15 = vmul.f32 %v7575_v1, %v4632_v4  ;;  %v4626_v28 = vsub.f32 2.0, %v4618_v7  ;;  %6154 = vmatpush3.msk.msra.mxu0 %vm4647_vm9, %v7548_v6  ;;  %6150 = vmatprep.mubr.msk.f32.mxu1 %vm6654_vm2, %v6652_v2  ;;  %v5311_v6 = vld [vmem:[%s7682_s9] sm:$0xff] }
0x18c8   :  { %v4641_v62 = vmul.f32 %v7577_v32, %v4633_v31  ;;  %6158 = vmatprep.subr.mxu1 %v6652_v2  ;;  %6155 = vmatprep.mubr.msk.f32.mxu0 %vm6654_vm2, %v6652_v2  ;;  %v6381_v32 = vpack.c.bf16 %v5316_v19, %v5315_v43 }
0x18c9   :  { %v4634_v17 = vmul.f32 %v6649_v52, %v4626_v28  ;;  %6151 = vmatmul.mubr.msk.f32.vlgmr.msra.gmra.mrb[50].mxu1 %vm4643_vm11, %v4640_v15  ;;  %6374 = vmatprep.subr.bf16.mxu0 %v6653_v16 }
0x18ca   :  { %6159 = vmatpush3.msk.msra.mxu1 %vm4647_vm9, %v7522_v50  ;;  %6156 = vmatmul.mubr.msk.f32.vlgmr.msra.gmra.mrb[48].mxu0 %vm4643_vm11, %v4641_v62  ;;  %v5312_v50 = vld [vmem:[%s7682_s9 + $0x8] sm:$0xff] }
0x18cb   :  { %v4642_v0 = vmul.f32 %v7583_v39, %v4634_v17  ;;  %6160 = vmatprep.mubr.msk.f32.mxu1 %vm6654_vm2, %v6652_v2  ;;  %6179 = vmatprep.mubr.msk.f32.mxu0 %vm6654_vm2, %v6652_v2  ;;  %v6375_v23 = vpack.c.bf16 %v5312_v50, %v5311_v6  ;;  %v5314_v2 = vld [vmem:[%s7682_s9 + $0x18] sm:$0xff]  ;;  %v6384_v39 = vpack.c.bf16 %v5318_v38, %v5317_v35  ;;  %vm5344_vm2 = vcmask 1046534  }
0x18cc   :  { %v6378_v11 = vpack.c.bf16 %v5314_v2, %v5313_v61 }
0x18cd   :  { %6161 = vmatmul.mubr.msk.f32.vlgmr.msra.gmra.mrb[52].mxu1 %vm4643_vm11, %v4642_v0  ;;  %6376 = vmatpush3.bf16.msra.mxu0 %v6375_v23 }
0x18ce   :  { %6377 = vmatprep.subr.bf16.mxu0 %v6653_v16 }
0x18d1   :  { %6379 = vmatpush3.bf16.msra.mxu0 %v6378_v11 }
0x18d2   :  { %6380 = vmatprep.subr.bf16.mxu0 %v6653_v16 }
0x18d5   :  { %6382 = vmatpush3.bf16.msra.mxu0 %v6381_v32 }
0x18d6   :  { %6383 = vmatprep.subr.bf16.mxu0 %v6653_v16 }
0x18d9   :  { %6385 = vmatpush3.bf16.msra.mxu0 %v6384_v39 }
0x192e   :  { %v4791_v54 = vpop.f32.mrb[46].mxu1 }
0x192f   :  { %v6132_v1 = vpop.f32.mrb[47].mxu1  ;;  %v5253_v37 = vsel %vm5245_vm12, %v4791_v54, 0.0 }
0x1930   :  { %v5254_v18 = vrot.slane %v5253_v37, 4 }
0x1932   :  { %v5255_v36 = vadd.f32 %v5254_v18, %v5253_v37 }
0x1934   :  { %v5256_v34 = vrot.slane %v5255_v36, 2 }
0x1936   :  { %v5257_v42 = vadd.f32 %v5256_v34, %v5255_v36 }
0x1938   :  { %v5258_v21 = vrot.slane %v5257_v42, 1 }
0x193a   :  { %v5259_v47 = vadd.f32 %v5258_v21, %v5257_v42 }
0x193c   :  { %v5304_v60 = vmul.f32 0.5, %v5259_v47 }
0x1990   :  { %v4716_v41 = vpop.f32.mrb[42].mxu0 }
0x1991   :  { %v5246_v26 = vsel %vm5245_vm12, %v4716_v41, 0.0  ;;  %v6127_v30 = vpop.f32.mrb[43].mxu0 }
0x1992   :  { %v5247_v45 = vrot.slane %v5246_v26, 4 }
0x1994   :  { %v5248_v46 = vadd.f32 %v5247_v45, %v5246_v26  ;;  %v4866_v55 = vpop.f32.mrb[44].mxu0 }
0x1995   :  { %v5260_v12 = vsel %vm5245_vm12, %v4866_v55, 0.0  ;;  %v6137_v9 = vpop.f32.mrb[45].mxu0 }
0x1996   :  { %v5249_v16 = vrot.slane %v5248_v46, 2  ;;  %v5261_v22 = vrot.slane %v5260_v12, 4 }
0x1998   :  { %v5250_v53 = vadd.f32 %v5249_v16, %v5248_v46  ;;  %v5262_v27 = vadd.f32 %v5261_v22, %v5260_v12  ;;  %v4941_v49 = vpop.f32.mrb[48].mxu1 }
0x1999   :  { %v5267_v59 = vsel %vm5245_vm12, %v4941_v49, 0.0  ;;  %v5016_v25 = vpop.f32.mrb[46].mxu0  ;;  %v6142_v20 = vpop.f32.mrb[49].mxu1 }
0x199a   :  { %v5251_v24 = vrot.slane %v5250_v53, 1  ;;  %v5263_v48 = vrot.slane %v5262_v27, 2  ;;  %v5268_v57 = vrot.slane %v5267_v59, 4  ;;  %v5274_v29 = vsel %vm5245_vm12, %v5016_v25, 0.0  ;;  %v6147_v3 = vpop.f32.mrb[47].mxu0 }
0x199b   :  { %v5275_v13 = vrot.slane %v5274_v29, 4  ;;  %v5528_v25 = vld [vmem:[%s7683_s10] ss:$0 sm:$0xff] }
0x199c   :  { %v5252_v51 = vadd.f32 %v5251_v24, %v5250_v53  ;;  %v5264_v58 = vadd.f32 %v5263_v48, %v5262_v27  ;;  %v5269_v14 = vadd.f32 %v5268_v57, %v5267_v59  ;;  %v5091_v44 = vpop.f32.mrb[50].mxu1 }
0x199d   :  { %v5276_v8 = vadd.f32 %v5275_v13, %v5274_v29  ;;  %v5281_v56 = vsel %vm5245_vm12, %v5091_v44, 0.0  ;;  %v6152_v5 = vpop.f32.mrb[51].mxu1  ;;  %v5166_v33 = vpop.f32.mrb[48].mxu0 }
0x199e   :  { %v5303_v40 = vmul.f32 0.5, %v5252_v51  ;;  %v5265_v52 = vrot.slane %v5264_v58, 1  ;;  %v5270_v63 = vrot.slane %v5269_v14, 2  ;;  %v5282_v10 = vrot.slane %v5281_v56, 4  ;;  %v6157_v4 = vpop.f32.mrb[49].mxu0 }
0x199f   :  { %v5277_v7 = vrot.slane %v5276_v8, 2  ;;  %v5288_v31 = vsel %vm5245_vm12, %v5166_v33, 0.0 }
0x19a0   :  { %v5335_v15 = vsel %vm5334_vm13, %v5304_v60, %v5303_v40  ;;  %v5266_v28 = vadd.f32 %v5265_v52, %v5264_v58  ;;  %v5271_v62 = vadd.f32 %v5270_v63, %v5269_v14  ;;  %v5283_v17 = vadd.f32 %v5282_v10, %v5281_v56  ;;  %v5241_v0 = vpop.f32.mrb[52].mxu1 }
0x19a1   :  { %v5278_v6 = vadd.f32 %v5277_v7, %v5276_v8  ;;  %v5289_v50 = vrot.slane %v5288_v31, 4  ;;  %v5295_v23 = vsel %vm5245_vm12, %v5241_v0, 0.0  ;;  %v6162_v61 = vpop.f32.mrb[53].mxu1 }
0x19a2   :  { %v5305_v2 = vmul.f32 0.5, %v5266_v28  ;;  %v5272_v11 = vrot.slane %v5271_v62, 1  ;;  %v5284_v54 = vrot.slane %v5283_v17, 2  ;;  %v5296_v43 = vrot.slane %v5295_v23, 4 }
0x19a3   :  { %v5279_v19 = vrot.slane %v5278_v6, 1  ;;  %v5290_v1 = vadd.f32 %v5289_v50, %v5288_v31 }
0x19a4   :  { %v5337_v32 = vsel %vm5336_vm14, %v5305_v2, %v5335_v15  ;;  %v5273_v35 = vadd.f32 %v5272_v11, %v5271_v62  ;;  %v5285_v38 = vadd.f32 %v5284_v54, %v5283_v17  ;;  %v5297_v39 = vadd.f32 %v5296_v43, %v5295_v23 }
0x19a5   :  { %v5280_v37 = vadd.f32 %v5279_v19, %v5278_v6  ;;  %v5291_v18 = vrot.slane %v5290_v1, 2 }
0x19a6   :  { %v5306_v36 = vmul.f32 0.5, %v5273_v35  ;;  %v5286_v34 = vrot.slane %v5285_v38, 1  ;;  %v5298_v41 = vrot.slane %v5297_v39, 2 }
0x19a7   :  { %v5307_v42 = vmul.f32 0.5, %v5280_v37  ;;  %v5292_v26 = vadd.f32 %v5291_v18, %v5290_v1 }
0x19a8   :  { %v5339_v30 = vsel %vm5338_vm15, %v5306_v36, %v5337_v32  ;;  %v5287_v45 = vadd.f32 %v5286_v34, %v5285_v38  ;;  %v5299_v46 = vadd.f32 %v5298_v41, %v5297_v39 }
0x19a9   :  { %v5341_v55 = vsel %vm5340_vm0, %v5307_v42, %v5339_v30  ;;  %v5293_v21 = vrot.slane %v5292_v26, 1 }
0x19aa   :  { %v5308_v12 = vmul.f32 0.5, %v5287_v45  ;;  %v5300_v9 = vrot.slane %v5299_v46, 1 }
0x19ab   :  { %v5294_v16 = vadd.f32 %v5293_v21, %v5292_v26 }
0x19ac   :  { %v5301_v22 = vadd.f32 %v5300_v9, %v5299_v46  ;;  %v5343_v53 = vsel %vm5342_vm1, %v5308_v12, %v5341_v55 }
0x19ad   :  { %v5309_v27 = vmul.f32 0.5, %v5294_v16 }
0x19ae   :  { %v5310_v49 = vmul.f32 0.5, %v5301_v22 }
0x19af   :  { %v5345_v47 = vsel %vm5344_vm2, %v5309_v27, %v5343_v53 }
0x19b0   :  { %v5347_v59 = vsel %vm5346_vm3, %v5310_v49, %v5345_v47 }
0x19b1   :  { %6180 = vmatmul.mubr.msk.f32.vlgmr.msra.gmra.mrb[50].mxu0 %vm3921_vm8, %v5347_v59 }
0x1a84   :  { %v5416_v20 = vpop.f32.mrb[50].mxu0 }
0x1a85   :  { %v5417_v24 = vadd.f32 %v5528_v25, %v5416_v20  ;;  %v6181_v48 = vpop.f32.mrb[51].mxu0 }
0x1a87   :  { %5421 = vst.msk [vmem:[%s7684_s11] sm:$0xff] %vm5420_vm4, %v5417_v24 }

</bundles_post_ra>
